<compile_context>
chip_gen: v6e
topology: v6e:2x2x1
jax: 0.10.0
libtpu: 0.0.40
codegen_flags: <defaults>
</compile_context>

<pallas_src>
import jax
import jax.numpy as jnp
from jax.experimental import pallas as pl
from jax.experimental.pallas import tpu as pltpu

TM = 128          # batch-tile rows (MXU-aligned)
LANE = 128        # lane width / padding unit


def _leaky_relu(x, slope=0.2):
    return jnp.where(x > 0, x, slope * x)


def _pad_to(n, m):
    return ((n + m - 1) // m) * m


def discriminator_kernel(x_ref, w1_ref, b1_ref, w2_ref, b2_ref, w3_ref, b3_ref,
                         o_ref):
    # Layer 1: Linear(K, 512) + LeakyReLU(0.2)      [Dropout -> identity]
    x = x_ref[...].astype(jnp.bfloat16)
    h1 = jnp.dot(x, w1_ref[...], preferred_element_type=jnp.float32)
    h1 = _leaky_relu(h1 + b1_ref[...])

    # Layer 2: Linear(512, 256) + LeakyReLU(0.2)    [Dropout -> identity]
    h2 = jnp.dot(h1.astype(jnp.bfloat16), w2_ref[...],
                 preferred_element_type=jnp.float32)
    h2 = _leaky_relu(h2 + b2_ref[...])

    # Layer 3: Linear(256, 1->128 padded) + Sigmoid (lane-dense store)
    h3 = jnp.dot(h2.astype(jnp.bfloat16), w3_ref[...],
                 preferred_element_type=jnp.float32)
    o_ref[...] = jax.nn.sigmoid(h3 + b3_ref[...]).astype(o_ref.dtype)


def discriminator_forward(img, params):
    """img: [B, input_dim] float32.  Returns [B, 1] float32 in (0, 1)."""
    w1, b1, w2, b2, w3, b3 = params
    B, K = img.shape

    # --- wrapper-side padding / dtype prep ----------------------------------
    K_pad = _pad_to(K, LANE)
    B_pad = _pad_to(B, TM)

    x_p = jnp.pad(img, ((0, B_pad - B), (0, K_pad - K)))            # f32
    w1_p = jnp.pad(w1, ((0, K_pad - K), (0, 0))).astype(jnp.bfloat16)
    w2_b = w2.astype(jnp.bfloat16)
    # lane-dense final layer: pad the single output column out to 128 lanes
    w3_p = jnp.pad(w3, ((0, 0), (0, LANE - w3.shape[1]))).astype(jnp.bfloat16)
    b3_p = jnp.pad(b3, ((0, 0), (0, LANE - b3.shape[1]))).astype(jnp.float32)
    b1_f = b1.astype(jnp.float32)
    b2_f = b2.astype(jnp.float32)

    n_tiles = B_pad // TM

    def resident(shape):  # whole-array block, same block every grid step
        return pl.BlockSpec(shape, lambda i: tuple(0 for _ in shape))

    out_padded = pl.pallas_call(
        discriminator_kernel,
        out_shape=jax.ShapeDtypeStruct((B_pad, LANE), jnp.float32),
        grid=(n_tiles,),
        in_specs=[
            pl.BlockSpec((TM, K_pad), lambda i: (i, 0)),   # x tile (pipelined)
            resident(w1_p.shape), resident(b1_f.shape),
            resident(w2_b.shape), resident(b2_f.shape),
            resident(w3_p.shape), resident(b3_p.shape),
        ],
        out_specs=pl.BlockSpec((TM, LANE), lambda i: (i, 0)),
        compiler_params=pltpu.CompilerParams(
            dimension_semantics=("parallel",)),
    )(x_p, w1_p, b1_f, w2_b, b2_f, w3_p, b3_p)

    return out_padded[:B, :1]


def init_params(key, input_dim):
    """Deterministic synthetic init (shapes match the PyTorch module)."""
    k1, k2, k3, k4, k5, k6 = jax.random.split(key, 6)

    def lin(kw, kb, fan_in, fan_out):
        bound = 1.0 / jnp.sqrt(fan_in)
        w = jax.random.uniform(kw, (fan_in, fan_out), jnp.float32, -bound, bound)
        b = jax.random.uniform(kb, (1, fan_out), jnp.float32, -bound, bound)
        return w, b

    w1, b1 = lin(k1, k2, input_dim, 512)
    w2, b2 = lin(k3, k4, 512, 256)
    w3, b3 = lin(k5, k6, 256, 1)
    return (w1, b1, w2, b2, w3, b3)


def reference_forward(img, params):
    """Pure-JAX f32 reference matching the PyTorch module (eval mode)."""
    w1, b1, w2, b2, w3, b3 = params
    h = _leaky_relu(img @ w1 + b1)
    h = _leaky_relu(h @ w2 + b2)
    return jax.nn.sigmoid(h @ w3 + b3)


if __name__ == "__main__":
    key = jax.random.PRNGKey(0)
    k_img, k_par = jax.random.split(key)

    B, INPUT_DIM = 8, 784  # MNIST-style flattened image batch
    img = jax.random.normal(k_img, (B, INPUT_DIM), jnp.float32)
    params = init_params(k_par, INPUT_DIM)

    out = discriminator_forward(img, params)
    out = jax.block_until_ready(out)

    ref = reference_forward(img, params)
    assert out.shape == (B, 1), out.shape
    # bf16 matmul operands with f32 accumulation -> relaxed tolerance vs f32 ref
    assert jnp.allclose(out, ref, atol=2e-2, rtol=2e-2), "mismatch vs reference"
    assert bool(jnp.all((out > 0.0) & (out < 1.0))), "sigmoid range violated"

    print("KERNEL_OK")
</pallas_src>

<mosaic_0001>
module attributes {stable_mosaic.version = 11 : i64} {
  func.func @discriminator_kernel(%arg0: i32, %arg1: memref<128x896xf32, #tpu.memory_space<vmem>>, %arg2: memref<896x512xbf16, #tpu.memory_space<vmem>>, %arg3: memref<1x512xf32, #tpu.memory_space<vmem>>, %arg4: memref<512x256xbf16, #tpu.memory_space<vmem>>, %arg5: memref<1x256xf32, #tpu.memory_space<vmem>>, %arg6: memref<256x128xbf16, #tpu.memory_space<vmem>>, %arg7: memref<1x128xf32, #tpu.memory_space<vmem>>, %arg8: memref<128x128xf32, #tpu.memory_space<vmem>>) attributes {dimension_semantics = [#tpu.dimension_semantics<parallel>], iteration_bounds = array<i64: 1>, scalar_prefetch = 0 : i64, scratch_operands = 0 : i64, tpu.core_type = #tpu.core_type<tc>, window_params = [{transform_indices = @transform_0, window_bounds = array<i64: 128, 896>}, {pipeline_mode = #tpu.pipeline_mode<synchronous>, transform_indices = @transform_1, window_bounds = array<i64: 896, 512>}, {pipeline_mode = #tpu.pipeline_mode<synchronous>, transform_indices = @transform_2, window_bounds = array<i64: 1, 512>}, {pipeline_mode = #tpu.pipeline_mode<synchronous>, transform_indices = @transform_3, window_bounds = array<i64: 512, 256>}, {pipeline_mode = #tpu.pipeline_mode<synchronous>, transform_indices = @transform_4, window_bounds = array<i64: 1, 256>}, {pipeline_mode = #tpu.pipeline_mode<synchronous>, transform_indices = @transform_5, window_bounds = array<i64: 256, 128>}, {pipeline_mode = #tpu.pipeline_mode<synchronous>, transform_indices = @transform_6, window_bounds = array<i64: 1, 128>}, {transform_indices = @transform_7, window_bounds = array<i64: 128, 128>}]} {
    %c0 = arith.constant 0 : index
    %c0_0 = arith.constant 0 : index
    %0 = vector.load %arg1[%c0, %c0_0] : memref<128x896xf32, #tpu.memory_space<vmem>>, vector<128x896xf32>
    %1 = arith.truncf %0 : vector<128x896xf32> to vector<128x896xbf16>
    %c0_1 = arith.constant 0 : index
    %c0_2 = arith.constant 0 : index
    %2 = vector.load %arg2[%c0_1, %c0_2] : memref<896x512xbf16, #tpu.memory_space<vmem>>, vector<896x512xbf16>
    %cst = arith.constant dense<0.000000e+00> : vector<128x512xf32>
    %3 = tpu.matmul %1, %2, %cst {dimension_numbers = #tpu.dot_dimension_numbers<[1], [0], [0], [1], [0, 0, 1, 1], [], []>} : vector<128x896xbf16>, vector<896x512xbf16>, vector<128x512xf32> -> vector<128x512xf32>
    %c0_3 = arith.constant 0 : index
    %c0_4 = arith.constant 0 : index
    %4 = vector.load %arg3[%c0_3, %c0_4] : memref<1x512xf32, #tpu.memory_space<vmem>>, vector<1x512xf32>
    %5 = vector.broadcast %4 : vector<1x512xf32> to vector<128x512xf32>
    %6 = arith.addf %3, %5 : vector<128x512xf32>
    %cst_5 = arith.constant 0.000000e+00 : f32
    %7 = vector.broadcast %cst_5 : f32 to vector<128x512xf32>
    %8 = arith.cmpf ogt, %6, %7 : vector<128x512xf32>
    %cst_6 = arith.constant 2.000000e-01 : f32
    %9 = vector.broadcast %cst_6 : f32 to vector<128x512xf32>
    %10 = arith.mulf %9, %6 : vector<128x512xf32>
    %11 = arith.select %8, %6, %10 : vector<128x512xi1>, vector<128x512xf32>
    %12 = arith.truncf %11 : vector<128x512xf32> to vector<128x512xbf16>
    %c0_7 = arith.constant 0 : index
    %c0_8 = arith.constant 0 : index
    %13 = vector.load %arg4[%c0_7, %c0_8] : memref<512x256xbf16, #tpu.memory_space<vmem>>, vector<512x256xbf16>
    %cst_9 = arith.constant dense<0.000000e+00> : vector<128x256xf32>
    %14 = tpu.matmul %12, %13, %cst_9 {dimension_numbers = #tpu.dot_dimension_numbers<[1], [0], [0], [1], [0, 0, 1, 1], [], []>} : vector<128x512xbf16>, vector<512x256xbf16>, vector<128x256xf32> -> vector<128x256xf32>
    %c0_10 = arith.constant 0 : index
    %c0_11 = arith.constant 0 : index
    %15 = vector.load %arg5[%c0_10, %c0_11] : memref<1x256xf32, #tpu.memory_space<vmem>>, vector<1x256xf32>
    %16 = vector.broadcast %15 : vector<1x256xf32> to vector<128x256xf32>
    %17 = arith.addf %14, %16 : vector<128x256xf32>
    %cst_12 = arith.constant 0.000000e+00 : f32
    %18 = vector.broadcast %cst_12 : f32 to vector<128x256xf32>
    %19 = arith.cmpf ogt, %17, %18 : vector<128x256xf32>
    %cst_13 = arith.constant 2.000000e-01 : f32
    %20 = vector.broadcast %cst_13 : f32 to vector<128x256xf32>
    %21 = arith.mulf %20, %17 : vector<128x256xf32>
    %22 = arith.select %19, %17, %21 : vector<128x256xi1>, vector<128x256xf32>
    %23 = arith.truncf %22 : vector<128x256xf32> to vector<128x256xbf16>
    %c0_14 = arith.constant 0 : index
    %c0_15 = arith.constant 0 : index
    %24 = vector.load %arg6[%c0_14, %c0_15] : memref<256x128xbf16, #tpu.memory_space<vmem>>, vector<256x128xbf16>
    %cst_16 = arith.constant dense<0.000000e+00> : vector<128x128xf32>
    %25 = tpu.matmul %23, %24, %cst_16 {dimension_numbers = #tpu.dot_dimension_numbers<[1], [0], [0], [1], [0, 0, 1, 1], [], []>} : vector<128x256xbf16>, vector<256x128xbf16>, vector<128x128xf32> -> vector<128x128xf32>
    %c0_17 = arith.constant 0 : index
    %c0_18 = arith.constant 0 : index
    %26 = vector.load %arg7[%c0_17, %c0_18] : memref<1x128xf32, #tpu.memory_space<vmem>>, vector<1x128xf32>
    %27 = vector.broadcast %26 : vector<1x128xf32> to vector<128x128xf32>
    %28 = arith.addf %25, %27 : vector<128x128xf32>
    %29 = arith.negf %28 : vector<128x128xf32>
    %30 = math.exp %29 : vector<128x128xf32>
    %cst_19 = arith.constant 1.000000e+00 : f32
    %31 = vector.broadcast %cst_19 : f32 to vector<128x128xf32>
    %32 = arith.addf %31, %30 : vector<128x128xf32>
    %33 = arith.divf %31, %32 : vector<128x128xf32>
    %c0_20 = arith.constant 0 : index
    %c0_21 = arith.constant 0 : index
    %34 = vector.load %arg8[%c0_20, %c0_21] : memref<128x128xf32, #tpu.memory_space<vmem>>, vector<128x128xf32>
    tpu.vector_store %arg8[%c0_20, %c0_21], %33 {strides = array<i32>} : memref<128x128xf32, #tpu.memory_space<vmem>>, vector<128x128xf32>,
    return
  }
  func.func @transform_0(%arg0: i32) -> (i32, i32) {
    %c0_i32 = arith.constant 0 : i32
    %c0_i32_0 = arith.constant 0 : i32
    return %arg0, %c0_i32 : i32, i32
  }
  func.func @transform_1(%arg0: i32) -> (i32, i32) {
    %c0_i32 = arith.constant 0 : i32
    %c0_i32_0 = arith.constant 0 : i32
    %c0_i32_1 = arith.constant 0 : i32
    return %c0_i32, %c0_i32_0 : i32, i32
  }
  func.func @transform_2(%arg0: i32) -> (i32, i32) {
    %c0_i32 = arith.constant 0 : i32
    %c0_i32_0 = arith.constant 0 : i32
    %c0_i32_1 = arith.constant 0 : i32
    return %c0_i32, %c0_i32_0 : i32, i32
  }
  func.func @transform_3(%arg0: i32) -> (i32, i32) {
    %c0_i32 = arith.constant 0 : i32
    %c0_i32_0 = arith.constant 0 : i32
    %c0_i32_1 = arith.constant 0 : i32
    return %c0_i32, %c0_i32_0 : i32, i32
  }
  func.func @transform_4(%arg0: i32) -> (i32, i32) {
    %c0_i32 = arith.constant 0 : i32
    %c0_i32_0 = arith.constant 0 : i32
    %c0_i32_1 = arith.constant 0 : i32
    return %c0_i32, %c0_i32_0 : i32, i32
  }
  func.func @transform_5(%arg0: i32) -> (i32, i32) {
    %c0_i32 = arith.constant 0 : i32
    %c0_i32_0 = arith.constant 0 : i32
    %c0_i32_1 = arith.constant 0 : i32
    return %c0_i32, %c0_i32_0 : i32, i32
  }
  func.func @transform_6(%arg0: i32) -> (i32, i32) {
    %c0_i32 = arith.constant 0 : i32
    %c0_i32_0 = arith.constant 0 : i32
    %c0_i32_1 = arith.constant 0 : i32
    return %c0_i32, %c0_i32_0 : i32, i32
  }
  func.func @transform_7(%arg0: i32) -> (i32, i32) {
    %c0_i32 = arith.constant 0 : i32
    %c0_i32_0 = arith.constant 0 : i32
    return %arg0, %c0_i32 : i32, i32
  }
}

</mosaic_0001>

<bundles_post_ra>
// kernel: tpu_custom_call.1
= control target key start
LH: loop header
LB: loop body
LE: loop exit
PB: predicated region body
PF: predicated region fallthrough
CT: control target
= control target key end

     0   :  { %12 = vsyncpa [#allocation3], 0  ;;  %s5667_s0 = inlined_call_operand.hbm [shape: f32[128,896], index: 0, kind: input, shape index: {}]   ;;  %s5668_s1 = inlined_call_operand.hbm [shape: bf16[896,512], index: 1, kind: input, shape index: {}]   ;;  %s5669_s2 = inlined_call_operand.hbm [shape: f32[1,512], index: 2, kind: input, shape index: {}]   ;;  %s5670_s3 = inlined_call_operand.hbm [shape: bf16[512,256], index: 3, kind: input, shape index: {}]   ;;  %s5671_s4 = inlined_call_operand.vmem [shape: f32[1,256], index: 4, kind: input, shape index: {}]   ;;  %s5672_s5 = inlined_call_operand.hbm [shape: bf16[256,128], index: 5, kind: input, shape index: {}]   ;;  %s5673_s6 = inlined_call_operand.vmem [shape: f32[1,128], index: 6, kind: input, shape index: {}]   ;;  %s5674_s7 = inlined_call_operand.hbm [shape: f32[128,128], index: 7, kind: output, shape index: {}]  }
   0x1   :  { %13 = vsyncpa [#allocation6], 0 }
   0x2   :  { %14 = vsyncpa [#allocation9], 0 }
   0x3   :  { %15 = vsyncpa [#allocation4], 0  ;;  %s4910_s24 = smov [#allocation5]  }
   0x4   :  { %s33_s25 = sshll.u32 %s4910_s24, 4  ;;  %s34_s25 = int_to_ptr.vmem [resolvable:$true] %s33_s25 }
   0x5   :  { %s4790_s26 = scalar_lea.vmem %s34_s25, 28672  ;;  %p4795_p1 = scmp.lt.s32.totalorder %s34_s25, %s34_s25 }
   0x6   :  { %p4791_p0 = scmp.ne.s32.totalorder %s34_s25, %s4790_s26  ;;  %p4796_p2 = scmp.lt.s32.totalorder %s4790_s26, %s4790_s26 }
   0x8   :  { %p4797_p3 = por %p4796_p2, %p4795_p1 }
   0xa   :  { %p4798_p4 = pnand %p4797_p3, %p4791_p0 }
   0xc   :  { %4801 = shalt.err (!%p4798_p4)
}
   0xd   :  { %s4911_s27 = smov 256   ;;  %s4912_s28 = smov 16  }
   0xe   :  { %39 = dma.hbm_to_vmem [thread:$0]  %s5668_s1, 28672, %s34_s25, [#allocation6], %s4911_s27, %s4911_s27, %s4912_s28  }
   0xf   :  { %s4913_s8 = smov [#allocation8]  }
  0x10   :  { %s55_s9 = sshll.u32 %s4913_s8, 4  ;;  %s56_s9 = int_to_ptr.vmem [resolvable:$true] %s55_s9 }
  0x11   :  { %s4810_s10 = scalar_lea.vmem %s56_s9, 8192  ;;  %p4815_p6 = scmp.lt.s32.totalorder %s56_s9, %s56_s9 }
  0x12   :  { %p4811_p5 = scmp.ne.s32.totalorder %s56_s9, %s4810_s10  ;;  %p4816_p7 = scmp.lt.s32.totalorder %s4810_s10, %s4810_s10 }
  0x14   :  { %p4817_p8 = por %p4816_p7, %p4815_p6 }
  0x16   :  { %p4818_p9 = pnand %p4817_p8, %p4811_p5 }
  0x18   :  { %4821 = shalt.err (!%p4818_p9)
}
  0x19   :  { %s4914_s11 = smov 128   ;;  %s4915_s12 = smov 8  }
  0x1a   :  { %61 = dma.hbm_to_vmem [thread:$0]  %s5670_s3, 8192, %s56_s9, [#allocation9], %s4914_s11, %s4914_s11, %s4915_s12  }
  0x1b   :  { %s4916_s1 = smov [#allocation2]  }
  0x1c   :  { %s21_s15 = sshll.u32 %s4916_s1, 4  ;;  %s22_s15 = int_to_ptr.vmem [resolvable:$true] %s21_s15 }
  0x1d   :  { %s4830_s16 = scalar_lea.vmem %s22_s15, 14336  ;;  %p4835_p11 = scmp.lt.s32.totalorder %s22_s15, %s22_s15 }
  0x1e   :  { %p4831_p10 = scmp.ne.s32.totalorder %s22_s15, %s4830_s16  ;;  %p4836_p12 = scmp.lt.s32.totalorder %s4830_s16, %s4830_s16 }
  0x20   :  { %p4837_p13 = por %p4836_p12, %p4835_p11 }
  0x22   :  { %p4838_p0 = pnand %p4837_p13, %p4831_p10 }
  0x24   :  { %4841 = shalt.err (!%p4838_p0)
}
  0x25   :  { %s4917_s17 = smov 896   ;;  %s4918_s18 = smov 56  }
  0x26   :  { %27 = dma.hbm_to_vmem [thread:$0]  %s5667_s0, 14336, %s22_s15, [#allocation3], %s4917_s17, %s4917_s17, %s4918_s18  }
  0x27   :  { %s4919_s21 = smov [#allocation7]   ;;  %s4920_s3 = smov [#allocation10]  }
  0x28   :  { %s46_s22 = sshll.u32 %s4919_s21, 4  ;;  %s69_s23 = sshll.u32 %s4920_s3, 4  ;;  %s47_s22 = int_to_ptr.vmem [resolvable:$true] %s46_s22  ;;  %s70_s23 = int_to_ptr.vmem [resolvable:$true] %s69_s23 }
  0x29   :  { %s4850_s24 = scalar_lea.vmem %s47_s22, 64  ;;  %p4855_p2 = scmp.lt.s32.totalorder %s47_s22, %s47_s22 }
  0x2a   :  { %p4851_p1 = scmp.ne.s32.totalorder %s47_s22, %s4850_s24  ;;  %p4856_p3 = scmp.lt.s32.totalorder %s4850_s24, %s4850_s24 }
  0x2c   :  { %p4857_p4 = por %p4856_p3, %p4855_p2 }
  0x2e   :  { %p4858_p5 = pnand %p4857_p4, %p4851_p1 }
  0x30   :  { %4861 = shalt.err (!%p4858_p5)
}
  0x31   :  { %49 = dma.hbm_to_vmem [thread:$0]  %s5669_s2, 64, %s47_s22, [#allocation6]  }
  0x32   :  { %s4870_s27 = scalar_lea.vmem %s70_s23, 2048  ;;  %p4875_p7 = scmp.lt.s32.totalorder %s70_s23, %s70_s23 }
  0x33   :  { %p4871_p6 = scmp.ne.s32.totalorder %s70_s23, %s4870_s27  ;;  %p4876_p8 = scmp.lt.s32.totalorder %s4870_s27, %s4870_s27 }
  0x35   :  { %p4877_p9 = por %p4876_p8, %p4875_p7 }
  0x37   :  { %p4878_p10 = pnand %p4877_p9, %p4871_p6 }
  0x39   :  { %4881 = shalt.err (!%p4878_p10)
}
  0x3a   :  { %s4921_s0 = smov 64   ;;  %s4922_s28 = smov 4  }
  0x3b   :  { %75 = dma.hbm_to_vmem [thread:$0]  %s5672_s5, 2048, %s70_s23, [#allocation9], %s4921_s0, %s4921_s0, %s4922_s28  }
  0x3c   :  { %4902 = dma.done.wait [#allocation3], 14336  }
  0x3d   :  { %4903 = vsyncadd [#allocation3], 4294952960 }
  0x3e   :  { %4904 = dma.done.wait [#allocation6], 28736  }
  0x3f   :  { %4905 = vsyncadd [#allocation6], 4294938560 }
  0x40   :  { %4906 = dma.done.wait [#allocation9], 10240  }
  0x41   :  { %4907 = vsyncadd [#allocation9], 4294957056  ;;  %v4269_v0 = vld [vmem:[#allocation5 + $0xe4] ss:$16 sps:$4 sm:$0xff]   ;;  %v4273_v2 = vld [vmem:[#allocation5 + $0xe0] ss:$16 sps:$4 sm:$0xff]  }
  0x42   :  { %v4271_v1 = vld [vmem:[#allocation5 + $0x2e4] ss:$16 sps:$4 sm:$0xff]   ;;  %1628 = vmatprep.subr.bf16.mxu0 %v4269_v0  ;;  %v4274_v3 = vld [vmem:[#allocation5 + $0x2e0] ss:$16 sps:$4 sm:$0xff]   ;;  %v95_v46 = vld [vmem:[#allocation2 + $0x8] sm:$0xff] }
  0x43   :  { %1741 = vmatprep.subr.bf16.mxu1 %v4271_v1  ;;  %v4275_v4 = vld [vmem:[#allocation5 + $0xc4] ss:$16 sps:$4 sm:$0xff]   ;;  %1629 = vmatpush1.bf16.msra.mxu0 %v4273_v2  ;;  %v4279_v6 = vld [vmem:[#allocation5 + $0xc0] ss:$16 sps:$4 sm:$0xff]   ;;  %v97_v48 = vld [vmem:[#allocation2 + $0x18] sm:$0xff] }
  0x44   :  { %1742 = vmatpush1.bf16.msra.mxu1 %v4274_v3  ;;  %v4277_v5 = vld [vmem:[#allocation5 + $0x2c4] ss:$16 sps:$4 sm:$0xff]   ;;  %1630 = vmatprep.subr.bf16.mxu0 %v4275_v4  ;;  %v4280_v7 = vld [vmem:[#allocation5 + $0x2c0] ss:$16 sps:$4 sm:$0xff]  }
  0x45   :  { %1743 = vmatprep.subr.bf16.mxu1 %v4277_v5  ;;  %v4281_v8 = vld [vmem:[#allocation5 + $0xa4] ss:$16 sps:$4 sm:$0xff]   ;;  %v4285_v10 = vld [vmem:[#allocation5 + $0xa0] ss:$16 sps:$4 sm:$0xff]  }
  0x46   :  { %v4283_v9 = vld [vmem:[#allocation5 + $0x2a4] ss:$16 sps:$4 sm:$0xff]   ;;  %v4286_v11 = vld [vmem:[#allocation5 + $0x2a0] ss:$16 sps:$4 sm:$0xff]  }
  0x47   :  { %1631 = vmatpush1.bf16.msra.mxu0 %v4279_v6  ;;  %v4287_v12 = vld [vmem:[#allocation5 + $0x84] ss:$16 sps:$4 sm:$0xff]   ;;  %v4291_v14 = vld [vmem:[#allocation5 + $0x80] ss:$16 sps:$4 sm:$0xff]  }
  0x48   :  { %1744 = vmatpush1.bf16.msra.mxu1 %v4280_v7  ;;  %1632 = vmatprep.subr.bf16.mxu0 %v4281_v8  ;;  %v4289_v13 = vld [vmem:[#allocation5 + $0x284] ss:$16 sps:$4 sm:$0xff]   ;;  %v4292_v15 = vld [vmem:[#allocation5 + $0x280] ss:$16 sps:$4 sm:$0xff]   ;;  %v101_v7 = vld [vmem:[#allocation2 + $0x38] sm:$0xff] }
  0x49   :  { %1745 = vmatprep.subr.bf16.mxu1 %v4283_v9  ;;  %v4293_v16 = vld [vmem:[#allocation5 + $0x64] ss:$16 sps:$4 sm:$0xff]   ;;  %v4297_v18 = vld [vmem:[#allocation5 + $0x60] ss:$16 sps:$4 sm:$0xff]   ;;  %v103_v9 = vld [vmem:[#allocation2 + $0x48] sm:$0xff] }
  0x4a   :  { %v4295_v17 = vld [vmem:[#allocation5 + $0x264] ss:$16 sps:$4 sm:$0xff]   ;;  %v4298_v19 = vld [vmem:[#allocation5 + $0x260] ss:$16 sps:$4 sm:$0xff]  }
  0x4b   :  { %1633 = vmatpush1.bf16.msra.mxu0 %v4285_v10  ;;  %v4299_v20 = vld [vmem:[#allocation5 + $0x44] ss:$16 sps:$4 sm:$0xff]   ;;  %v4303_v22 = vld [vmem:[#allocation5 + $0x40] ss:$16 sps:$4 sm:$0xff]  }
  0x4c   :  { %1746 = vmatpush1.bf16.msra.mxu1 %v4286_v11  ;;  %1634 = vmatprep.subr.bf16.mxu0 %v4287_v12  ;;  %v4301_v21 = vld [vmem:[#allocation5 + $0x244] ss:$16 sps:$4 sm:$0xff]   ;;  %v4304_v23 = vld [vmem:[#allocation5 + $0x240] ss:$16 sps:$4 sm:$0xff]   ;;  %v109_v12 = vld [vmem:[#allocation2 + $0x78] sm:$0xff] }
  0x4d   :  { %1747 = vmatprep.subr.bf16.mxu1 %v4289_v13  ;;  %v4305_v24 = vld [vmem:[#allocation5 + $0x24] ss:$16 sps:$4 sm:$0xff]   ;;  %v4309_v26 = vld [vmem:[#allocation5 + $0x20] ss:$16 sps:$4 sm:$0xff]  }
  0x4e   :  { %v4307_v25 = vld [vmem:[#allocation5 + $0x224] ss:$16 sps:$4 sm:$0xff]   ;;  %v4310_v27 = vld [vmem:[#allocation5 + $0x220] ss:$16 sps:$4 sm:$0xff]  }
  0x4f   :  { %1635 = vmatpush1.bf16.msra.mxu0 %v4291_v14  ;;  %v4311_v28 = vld [vmem:[#allocation5 + $0x4] ss:$16 sps:$4 sm:$0xff]   ;;  %v4315_v30 = vld [vmem:[#allocation5] ss:$16 sps:$4 sm:$0xff]  }
  0x50   :  { %1748 = vmatpush1.bf16.msra.mxu1 %v4292_v15  ;;  %1636 = vmatprep.subr.bf16.mxu0 %v4293_v16  ;;  %v4313_v29 = vld [vmem:[#allocation5 + $0x204] ss:$16 sps:$4 sm:$0xff]   ;;  %v4316_v31 = vld [vmem:[#allocation5 + $0x200] ss:$16 sps:$4 sm:$0xff]   ;;  %v111_v16 = vld [vmem:[#allocation2 + $0x88] sm:$0xff] }
  0x51   :  { %1749 = vmatprep.subr.bf16.mxu1 %v4295_v17  ;;  %v4317_v32 = vld [vmem:[#allocation5 + $0x1e4] ss:$16 sps:$4 sm:$0xff]   ;;  %v4321_v34 = vld [vmem:[#allocation5 + $0x1e0] ss:$16 sps:$4 sm:$0xff]  }
  0x52   :  { %v4319_v33 = vld [vmem:[#allocation5 + $0x3e4] ss:$16 sps:$4 sm:$0xff]   ;;  %v4322_v35 = vld [vmem:[#allocation5 + $0x3e0] ss:$16 sps:$4 sm:$0xff]  }
  0x53   :  { %1637 = vmatpush1.bf16.msra.mxu0 %v4297_v18  ;;  %v4323_v36 = vld [vmem:[#allocation5 + $0x1c4] ss:$16 sps:$4 sm:$0xff]   ;;  %v4327_v38 = vld [vmem:[#allocation5 + $0x1c0] ss:$16 sps:$4 sm:$0xff]  }
  0x54   :  { %1750 = vmatpush1.bf16.msra.mxu1 %v4298_v19  ;;  %1638 = vmatprep.subr.bf16.mxu0 %v4299_v20  ;;  %v4325_v37 = vld [vmem:[#allocation5 + $0x3c4] ss:$16 sps:$4 sm:$0xff]   ;;  %v4328_v39 = vld [vmem:[#allocation5 + $0x3c0] ss:$16 sps:$4 sm:$0xff]  }
  0x55   :  { %1751 = vmatprep.subr.bf16.mxu1 %v4301_v21  ;;  %v4329_v40 = vld [vmem:[#allocation5 + $0x1a4] ss:$16 sps:$4 sm:$0xff]   ;;  %v4333_v42 = vld [vmem:[#allocation5 + $0x1a0] ss:$16 sps:$4 sm:$0xff]  }
  0x56   :  { %v4331_v41 = vld [vmem:[#allocation5 + $0x3a4] ss:$16 sps:$4 sm:$0xff]   ;;  %v4334_v43 = vld [vmem:[#allocation5 + $0x3a0] ss:$16 sps:$4 sm:$0xff]  }
  0x57   :  { %1639 = vmatpush1.bf16.msra.mxu0 %v4303_v22  ;;  %v4335_v44 = vld [vmem:[#allocation5 + $0x184] ss:$16 sps:$4 sm:$0xff]   ;;  %v4339_v50 = vld [vmem:[#allocation5 + $0x180] ss:$16 sps:$4 sm:$0xff]  }
  0x58   :  { %1752 = vmatpush1.bf16.msra.mxu1 %v4304_v23  ;;  %1640 = vmatprep.subr.bf16.mxu0 %v4305_v24  ;;  %v4337_v45 = vld [vmem:[#allocation5 + $0x384] ss:$16 sps:$4 sm:$0xff]   ;;  %v4340_v51 = vld [vmem:[#allocation5 + $0x380] ss:$16 sps:$4 sm:$0xff]  }
  0x59   :  { %1753 = vmatprep.subr.bf16.mxu1 %v4307_v25  ;;  %v102_v47 = vld [vmem:[#allocation2 + $0x40] sm:$0xff]  ;;  %v104_v49 = vld [vmem:[#allocation2 + $0x50] sm:$0xff]  ;;  %v115_v25 = vld [vmem:[#allocation2 + $0xa8] sm:$0xff] }
  0x5a   :  { %v4341_v52 = vld [vmem:[#allocation5 + $0x164] ss:$16 sps:$4 sm:$0xff]   ;;  %v4983_v53 = vpack.c.bf16 %v102_v47, %v95_v46  ;;  %v4985_v54 = vpack.c.bf16 %v104_v49, %v97_v48  ;;  %v4345_v56 = vld [vmem:[#allocation5 + $0x160] ss:$16 sps:$4 sm:$0xff]   ;;  %v131_v48 = vld [vmem:[#allocation2 + $0x128] sm:$0xff] }
  0x5b   :  { %1641 = vmatpush1.bf16.msra.mxu0 %v4309_v26  ;;  %v4343_v55 = vld [vmem:[#allocation5 + $0x364] ss:$16 sps:$4 sm:$0xff]   ;;  %v4346_v57 = vld [vmem:[#allocation5 + $0x360] ss:$16 sps:$4 sm:$0xff]  }
  0x5c   :  { %1754 = vmatpush1.bf16.msra.mxu1 %v4310_v27  ;;  %1642 = vmatprep.subr.bf16.mxu0 %v4311_v28  ;;  %v4347_v58 = vld [vmem:[#allocation5 + $0x144] ss:$16 sps:$4 sm:$0xff]   ;;  %v4351_v60 = vld [vmem:[#allocation5 + $0x140] ss:$16 sps:$4 sm:$0xff]   ;;  %v117_v28 = vld [vmem:[#allocation2 + $0xb8] sm:$0xff] }
  0x5d   :  { %1755 = vmatprep.subr.bf16.mxu1 %v4313_v29  ;;  %1660 = vmatprep.mubr.bf16.mxu0 %v4983_v53  ;;  %v4349_v59 = vld [vmem:[#allocation5 + $0x344] ss:$16 sps:$4 sm:$0xff]   ;;  %v4352_v61 = vld [vmem:[#allocation5 + $0x340] ss:$16 sps:$4 sm:$0xff]  }
  0x5e   :  { %1773 = vmatprep.mubr.bf16.mxu1 %v4985_v54  ;;  %v4353_v62 = vld [vmem:[#allocation5 + $0x124] ss:$16 sps:$4 sm:$0xff]   ;;  %v4357_v0 = vld [vmem:[#allocation5 + $0x120] ss:$16 sps:$4 sm:$0xff]  }
  0x5f   :  { %1643 = vmatpush1.bf16.msra.mxu0 %v4315_v30  ;;  %v4355_v63 = vld [vmem:[#allocation5 + $0x324] ss:$16 sps:$4 sm:$0xff]   ;;  %v4358_v1 = vld [vmem:[#allocation5 + $0x320] ss:$16 sps:$4 sm:$0xff]  }
  0x60   :  { %1756 = vmatpush1.bf16.msra.mxu1 %v4316_v31  ;;  %1644 = vmatprep.subr.bf16.mxu0 %v4317_v32  ;;  %v4359_v2 = vld [vmem:[#allocation5 + $0x104] ss:$16 sps:$4 sm:$0xff]   ;;  %v4363_v4 = vld [vmem:[#allocation5 + $0x100] ss:$16 sps:$4 sm:$0xff]   ;;  %v123_v31 = vld [vmem:[#allocation2 + $0xe8] sm:$0xff] }
  0x61   :  { %1757 = vmatprep.subr.bf16.mxu1 %v4319_v33  ;;  %v4361_v3 = vld [vmem:[#allocation5 + $0x304] ss:$16 sps:$4 sm:$0xff]   ;;  %v4364_v5 = vld [vmem:[#allocation5 + $0x300] ss:$16 sps:$4 sm:$0xff]  }
  0x62   :  { %v94_v6 = vld [vmem:[#allocation2] sm:$0xff]  ;;  %v96_v8 = vld [vmem:[#allocation2 + $0x10] sm:$0xff] }
  0x63   :  { %1645 = vmatpush2.bf16.msra.mxu0 %v4321_v34  ;;  %v4367_v10 = vld [vmem:[#allocation5 + $0x4e4] ss:$16 sps:$4 sm:$0xff]   ;;  %v4989_v14 = vpack.c.bf16 %v101_v7, %v94_v6  ;;  %v4991_v15 = vpack.c.bf16 %v103_v9, %v96_v8  ;;  %v4365_v18 = vld [vmem:[#allocation5 + $0x4e0] ss:$16 sps:$4 sm:$0xff]   ;;  %v125_v34 = vld [vmem:[#allocation2 + $0xf8] sm:$0xff] }
  0x64   :  { %1758 = vmatpush2.bf16.msra.mxu1 %v4322_v35  ;;  %1646 = vmatprep.subr.bf16.mxu0 %v4323_v36  ;;  %v4370_v11 = vld [vmem:[#allocation5 + $0x6e4] ss:$16 sps:$4 sm:$0xff]   ;;  %v4368_v19 = vld [vmem:[#allocation5 + $0x6e0] ss:$16 sps:$4 sm:$0xff]   ;;  %v151_v7 = vld [vmem:[#allocation2 + $0x1c8] sm:$0xff] }
  0x65   :  { %1759 = vmatprep.subr.bf16.mxu1 %v4325_v37  ;;  %v116_v13 = vld [vmem:[#allocation2 + $0xb0] sm:$0xff]  ;;  %v118_v17 = vld [vmem:[#allocation2 + $0xc0] sm:$0xff] }
  0x66   :  { %v4373_v20 = vld [vmem:[#allocation5 + $0x4c4] ss:$16 sps:$4 sm:$0xff]   ;;  %v4993_v21 = vpack.c.bf16 %v116_v13, %v109_v12  ;;  %v4371_v22 = vld [vmem:[#allocation5 + $0x4c0] ss:$16 sps:$4 sm:$0xff]   ;;  %v4995_v23 = vpack.c.bf16 %v118_v17, %v111_v16 }
  0x67   :  { %1647 = vmatpush2.bf16.msra.mxu0 %v4327_v38  ;;  %v108_v24 = vld [vmem:[#allocation2 + $0x70] sm:$0xff]  ;;  %v110_v26 = vld [vmem:[#allocation2 + $0x80] sm:$0xff] }
  0x68   :  { %1760 = vmatpush2.bf16.msra.mxu1 %v4328_v39  ;;  %1648 = vmatprep.subr.bf16.mxu0 %v4329_v40  ;;  %v4379_v27 = vld [vmem:[#allocation5 + $0x6c4] ss:$16 sps:$4 sm:$0xff]   ;;  %v4377_v30 = vld [vmem:[#allocation5 + $0x6c0] ss:$16 sps:$4 sm:$0xff]   ;;  %v5001_v36 = vpack.c.bf16 %v115_v25, %v108_v24  ;;  %v5003_v37 = vpack.c.bf16 %v117_v28, %v110_v26  ;;  %v157_v24 = vld [vmem:[#allocation2 + $0x1f8] sm:$0xff] }
  0x69   :  { %1761 = vmatprep.subr.bf16.mxu1 %v4331_v41  ;;  %v4376_v29 = vld [vmem:[#allocation5 + $0x4a4] ss:$16 sps:$4 sm:$0xff]   ;;  %v4374_v38 = vld [vmem:[#allocation5 + $0x4a0] ss:$16 sps:$4 sm:$0xff]   ;;  %v159_v26 = vld [vmem:[#allocation2 + $0x208] sm:$0xff] }
  0x6a   :  { %v130_v32 = vld [vmem:[#allocation2 + $0x120] sm:$0xff]  ;;  %v132_v35 = vld [vmem:[#allocation2 + $0x130] sm:$0xff] }
  0x6b   :  { %1649 = vmatpush2.bf16.msra.mxu0 %v4333_v42  ;;  %v4388_v33 = vld [vmem:[#allocation5 + $0x6a4] ss:$16 sps:$4 sm:$0xff]   ;;  %v5005_v39 = vpack.c.bf16 %v130_v32, %v123_v31  ;;  %v5007_v41 = vpack.c.bf16 %v132_v35, %v125_v34  ;;  %v4380_v42 = vld [vmem:[#allocation5 + $0x480] ss:$16 sps:$4 sm:$0xff]   ;;  %v167_v32 = vld [vmem:[#allocation2 + $0x248] sm:$0xff] }
  0x6c   :  { %1762 = vmatpush2.bf16.msra.mxu1 %v4334_v43  ;;  %1650 = vmatprep.subr.bf16.mxu0 %v4335_v44  ;;  %v4382_v40 = vld [vmem:[#allocation5 + $0x484] ss:$16 sps:$4 sm:$0xff]   ;;  %v4386_v44 = vld [vmem:[#allocation5 + $0x6a0] ss:$16 sps:$4 sm:$0xff]  }
  0x6d   :  { %1763 = vmatprep.subr.bf16.mxu1 %v4337_v45  ;;  %v122_v43 = vld [vmem:[#allocation2 + $0xe0] sm:$0xff]  ;;  %v129_v45 = vld [vmem:[#allocation2 + $0x118] sm:$0xff]  ;;  %v124_v47 = vld [vmem:[#allocation2 + $0xf0] sm:$0xff] }
  0x6e   :  { %v4397_v46 = vld [vmem:[#allocation5 + $0x684] ss:$16 sps:$4 sm:$0xff]   ;;  %v4392_v16 = vld [vmem:[#allocation5 + $0x420] ss:$16 sps:$4 sm:$0xff]  }
  0x6f   :  { %1651 = vmatpush2.bf16.msra.mxu0 %v4339_v50  ;;  %v4385_v49 = vld [vmem:[#allocation5 + $0x464] ss:$16 sps:$4 sm:$0xff]   ;;  %v137_v50 = vld [vmem:[#allocation2 + $0x158] sm:$0xff]  ;;  %v4422_v34 = vld [vmem:[#allocation5 + $0x620] ss:$16 sps:$4 sm:$0xff]  }
  0x70   :  { %1764 = vmatpush2.bf16.msra.mxu1 %v4340_v51  ;;  %1652 = vmatprep.subr.bf16.mxu0 %v4341_v52  ;;  %v144_v51 = vld [vmem:[#allocation2 + $0x190] sm:$0xff]  ;;  %v139_v52 = vld [vmem:[#allocation2 + $0x168] sm:$0xff]  ;;  %v158_v9 = vld [vmem:[#allocation2 + $0x200] sm:$0xff] }
  0x71   :  { %1765 = vmatprep.subr.bf16.mxu1 %v4343_v55  ;;  %v146_v55 = vld [vmem:[#allocation2 + $0x1a0] sm:$0xff]  ;;  %v5029_v17 = vpack.c.bf16 %v158_v9, %v151_v7  ;;  %v152_v25 = vld [vmem:[#allocation2 + $0x1d0] sm:$0xff] }
  0x72   :  { %v4394_v6 = vld [vmem:[#allocation5 + $0x424] ss:$16 sps:$4 sm:$0xff]  }
  0x73   :  { %1653 = vmatpush2.bf16.msra.mxu0 %v4345_v56  ;;  %v4395_v56 = vld [vmem:[#allocation5 + $0x680] ss:$16 sps:$4 sm:$0xff]   ;;  %v4415_v8 = vld [vmem:[#allocation5 + $0x644] ss:$16 sps:$4 sm:$0xff]  }
  0x74   :  { %1766 = vmatpush2.bf16.msra.mxu1 %v4346_v57  ;;  %1654 = vmatprep.subr.bf16.mxu0 %v4347_v58  ;;  %v5013_v57 = vpack.c.bf16 %v129_v45, %v122_v43  ;;  %v5015_v58 = vpack.c.bf16 %v131_v48, %v124_v47  ;;  %v4403_v28 = vld [vmem:[#allocation5 + $0x5e4] ss:$16 sps:$4 sm:$0xff]   ;;  %v4407_v45 = vld [vmem:[#allocation5 + $0x5c0] ss:$16 sps:$4 sm:$0xff]   ;;  %v171_v47 = vld [vmem:[#allocation2 + $0x268] sm:$0xff] }
  0x75   :  { %1767 = vmatprep.subr.bf16.mxu1 %v4349_v59  ;;  %v4383_v59 = vld [vmem:[#allocation5 + $0x460] ss:$16 sps:$4 sm:$0xff]   ;;  %v4409_v43 = vld [vmem:[#allocation5 + $0x5c4] ss:$16 sps:$4 sm:$0xff]  }
  0x76   :  { %v172_v31 = vld [vmem:[#allocation2 + $0x270] sm:$0xff]  ;;  %v166_v48 = vld [vmem:[#allocation2 + $0x240] sm:$0xff] }
  0x77   :  { %1655 = vmatpush2.bf16.msra.mxu0 %v4351_v60  ;;  %v5017_v60 = vpack.c.bf16 %v144_v51, %v137_v50  ;;  %v4433_v50 = vld [vmem:[#allocation5 + $0x604] ss:$16 sps:$4 sm:$0xff]  }
  0x78   :  { %1768 = vmatpush2.bf16.msra.mxu1 %v4352_v61  ;;  %1656 = vmatprep.subr.bf16.mxu0 %v4353_v62  ;;  %v4391_v61 = vld [vmem:[#allocation5 + $0x444] ss:$16 sps:$4 sm:$0xff]   ;;  %v5019_v62 = vpack.c.bf16 %v146_v55, %v139_v52  ;;  %v4431_v52 = vld [vmem:[#allocation5 + $0x600] ss:$16 sps:$4 sm:$0xff]   ;;  %v179_v55 = vld [vmem:[#allocation2 + $0x2a8] sm:$0xff] }
  0x79   :  { %1769 = vmatprep.subr.bf16.mxu1 %v4355_v63  ;;  %v4389_v63 = vld [vmem:[#allocation5 + $0x440] ss:$16 sps:$4 sm:$0xff]   ;;  %v4412_v51 = vld [vmem:[#allocation5 + $0x5a4] ss:$16 sps:$4 sm:$0xff]  }
  0x7a   :  { %v178_v7 = vld [vmem:[#allocation2 + $0x2a0] sm:$0xff]  ;;  %v180_v9 = vld [vmem:[#allocation2 + $0x2b0] sm:$0xff] }
  0x7b   :  { %1657 = vmatpush2.bf16.msra.mxu0 %v4357_v0  ;;  %v136_v0 = vld [vmem:[#allocation2 + $0x150] sm:$0xff] }
  0x7c   :  { %1770 = vmatpush2.bf16.msra.mxu1 %v4358_v1  ;;  %1658 = vmatprep.subr.bf16.mxu0 %v4359_v2  ;;  %v143_v1 = vld [vmem:[#allocation2 + $0x188] sm:$0xff]  ;;  %v4406_v2 = vld [vmem:[#allocation5 + $0x664] ss:$16 sps:$4 sm:$0xff]  }
  0x7d   :  { %1771 = vmatprep.subr.bf16.mxu1 %v4361_v3  ;;  %v138_v3 = vld [vmem:[#allocation2 + $0x160] sm:$0xff]  ;;  %v5025_v12 = vpack.c.bf16 %v143_v1, %v136_v0 }
  0x7f   :  { %1659 = vmatpush2.bf16.msra.mxu0 %v4363_v4  ;;  %v145_v4 = vld [vmem:[#allocation2 + $0x198] sm:$0xff] }
  0x80   :  { %1772 = vmatpush2.bf16.msra.mxu1 %v4364_v5  ;;  %1854 = vmatprep.subr.bf16.mxu0 %v4367_v10  ;;  %v4404_v5 = vld [vmem:[#allocation5 + $0x660] ss:$16 sps:$4 sm:$0xff]   ;;  %v153_v10 = vld [vmem:[#allocation2 + $0x1d8] sm:$0xff]  ;;  %v5027_v13 = vpack.c.bf16 %v145_v4, %v138_v3  ;;  %v4418_v4 = vld [vmem:[#allocation5 + $0x584] ss:$16 sps:$4 sm:$0xff]  }
  0x81   :  { %1967 = vmatprep.subr.bf16.mxu1 %v4370_v11  ;;  %v160_v11 = vld [vmem:[#allocation2 + $0x210] sm:$0xff] }
  0x82   :  { %1661 = vmatmul.mubr.bf16.vlgmr.msra.gmra.mxu0 %v4989_v14 }
  0x83   :  { %1774 = vmatmul.mubr.bf16.vlgmr.msra.gmra.mxu1 %v4991_v15  ;;  %1855 = vmatpush1.bf16.msra.mxu0 %v4365_v18  ;;  %v4400_v18 = vld [vmem:[#allocation5 + $0x404] ss:$16 sps:$4 sm:$0xff]  }
  0x84   :  { %1968 = vmatpush1.bf16.msra.mxu1 %v4368_v19  ;;  %1856 = vmatprep.subr.bf16.mxu0 %v4373_v20  ;;  %v5031_v19 = vpack.c.bf16 %v160_v11, %v153_v10  ;;  %v4398_v20 = vld [vmem:[#allocation5 + $0x400] ss:$16 sps:$4 sm:$0xff]   ;;  %v187_v10 = vld [vmem:[#allocation2 + $0x2e8] sm:$0xff]  ;;  %v4421_v11 = vld [vmem:[#allocation5 + $0x564] ss:$16 sps:$4 sm:$0xff]  }
  0x85   :  { %1670 = vmatprep.mubr.bf16.mxu0 %v4993_v21  ;;  %1783 = vmatprep.mubr.bf16.mxu1 %v4995_v23 }
  0x86   :  { %1969 = vmatprep.subr.bf16.mxu1 %v4379_v27  ;;  %v4413_v27 = vld [vmem:[#allocation5 + $0x640] ss:$16 sps:$4 sm:$0xff]  }
  0x87   :  { %1857 = vmatpush1.bf16.msra.mxu0 %v4371_v22  ;;  %v150_v22 = vld [vmem:[#allocation2 + $0x1c0] sm:$0xff] }
  0x88   :  { %1970 = vmatpush1.bf16.msra.mxu1 %v4377_v30  ;;  %1858 = vmatprep.subr.bf16.mxu0 %v4376_v29  ;;  %v165_v29 = vld [vmem:[#allocation2 + $0x238] sm:$0xff]  ;;  %v4424_v30 = vld [vmem:[#allocation5 + $0x624] ss:$16 sps:$4 sm:$0xff]   ;;  %v5037_v35 = vpack.c.bf16 %v157_v24, %v150_v22 }
  0x89   :  { %1971 = vmatprep.subr.bf16.mxu1 %v4388_v33  ;;  %v174_v33 = vld [vmem:[#allocation2 + $0x280] sm:$0xff] }
  0x8a   :  { %1671 = vmatmul.mubr.bf16.gmra.mxu0 %v5001_v36  ;;  %v202_v22 = vld [vmem:[#allocation2 + $0x360] sm:$0xff] }
  0x8b   :  { %1784 = vmatmul.mubr.bf16.gmra.mxu1 %v5003_v37  ;;  %1859 = vmatpush1.bf16.msra.mxu0 %v4374_v38  ;;  %v5039_v38 = vpack.c.bf16 %v159_v26, %v152_v25  ;;  %v5063_v25 = vpack.c.bf16 %v187_v10, %v180_v9  ;;  %v4419_v26 = vld [vmem:[#allocation5 + $0x560] ss:$16 sps:$4 sm:$0xff]   ;;  %v4440_v9 = vld [vmem:[#allocation5 + $0x2e8] ss:$16 sps:$4 sm:$0xff]   ;;  %v4445_v10 = vld [vmem:[#allocation5 + $0xcc] ss:$16 sps:$4 sm:$0xff]  }
  0x8c   :  { %1680 = vmatprep.mubr.bf16.mxu0 %v5005_v39  ;;  %1860 = vmatprep.subr.bf16.mxu0 %v4382_v40  ;;  %v4401_v40 = vld [vmem:[#allocation5 + $0x5e0] ss:$16 sps:$4 sm:$0xff]  }
  0x8d   :  { %1793 = vmatprep.mubr.bf16.mxu1 %v5007_v41  ;;  %1972 = vmatpush1.bf16.msra.mxu1 %v4386_v44  ;;  %v5043_v44 = vpack.c.bf16 %v174_v33, %v167_v32  ;;  %v199_v32 = vld [vmem:[#allocation2 + $0x348] sm:$0xff]  ;;  %v194_v33 = vld [vmem:[#allocation2 + $0x320] sm:$0xff] }
  0x8e   :  { %1973 = vmatprep.subr.bf16.mxu1 %v4397_v46  ;;  %v164_v46 = vld [vmem:[#allocation2 + $0x230] sm:$0xff] }
  0x8f   :  { %1861 = vmatpush1.bf16.msra.mxu0 %v4380_v42  ;;  %v5041_v42 = vpack.c.bf16 %v172_v31, %v165_v29  ;;  %v5049_v0 = vpack.c.bf16 %v171_v47, %v164_v46  ;;  %v192_v31 = vld [vmem:[#allocation2 + $0x310] sm:$0xff] }
  0x90   :  { %1862 = vmatprep.subr.bf16.mxu0 %v4385_v49  ;;  %v173_v49 = vld [vmem:[#allocation2 + $0x278] sm:$0xff]  ;;  %v5073_v46 = vpack.c.bf16 %v199_v32, %v192_v31 }
  0x91   :  { %1974 = vmatpush1.bf16.msra.mxu1 %v4395_v56  ;;  %v4442_v56 = vld [vmem:[#allocation5 + $0x2ec] ss:$16 sps:$4 sm:$0xff]   ;;  %v5051_v1 = vpack.c.bf16 %v173_v49, %v166_v48  ;;  %v4428_v48 = vld [vmem:[#allocation5 + $0x520] ss:$16 sps:$4 sm:$0xff]  }
  0x92   :  { %1681 = vmatmul.mubr.bf16.gmra.mxu0 %v5013_v57  ;;  %1975 = vmatprep.subr.bf16.mxu1 %v4406_v2  ;;  %v4410_v2 = vld [vmem:[#allocation5 + $0x5a0] ss:$16 sps:$4 sm:$0xff]   ;;  %v4451_v31 = vld [vmem:[#allocation5 + $0xac] ss:$16 sps:$4 sm:$0xff]  }
  0x93   :  { %1794 = vmatmul.mubr.bf16.gmra.mxu1 %v5015_v58  ;;  %1863 = vmatpush1.bf16.msra.mxu0 %v4383_v59  ;;  %v186_v59 = vld [vmem:[#allocation2 + $0x2e0] sm:$0xff]  ;;  %v4454_v32 = vld [vmem:[#allocation5 + $0x2ac] ss:$16 sps:$4 sm:$0xff]  }
  0x94   :  { %1690 = vmatprep.mubr.bf16.mxu0 %v5017_v60  ;;  %1864 = vmatprep.subr.bf16.mxu0 %v4391_v61  ;;  %v181_v61 = vld [vmem:[#allocation2 + $0x2b8] sm:$0xff]  ;;  %v5053_v3 = vpack.c.bf16 %v186_v59, %v179_v55  ;;  %v107_v59 = vld [vmem:[#allocation2 + $0x68] sm:$0xff] }
  0x95   :  { %1803 = vmatprep.mubr.bf16.mxu1 %v5019_v62  ;;  %1976 = vmatpush1.bf16.msra.mxu1 %v4404_v5  ;;  %v105_v55 = vld [vmem:[#allocation2 + $0x58] sm:$0xff] }
  0x96   :  { %1977 = vmatprep.subr.bf16.mxu1 %v4415_v8  ;;  %v185_v8 = vld [vmem:[#allocation2 + $0x2d8] sm:$0xff] }
  0x97   :  { %1865 = vmatpush1.bf16.msra.mxu0 %v4389_v63  ;;  %v188_v63 = vld [vmem:[#allocation2 + $0x2f0] sm:$0xff]  ;;  %v5061_v24 = vpack.c.bf16 %v185_v8, %v178_v7  ;;  %v4437_v8 = vld [vmem:[#allocation5 + $0xe8] ss:$16 sps:$4 sm:$0xff]  }
  0x98   :  { %1866 = vmatprep.subr.bf16.mxu0 %v4394_v6  ;;  %v5055_v5 = vpack.c.bf16 %v188_v63, %v181_v61  ;;  %v4416_v6 = vld [vmem:[#allocation5 + $0x580] ss:$16 sps:$4 sm:$0xff]   ;;  %v5677_v61 = vmov 0   ;;  %v4439_v63 = vld [vmem:[#allocation5 + $0xec] ss:$16 sps:$4 sm:$0xff]  }
  0x99   :  { %1978 = vmatpush1.bf16.msra.mxu1 %v4413_v27  ;;  %v120_v7 = vld [vmem:[#allocation2 + $0xd0] sm:$0xff] }
  0x9a   :  { %1691 = vmatmul.mubr.bf16.gmra.mxu0 %v5025_v12  ;;  %1979 = vmatprep.subr.bf16.mxu1 %v4424_v30  ;;  %v4425_v30 = vld [vmem:[#allocation5 + $0x540] ss:$16 sps:$4 sm:$0xff]  }
  0x9b   :  { %1804 = vmatmul.mubr.bf16.gmra.mxu1 %v5027_v13  ;;  %1867 = vmatpush1.bf16.msra.mxu0 %v4392_v16  ;;  %v193_v16 = vld [vmem:[#allocation2 + $0x318] sm:$0xff] }
  0x9c   :  { %1700 = vmatprep.mubr.bf16.mxu0 %v5029_v17  ;;  %1868 = vmatprep.subr.bf16.mxu0 %v4400_v18  ;;  %v200_v18 = vld [vmem:[#allocation2 + $0x350] sm:$0xff] }
  0x9d   :  { %1813 = vmatprep.mubr.bf16.mxu1 %v5031_v19  ;;  %1980 = vmatpush1.bf16.msra.mxu1 %v4422_v34  ;;  %v5065_v27 = vpack.c.bf16 %v200_v18, %v193_v16  ;;  %v201_v34 = vld [vmem:[#allocation2 + $0x358] sm:$0xff] }
  0x9e   :  { %1981 = vmatprep.subr.bf16.mxu1 %v4433_v50  ;;  %v5075_v47 = vpack.c.bf16 %v201_v34, %v194_v33  ;;  %v4436_v50 = vld [vmem:[#allocation5 + $0x504] ss:$16 sps:$4 sm:$0xff]   ;;  %v4443_v16 = vld [vmem:[#allocation5 + $0xc8] ss:$16 sps:$4 sm:$0xff]  }
  0x9f   :  { %1869 = vmatpush1.bf16.msra.mxu0 %v4398_v20  ;;  %v195_v20 = vld [vmem:[#allocation2 + $0x328] sm:$0xff] }
  0xa0   :  { %1870 = vmatprep.subr.bf16.mxu0 %v4403_v28  ;;  %v4427_v28 = vld [vmem:[#allocation5 + $0x544] ss:$16 sps:$4 sm:$0xff]   ;;  %v5067_v29 = vpack.c.bf16 %v202_v22, %v195_v20  ;;  %v4446_v18 = vld [vmem:[#allocation5 + $0x2c8] ss:$16 sps:$4 sm:$0xff]  }
  0xa1   :  { %1982 = vmatpush1.bf16.msra.mxu1 %v4431_v52  ;;  %v98_v52 = vld [vmem:[#allocation2 + $0x20] sm:$0xff]  ;;  %v112_v22 = vld [vmem:[#allocation2 + $0x90] sm:$0xff]  ;;  %v4449_v33 = vld [vmem:[#allocation5 + $0xa8] ss:$16 sps:$4 sm:$0xff]  }
  0xa2   :  { %1701 = vmatmul.mubr.bf16.gmra.mxu0 %v5037_v35  ;;  %2193 = vmatprep.subr.bf16.mxu1 %v4442_v56  ;;  %v100_v56 = vld [vmem:[#allocation2 + $0x30] sm:$0xff]  ;;  %v4452_v34 = vld [vmem:[#allocation5 + $0x2a8] ss:$16 sps:$4 sm:$0xff]  }
  0xa3   :  { %1814 = vmatmul.mubr.bf16.gmra.mxu1 %v5039_v38  ;;  %1871 = vmatpush2.bf16.msra.mxu0 %v4401_v40  ;;  %v4430_v40 = vld [vmem:[#allocation5 + $0x524] ss:$16 sps:$4 sm:$0xff]  }
  0xa4   :  { %1710 = vmatprep.mubr.bf16.mxu0 %v5041_v42  ;;  %1872 = vmatprep.subr.bf16.mxu0 %v4409_v43  ;;  %v99_v43 = vld [vmem:[#allocation2 + $0x28] sm:$0xff] }
  0xa5   :  { %1823 = vmatprep.mubr.bf16.mxu1 %v5043_v44 }
  0xa7   :  { %1873 = vmatpush2.bf16.msra.mxu0 %v4407_v45  ;;  %v106_v45 = vld [vmem:[#allocation2 + $0x60] sm:$0xff] }
  0xa8   :  { %1874 = vmatprep.subr.bf16.mxu0 %v4412_v51  ;;  %v5077_v49 = vpack.c.bf16 %v106_v45, %v99_v43  ;;  %v4434_v51 = vld [vmem:[#allocation5 + $0x500] ss:$16 sps:$4 sm:$0xff]   ;;  %v127_v45 = vld [vmem:[#allocation2 + $0x108] sm:$0xff] }
  0xaa   :  { %1711 = vmatmul.mubr.bf16.gmra.mxu0 %v5049_v0 }
  0xab   :  { %1824 = vmatmul.mubr.bf16.gmra.mxu1 %v5051_v1  ;;  %1875 = vmatpush2.bf16.msra.mxu0 %v4410_v2  ;;  %v113_v2 = vld [vmem:[#allocation2 + $0x98] sm:$0xff] }
  0xac   :  { %1720 = vmatprep.mubr.bf16.mxu0 %v5053_v3  ;;  %1876 = vmatprep.subr.bf16.mxu0 %v4418_v4  ;;  %v5083_v4 = vpack.c.bf16 %v105_v55, %v98_v52  ;;  %v5087_v20 = vpack.c.bf16 %v120_v7, %v113_v2  ;;  %v4455_v52 = vld [vmem:[#allocation5 + $0x88] ss:$16 sps:$4 sm:$0xff]   ;;  %v128_v2 = vld [vmem:[#allocation2 + $0x110] sm:$0xff] }
  0xad   :  { %1833 = vmatprep.mubr.bf16.mxu1 %v5055_v5  ;;  %v135_v7 = vld [vmem:[#allocation2 + $0x148] sm:$0xff] }
  0xaf   :  { %1877 = vmatpush2.bf16.msra.mxu0 %v4416_v6  ;;  %v5085_v6 = vpack.c.bf16 %v107_v59, %v100_v56  ;;  %v4458_v56 = vld [vmem:[#allocation5 + $0x288] ss:$16 sps:$4 sm:$0xff]   ;;  %v126_v59 = vld [vmem:[#allocation2 + $0x100] sm:$0xff] }
  0xb0   :  { %1878 = vmatprep.subr.bf16.mxu0 %v4421_v11  ;;  %v4448_v11 = vld [vmem:[#allocation5 + $0x2cc] ss:$16 sps:$4 sm:$0xff]  }
  0xb2   :  { %1721 = vmatmul.mubr.bf16.gmra.mxu0 %v5061_v24 }
  0xb3   :  { %1834 = vmatmul.mubr.bf16.gmra.mxu1 %v5063_v25  ;;  %1879 = vmatpush2.bf16.msra.mxu0 %v4419_v26  ;;  %v119_v26 = vld [vmem:[#allocation2 + $0xc8] sm:$0xff] }
  0xb4   :  { %1730 = vmatprep.mubr.bf16.mxu0 %v5065_v27  ;;  %1880 = vmatprep.subr.bf16.mxu0 %v4427_v28  ;;  %v114_v28 = vld [vmem:[#allocation2 + $0xa0] sm:$0xff] }
  0xb5   :  { %1843 = vmatprep.mubr.bf16.mxu1 %v5067_v29 }
  0xb7   :  { %1881 = vmatpush2.bf16.msra.mxu0 %v4425_v30  ;;  %v121_v30 = vld [vmem:[#allocation2 + $0xd8] sm:$0xff] }
  0xb8   :  { %1882 = vmatprep.subr.bf16.mxu0 %v4430_v40  ;;  %v5093_v40 = vpack.c.bf16 %v119_v26, %v112_v22  ;;  %v5095_v43 = vpack.c.bf16 %v121_v30, %v114_v28  ;;  %v4461_v22 = vld [vmem:[#allocation5 + $0x68] ss:$16 sps:$4 sm:$0xff]   ;;  %v4469_v28 = vld [vmem:[#allocation5 + $0x4c] ss:$16 sps:$4 sm:$0xff]  }
  0xb9   :  { %v4464_v26 = vld [vmem:[#allocation5 + $0x268] ss:$16 sps:$4 sm:$0xff]   ;;  %v4472_v30 = vld [vmem:[#allocation5 + $0x24c] ss:$16 sps:$4 sm:$0xff]  }
  0xba   :  { %1731 = vmatmul.mubr.bf16.gmra.mxu0 %v5073_v46 }
  0xbb   :  { %1844 = vmatmul.mubr.bf16.gmra.mxu1 %v5075_v47  ;;  %1883 = vmatpush2.bf16.msra.mxu0 %v4428_v48  ;;  %v134_v48 = vld [vmem:[#allocation2 + $0x140] sm:$0xff] }
  0xbc   :  { %1886 = vmatprep.mubr.bf16.mxu0 %v5077_v49  ;;  %1884 = vmatprep.subr.bf16.mxu0 %v4436_v50  ;;  %v4457_v50 = vld [vmem:[#allocation5 + $0x8c] ss:$16 sps:$4 sm:$0xff]   ;;  %v5097_v55 = vpack.c.bf16 %v134_v48, %v127_v45  ;;  %v142_v48 = vld [vmem:[#allocation2 + $0x180] sm:$0xff] }
  0xbd   :  { %1999 = vmatprep.mubr.bf16.mxu1 %v5677_v61  ;;  %v147_v45 = vld [vmem:[#allocation2 + $0x1a8] sm:$0xff] }
  0xbf   :  { %1885 = vmatpush2.bf16.msra.mxu0 %v4434_v51  ;;  %v4460_v51 = vld [vmem:[#allocation5 + $0x28c] ss:$16 sps:$4 sm:$0xff]  }
  0xc0   :  { %2080 = vmatprep.subr.bf16.mxu0 %v4439_v63  ;;  %v133_v63 = vld [vmem:[#allocation2 + $0x138] sm:$0xff] }
  0xc2   :  { %1887 = vmatmul.mubr.bf16.vlgmr.msra.gmra.mxu0 %v5083_v4 }
  0xc3   :  { %2000 = vmatmul.mubr.bf16.vlgmr.msra.gmra.mxu1 %v5085_v6  ;;  %2081 = vmatpush1.bf16.msra.mxu0 %v4437_v8  ;;  %v4463_v8 = vld [vmem:[#allocation5 + $0x6c] ss:$16 sps:$4 sm:$0xff]  }
  0xc4   :  { %2194 = vmatpush1.bf16.msra.mxu1 %v4440_v9  ;;  %2082 = vmatprep.subr.bf16.mxu0 %v4445_v10  ;;  %v4466_v9 = vld [vmem:[#allocation5 + $0x26c] ss:$16 sps:$4 sm:$0xff]  }
  0xc5   :  { %2195 = vmatprep.subr.bf16.mxu1 %v4448_v11  ;;  %1896 = vmatprep.mubr.bf16.mxu0 %v5087_v20  ;;  %v141_v10 = vld [vmem:[#allocation2 + $0x178] sm:$0xff]  ;;  %v5103_v11 = vpack.c.bf16 %v133_v63, %v126_v59 }
  0xc6   :  { %2009 = vmatprep.mubr.bf16.mxu1 %v5677_v61  ;;  %v4476_v59 = vld [vmem:[#allocation5 + $0x228] ss:$16 sps:$4 sm:$0xff]  }
  0xc7   :  { %2083 = vmatpush1.bf16.msra.mxu0 %v4443_v16  ;;  %v5105_v16 = vpack.c.bf16 %v135_v7, %v128_v2  ;;  %v155_v7 = vld [vmem:[#allocation2 + $0x1e8] sm:$0xff] }
  0xc8   :  { %2196 = vmatpush1.bf16.msra.mxu1 %v4446_v18  ;;  %2084 = vmatprep.subr.bf16.mxu0 %v4451_v31  ;;  %v148_v18 = vld [vmem:[#allocation2 + $0x1b0] sm:$0xff]  ;;  %v4467_v31 = vld [vmem:[#allocation5 + $0x48] ss:$16 sps:$4 sm:$0xff]  }
  0xc9   :  { %2197 = vmatprep.subr.bf16.mxu1 %v4454_v32  ;;  %v5107_v32 = vpack.c.bf16 %v148_v18, %v141_v10  ;;  %v4484_v10 = vld [vmem:[#allocation5 + $0x20c] ss:$16 sps:$4 sm:$0xff]   ;;  %v4479_v18 = vld [vmem:[#allocation5 + $0x8] ss:$16 sps:$4 sm:$0xff]  }
  0xca   :  { %1897 = vmatmul.mubr.bf16.gmra.mxu0 %v5093_v40 }
  0xcb   :  { %2010 = vmatmul.mubr.bf16.gmra.mxu1 %v5095_v43  ;;  %2085 = vmatpush1.bf16.msra.mxu0 %v4449_v33  ;;  %v4470_v33 = vld [vmem:[#allocation5 + $0x248] ss:$16 sps:$4 sm:$0xff]  }
  0xcc   :  { %2198 = vmatpush1.bf16.msra.mxu1 %v4452_v34  ;;  %2086 = vmatprep.subr.bf16.mxu0 %v4457_v50  ;;  %v140_v34 = vld [vmem:[#allocation2 + $0x170] sm:$0xff]  ;;  %v149_v50 = vld [vmem:[#allocation2 + $0x1b8] sm:$0xff] }
  0xcd   :  { %2199 = vmatprep.subr.bf16.mxu1 %v4460_v51  ;;  %1906 = vmatprep.mubr.bf16.mxu0 %v5097_v55  ;;  %v4475_v51 = vld [vmem:[#allocation5 + $0x2c] ss:$16 sps:$4 sm:$0xff]   ;;  %v5113_v63 = vpack.c.bf16 %v147_v45, %v140_v34  ;;  %v5115_v2 = vpack.c.bf16 %v149_v50, %v142_v48  ;;  %v156_v34 = vld [vmem:[#allocation2 + $0x1f0] sm:$0xff]  ;;  %v4485_v48 = vld [vmem:[#allocation5 + $0x1e8] ss:$16 sps:$4 sm:$0xff]  }
  0xce   :  { %2019 = vmatprep.mubr.bf16.mxu1 %v5677_v61  ;;  %v163_v45 = vld [vmem:[#allocation2 + $0x228] sm:$0xff] }
  0xcf   :  { %2087 = vmatpush1.bf16.msra.mxu0 %v4455_v52  ;;  %v4478_v52 = vld [vmem:[#allocation5 + $0x22c] ss:$16 sps:$4 sm:$0xff]   ;;  %5686 = vst [vmem:[#allocation16_spill] sm:$0xff] %v5113_v63  ;;  %5687 = vst [vmem:[#allocation17_spill] sm:$0xff] %v5115_v2  ;;  %v4488_v50 = vld [vmem:[#allocation5 + $0x3e8] ss:$16 sps:$4 sm:$0xff]  }
  0xd0   :  { %2200 = vmatpush1.bf16.msra.mxu1 %v4458_v56  ;;  %2088 = vmatprep.subr.bf16.mxu0 %v4463_v8  ;;  %v4473_v56 = vld [vmem:[#allocation5 + $0x28] ss:$16 sps:$4 sm:$0xff]   ;;  %v162_v8 = vld [vmem:[#allocation2 + $0x220] sm:$0xff] }
  0xd1   :  { %2201 = vmatprep.subr.bf16.mxu1 %v4466_v9  ;;  %v4481_v9 = vld [vmem:[#allocation5 + $0xc] ss:$16 sps:$4 sm:$0xff]  }
  0xd2   :  { %1907 = vmatmul.mubr.bf16.gmra.mxu0 %v5103_v11 }
  0xd3   :  { %2020 = vmatmul.mubr.bf16.gmra.mxu1 %v5105_v16  ;;  %2089 = vmatpush1.bf16.msra.mxu0 %v4461_v22  ;;  %v4482_v22 = vld [vmem:[#allocation5 + $0x208] ss:$16 sps:$4 sm:$0xff]  }
  0xd4   :  { %2202 = vmatpush1.bf16.msra.mxu1 %v4464_v26  ;;  %2090 = vmatprep.subr.bf16.mxu0 %v4469_v28  ;;  %v5117_v26 = vpack.c.bf16 %v162_v8, %v155_v7  ;;  %v154_v28 = vld [vmem:[#allocation2 + $0x1e0] sm:$0xff]  ;;  %v169_v7 = vld [vmem:[#allocation2 + $0x258] sm:$0xff]  ;;  %v176_v8 = vld [vmem:[#allocation2 + $0x290] sm:$0xff] }
  0xd5   :  { %2203 = vmatprep.subr.bf16.mxu1 %v4472_v30  ;;  %1916 = vmatprep.mubr.bf16.mxu0 %v5107_v32  ;;  %v161_v30 = vld [vmem:[#allocation2 + $0x218] sm:$0xff] }
  0xd6   :  { %2029 = vmatprep.mubr.bf16.mxu1 %v5677_v61  ;;  %5688 = vst [vmem:[#allocation18_spill] sm:$0xff] %v5117_v26 }
  0xd7   :  { %2091 = vmatpush1.bf16.msra.mxu0 %v4467_v31  ;;  %v4487_v31 = vld [vmem:[#allocation5 + $0x1ec] ss:$16 sps:$4 sm:$0xff]  }
  0xd8   :  { %2204 = vmatpush1.bf16.msra.mxu1 %v4470_v33  ;;  %2092 = vmatprep.subr.bf16.mxu0 %v4475_v51  ;;  %v4490_v33 = vld [vmem:[#allocation5 + $0x3ec] ss:$16 sps:$4 sm:$0xff]   ;;  %v5123_v51 = vpack.c.bf16 %v161_v30, %v154_v28  ;;  %v170_v28 = vld [vmem:[#allocation2 + $0x260] sm:$0xff] }
  0xd9   :  { %2205 = vmatprep.subr.bf16.mxu1 %v4478_v52  ;;  %v5125_v52 = vpack.c.bf16 %v163_v45, %v156_v34  ;;  %v177_v30 = vld [vmem:[#allocation2 + $0x298] sm:$0xff]  ;;  %v5692_v34 = vmov 0  }
  0xda   :  { %1917 = vmatmul.mubr.bf16.gmra.mxu0 %v5113_v63  ;;  %5689 = vst [vmem:[#allocation19_spill] sm:$0xff] %v5123_v51  ;;  %v4497_v45 = vld [vmem:[#allocation5 + $0x1a8] ss:$16 sps:$4 sm:$0xff]  }
  0xdb   :  { %2030 = vmatmul.mubr.bf16.gmra.mxu1 %v5115_v2  ;;  %2093 = vmatpush1.bf16.msra.mxu0 %v4473_v56  ;;  %5690 = vst [vmem:[#allocation20_spill] sm:$0xff] %v5125_v52  ;;  %v4493_v56 = vld [vmem:[#allocation5 + $0x1cc] ss:$16 sps:$4 sm:$0xff]   ;;  %v5127_v2 = vpack.c.bf16 %v176_v8, %v169_v7  ;;  %v5135_v7 = vpack.c.bf16 %v177_v30, %v170_v28  ;;  %v4512_v28 = vld [vmem:[#allocation5 + $0x368] ss:$16 sps:$4 sm:$0xff]  }
  0xdc   :  { %2206 = vmatpush1.bf16.msra.mxu1 %v4476_v59  ;;  %2094 = vmatprep.subr.bf16.mxu0 %v4481_v9  ;;  %v4496_v59 = vld [vmem:[#allocation5 + $0x3cc] ss:$16 sps:$4 sm:$0xff]   ;;  %v4491_v9 = vld [vmem:[#allocation5 + $0x1c8] ss:$16 sps:$4 sm:$0xff]  }
  0xdd   :  { %2207 = vmatprep.subr.bf16.mxu1 %v4484_v10  ;;  %1926 = vmatprep.mubr.bf16.mxu0 %v5117_v26  ;;  %v4494_v10 = vld [vmem:[#allocation5 + $0x3c8] ss:$16 sps:$4 sm:$0xff]   ;;  %5691 = vst [vmem:[#allocation21_spill] sm:$0xff] %v5127_v2  ;;  %v168_v26 = vld [vmem:[#allocation2 + $0x250] sm:$0xff]  ;;  %5694 = vst [vmem:[#allocation23_spill] sm:$0xff] %v5135_v7 }
  0xde   :  { %2039 = vmatprep.mubr.bf16.mxu1 %v5677_v61  ;;  %v175_v61 = vld [vmem:[#allocation2 + $0x288] sm:$0xff]  ;;  %v189_v63 = vld [vmem:[#allocation2 + $0x2f8] sm:$0xff] }
  0xdf   :  { %2095 = vmatpush1.bf16.msra.mxu0 %v4479_v18  ;;  %v4499_v18 = vld [vmem:[#allocation5 + $0x1ac] ss:$16 sps:$4 sm:$0xff]  }
  0xe0   :  { %2208 = vmatpush1.bf16.msra.mxu1 %v4482_v22  ;;  %2096 = vmatprep.subr.bf16.mxu0 %v4487_v31  ;;  %v4502_v22 = vld [vmem:[#allocation5 + $0x3ac] ss:$16 sps:$4 sm:$0xff]   ;;  %v4500_v31 = vld [vmem:[#allocation5 + $0x3a8] ss:$16 sps:$4 sm:$0xff]  }
  0xe1   :  { %2209 = vmatprep.subr.bf16.mxu1 %v4490_v33  ;;  %v5133_v33 = vpack.c.bf16 %v175_v61, %v168_v26  ;;  %v183_v8 = vld [vmem:[#allocation2 + $0x2c8] sm:$0xff]  ;;  %v184_v61 = vld [vmem:[#allocation2 + $0x2d0] sm:$0xff] }
  0xe2   :  { %1927 = vmatmul.mubr.bf16.gmra.mxu0 %v5123_v51  ;;  %v191_v26 = vld [vmem:[#allocation2 + $0x308] sm:$0xff] }
  0xe3   :  { %2040 = vmatmul.mubr.bf16.gmra.mxu1 %v5125_v52  ;;  %2097 = vmatpush2.bf16.msra.mxu0 %v4485_v48  ;;  %5693 = vst [vmem:[#allocation22_spill] sm:$0xff] %v5133_v33  ;;  %v190_v52 = vld [vmem:[#allocation2 + $0x300] sm:$0xff]  ;;  %v4505_v48 = vld [vmem:[#allocation5 + $0x18c] ss:$16 sps:$4 sm:$0xff]  }
  0xe4   :  { %2210 = vmatpush2.bf16.msra.mxu1 %v4488_v50  ;;  %2098 = vmatprep.subr.bf16.mxu0 %v4493_v56  ;;  %v4508_v50 = vld [vmem:[#allocation5 + $0x38c] ss:$16 sps:$4 sm:$0xff]   ;;  %v4503_v56 = vld [vmem:[#allocation5 + $0x188] ss:$16 sps:$4 sm:$0xff]   ;;  %v5137_v51 = vpack.c.bf16 %v190_v52, %v183_v8  ;;  %v204_v8 = vld [vmem:[#allocation2 + $0x370] sm:$0xff] }
  0xe5   :  { %2211 = vmatprep.subr.bf16.mxu1 %v4496_v59  ;;  %1936 = vmatprep.mubr.bf16.mxu0 %v5127_v2  ;;  %v4506_v59 = vld [vmem:[#allocation5 + $0x388] ss:$16 sps:$4 sm:$0xff]   ;;  %v182_v2 = vld [vmem:[#allocation2 + $0x2c0] sm:$0xff] }
  0xe6   :  { %2049 = vmatprep.mubr.bf16.mxu1 %v5692_v34  ;;  %5695 = vst [vmem:[#allocation24_spill] sm:$0xff] %v5137_v51  ;;  %v4509_v52 = vld [vmem:[#allocation5 + $0x168] ss:$16 sps:$4 sm:$0xff]   ;;  %v5143_v30 = vpack.c.bf16 %v189_v63, %v182_v2  ;;  %v198_v63 = vld [vmem:[#allocation2 + $0x340] sm:$0xff] }
  0xe7   :  { %2099 = vmatpush2.bf16.msra.mxu0 %v4491_v9  ;;  %v4511_v9 = vld [vmem:[#allocation5 + $0x16c] ss:$16 sps:$4 sm:$0xff]  }
  0xe8   :  { %2212 = vmatpush2.bf16.msra.mxu1 %v4494_v10  ;;  %2100 = vmatprep.subr.bf16.mxu0 %v4499_v18  ;;  %v4514_v10 = vld [vmem:[#allocation5 + $0x36c] ss:$16 sps:$4 sm:$0xff]   ;;  %v5145_v18 = vpack.c.bf16 %v191_v26, %v184_v61 }
  0xe9   :  { %2213 = vmatprep.subr.bf16.mxu1 %v4502_v22  ;;  %v197_v22 = vld [vmem:[#allocation2 + $0x338] sm:$0xff] }
  0xea   :  { %1937 = vmatmul.mubr.bf16.gmra.mxu0 %v5133_v33  ;;  %v203_v33 = vld [vmem:[#allocation2 + $0x368] sm:$0xff]  ;;  %v205_v2 = vld [vmem:[#allocation2 + $0x378] sm:$0xff] }
  0xeb   :  { %2050 = vmatmul.mubr.bf16.gmra.mxu1 %v5135_v7  ;;  %2101 = vmatpush2.bf16.msra.mxu0 %v4497_v45  ;;  %v4517_v45 = vld [vmem:[#allocation5 + $0x14c] ss:$16 sps:$4 sm:$0xff]   ;;  %v5147_v7 = vpack.c.bf16 %v204_v8, %v197_v22  ;;  %v5155_v26 = vpack.c.bf16 %v205_v2, %v198_v63  ;;  %v4530_v8 = vld [vmem:[#allocation5 + $0x308] ss:$16 sps:$4 sm:$0xff]  }
  0xec   :  { %2214 = vmatpush2.bf16.msra.mxu1 %v4500_v31  ;;  %2102 = vmatprep.subr.bf16.mxu0 %v4505_v48  ;;  %v4520_v31 = vld [vmem:[#allocation5 + $0x34c] ss:$16 sps:$4 sm:$0xff]   ;;  %v4515_v48 = vld [vmem:[#allocation5 + $0x148] ss:$16 sps:$4 sm:$0xff]  }
  0xed   :  { %2215 = vmatprep.subr.bf16.mxu1 %v4508_v50  ;;  %1946 = vmatprep.mubr.bf16.mxu0 %v5137_v51  ;;  %v4518_v50 = vld [vmem:[#allocation5 + $0x348] ss:$16 sps:$4 sm:$0xff]   ;;  %v196_v51 = vld [vmem:[#allocation2 + $0x330] sm:$0xff]  ;;  %v4529_v22 = vld [vmem:[#allocation5 + $0x10c] ss:$16 sps:$4 sm:$0xff]  }
  0xee   :  { %2059 = vmatprep.mubr.bf16.mxu1 %v5692_v34  ;;  %v5153_v61 = vpack.c.bf16 %v203_v33, %v196_v51  ;;  %v4535_v51 = vld [vmem:[#allocation5 + $0x4ec] ss:$16 sps:$4 sm:$0xff]   ;;  %v4539_v63 = vld [vmem:[#allocation5 + $0x4c8] ss:$16 sps:$4 sm:$0xff]  }
  0xef   :  { %2103 = vmatpush2.bf16.msra.mxu0 %v4503_v56  ;;  %v4523_v56 = vld [vmem:[#allocation5 + $0x12c] ss:$16 sps:$4 sm:$0xff]   ;;  %v4545_v2 = vld [vmem:[#allocation5 + $0x6c8] ss:$16 sps:$4 sm:$0xff]  }
  0xf0   :  { %2216 = vmatpush2.bf16.msra.mxu1 %v4506_v59  ;;  %2104 = vmatprep.subr.bf16.mxu0 %v4511_v9  ;;  %v4526_v59 = vld [vmem:[#allocation5 + $0x32c] ss:$16 sps:$4 sm:$0xff]   ;;  %v4521_v9 = vld [vmem:[#allocation5 + $0x128] ss:$16 sps:$4 sm:$0xff]  }
  0xf1   :  { %2217 = vmatprep.subr.bf16.mxu1 %v4514_v10  ;;  %v4524_v10 = vld [vmem:[#allocation5 + $0x328] ss:$16 sps:$4 sm:$0xff]   ;;  %v4538_v33 = vld [vmem:[#allocation5 + $0x6ec] ss:$16 sps:$4 sm:$0xff]  }
  0xf2   :  { %1947 = vmatmul.mubr.bf16.gmra.mxu0 %v5143_v30 }
  0xf3   :  { %2060 = vmatmul.mubr.bf16.gmra.mxu1 %v5145_v18  ;;  %2105 = vmatpush2.bf16.msra.mxu0 %v4509_v52  ;;  %v4532_v52 = vld [vmem:[#allocation5 + $0x30c] ss:$16 sps:$4 sm:$0xff]  }
  0xf4   :  { %2218 = vmatpush2.bf16.msra.mxu1 %v4512_v28  ;;  %2106 = vmatprep.subr.bf16.mxu0 %v4517_v45  ;;  %v4527_v28 = vld [vmem:[#allocation5 + $0x108] ss:$16 sps:$4 sm:$0xff]  }
  0xf5   :  { %2219 = vmatprep.subr.bf16.mxu1 %v4520_v31  ;;  %1956 = vmatprep.mubr.bf16.mxu0 %v5147_v7  ;;  %v4533_v45 = vld [vmem:[#allocation5 + $0x4e8] ss:$16 sps:$4 sm:$0xff]  }
  0xf6   :  { %2069 = vmatprep.mubr.bf16.mxu1 %v5692_v34  ;;  %v4536_v31 = vld [vmem:[#allocation5 + $0x6e8] ss:$16 sps:$4 sm:$0xff]  }
  0xf7   :  { %2107 = vmatpush2.bf16.msra.mxu0 %v4515_v48  ;;  %v4541_v48 = vld [vmem:[#allocation5 + $0x4cc] ss:$16 sps:$4 sm:$0xff]  }
  0xf8   :  { %2220 = vmatpush2.bf16.msra.mxu1 %v4518_v50  ;;  %2108 = vmatprep.subr.bf16.mxu0 %v4523_v56  ;;  %v4547_v50 = vld [vmem:[#allocation5 + $0x6cc] ss:$16 sps:$4 sm:$0xff]   ;;  %v4542_v56 = vld [vmem:[#allocation5 + $0x4a8] ss:$16 sps:$4 sm:$0xff]  }
  0xf9   :  { %2221 = vmatprep.subr.bf16.mxu1 %v4526_v59  ;;  %v4550_v59 = vld [vmem:[#allocation5 + $0x48c] ss:$16 sps:$4 sm:$0xff]  }
  0xfa   :  { %1957 = vmatmul.mubr.bf16.gmra.mxu0 %v5153_v61 }
  0xfb   :  { %2070 = vmatmul.mubr.bf16.gmra.mxu1 %v5155_v26  ;;  %2109 = vmatpush2.bf16.msra.mxu0 %v4521_v9  ;;  %v4548_v9 = vld [vmem:[#allocation5 + $0x488] ss:$16 sps:$4 sm:$0xff]  }
  0xfc   :  { %2222 = vmatpush2.bf16.msra.mxu1 %v4524_v10  ;;  %2110 = vmatprep.subr.bf16.mxu0 %v4529_v22  ;;  %v4563_v10 = vld [vmem:[#allocation5 + $0x688] ss:$16 sps:$4 sm:$0xff]   ;;  %v4559_v22 = vld [vmem:[#allocation5 + $0x44c] ss:$16 sps:$4 sm:$0xff]  }
  0xfd   :  { %2223 = vmatprep.subr.bf16.mxu1 %v4532_v52  ;;  %2112 = vmatprep.mubr.bf16.mxu0 %v4983_v53  ;;  %v4544_v53 = vld [vmem:[#allocation5 + $0x4ac] ss:$16 sps:$4 sm:$0xff]  }
  0xfe   :  { %2225 = vmatprep.mubr.bf16.mxu1 %v4985_v54  ;;  %v4556_v54 = vld [vmem:[#allocation5 + $0x6ac] ss:$16 sps:$4 sm:$0xff]  }
  0xff   :  { %2111 = vmatpush2.bf16.msra.mxu0 %v4527_v28  ;;  %v4574_v52 = vld [vmem:[#allocation5 + $0x66c] ss:$16 sps:$4 sm:$0xff]   ;;  %v4557_v28 = vld [vmem:[#allocation5 + $0x448] ss:$16 sps:$4 sm:$0xff]  }
 0x100   :  { %2224 = vmatpush2.bf16.msra.mxu1 %v4530_v8  ;;  %2306 = vmatprep.subr.bf16.mxu0 %v4535_v51  ;;  %v4568_v8 = vld [vmem:[#allocation5 + $0x40c] ss:$16 sps:$4 sm:$0xff]   ;;  %v4581_v51 = vld [vmem:[#allocation5 + $0x648] ss:$16 sps:$4 sm:$0xff]  }
 0x101   :  { %2419 = vmatprep.subr.bf16.mxu1 %v4538_v33  ;;  %v4592_v33 = vld [vmem:[#allocation5 + $0x62c] ss:$16 sps:$4 sm:$0xff]  }
 0x102   :  { %2113 = vmatmul.mubr.bf16.vlgmr.msra.gmra.mxu0 %v4989_v14  ;;  %v4554_v14 = vld [vmem:[#allocation5 + $0x6a8] ss:$16 sps:$4 sm:$0xff]  }
 0x103   :  { %2226 = vmatmul.mubr.bf16.vlgmr.msra.gmra.mxu1 %v4991_v15  ;;  %2307 = vmatpush1.bf16.msra.mxu0 %v4533_v45  ;;  %v4565_v15 = vld [vmem:[#allocation5 + $0x68c] ss:$16 sps:$4 sm:$0xff]   ;;  %v4566_v45 = vld [vmem:[#allocation5 + $0x408] ss:$16 sps:$4 sm:$0xff]  }
 0x104   :  { %2420 = vmatpush1.bf16.msra.mxu1 %v4536_v31  ;;  %2308 = vmatprep.subr.bf16.mxu0 %v4541_v48  ;;  %v4601_v31 = vld [vmem:[#allocation5 + $0x60c] ss:$16 sps:$4 sm:$0xff]   ;;  %v4599_v48 = vld [vmem:[#allocation5 + $0x608] ss:$16 sps:$4 sm:$0xff]  }
 0x105   :  { %2122 = vmatprep.mubr.bf16.mxu0 %v4993_v21  ;;  %2235 = vmatprep.mubr.bf16.mxu1 %v4995_v23  ;;  %v4553_v21 = vld [vmem:[#allocation5 + $0x46c] ss:$16 sps:$4 sm:$0xff]   ;;  %v4551_v23 = vld [vmem:[#allocation5 + $0x468] ss:$16 sps:$4 sm:$0xff]  }
 0x106   :  { %2421 = vmatprep.subr.bf16.mxu1 %v4547_v50  ;;  %v4575_v50 = vld [vmem:[#allocation5 + $0x5c8] ss:$16 sps:$4 sm:$0xff]  }
 0x107   :  { %2309 = vmatpush1.bf16.msra.mxu0 %v4539_v63  ;;  %v4604_v63 = vld [vmem:[#allocation5 + $0x50c] ss:$16 sps:$4 sm:$0xff]  }
 0x108   :  { %2422 = vmatpush1.bf16.msra.mxu1 %v4545_v2  ;;  %2310 = vmatprep.subr.bf16.mxu0 %v4544_v53 }
 0x109   :  { %2423 = vmatprep.subr.bf16.mxu1 %v4556_v54 }
 0x10a   :  { %2123 = vmatmul.mubr.bf16.gmra.mxu0 %v5001_v36  ;;  %v4572_v36 = vld [vmem:[#allocation5 + $0x668] ss:$16 sps:$4 sm:$0xff]  }
 0x10b   :  { %2236 = vmatmul.mubr.bf16.gmra.mxu1 %v5003_v37  ;;  %2311 = vmatpush1.bf16.msra.mxu0 %v4542_v56  ;;  %v4583_v37 = vld [vmem:[#allocation5 + $0x64c] ss:$16 sps:$4 sm:$0xff]  }
 0x10c   :  { %2132 = vmatprep.mubr.bf16.mxu0 %v5005_v39  ;;  %2312 = vmatprep.subr.bf16.mxu0 %v4550_v59  ;;  %v4562_v39 = vld [vmem:[#allocation5 + $0x42c] ss:$16 sps:$4 sm:$0xff]  }
 0x10d   :  { %2245 = vmatprep.mubr.bf16.mxu1 %v5007_v41  ;;  %2424 = vmatpush1.bf16.msra.mxu1 %v4554_v14  ;;  %v4560_v41 = vld [vmem:[#allocation5 + $0x428] ss:$16 sps:$4 sm:$0xff]  }
 0x10e   :  { %2425 = vmatprep.subr.bf16.mxu1 %v4565_v15 }
 0x10f   :  { %2313 = vmatpush1.bf16.msra.mxu0 %v4548_v9  ;;  %v4608_v9 = vld [vmem:[#allocation8 + $0x60] ss:$8 sps:$4 sm:$0xff]  }
 0x110   :  { %2314 = vmatprep.subr.bf16.mxu0 %v4553_v21 }
 0x111   :  { %2426 = vmatpush1.bf16.msra.mxu1 %v4563_v10  ;;  %v4613_v10 = vld [vmem:[#allocation8 + $0x54] ss:$8 sps:$4 sm:$0xff]  }
 0x112   :  { %2133 = vmatmul.mubr.bf16.gmra.mxu0 %v5013_v57  ;;  %2427 = vmatprep.subr.bf16.mxu1 %v4574_v52  ;;  %v4571_v57 = vld [vmem:[#allocation5 + $0x5ec] ss:$16 sps:$4 sm:$0xff]  }
 0x113   :  { %2246 = vmatmul.mubr.bf16.gmra.mxu1 %v5015_v58  ;;  %2315 = vmatpush1.bf16.msra.mxu0 %v4551_v23  ;;  %v4590_v58 = vld [vmem:[#allocation5 + $0x628] ss:$16 sps:$4 sm:$0xff]  }
 0x114   :  { %2142 = vmatprep.mubr.bf16.mxu0 %v5017_v60  ;;  %2316 = vmatprep.subr.bf16.mxu0 %v4559_v22  ;;  %v4569_v60 = vld [vmem:[#allocation5 + $0x5e8] ss:$16 sps:$4 sm:$0xff]  }
 0x115   :  { %2255 = vmatprep.mubr.bf16.mxu1 %v5019_v62  ;;  %2428 = vmatpush1.bf16.msra.mxu1 %v4572_v36  ;;  %v4577_v62 = vld [vmem:[#allocation5 + $0x5cc] ss:$16 sps:$4 sm:$0xff]  }
 0x116   :  { %2429 = vmatprep.subr.bf16.mxu1 %v4583_v37 }
 0x117   :  { %2317 = vmatpush1.bf16.msra.mxu0 %v4557_v28  ;;  %v4611_v28 = vld [vmem:[#allocation8 + $0x50] ss:$8 sps:$4 sm:$0xff]  }
 0x118   :  { %2318 = vmatprep.subr.bf16.mxu0 %v4562_v39  ;;  %v4616_v39 = vld [vmem:[#allocation8 + $0x44] ss:$8 sps:$4 sm:$0xff]  }
 0x119   :  { %2430 = vmatpush1.bf16.msra.mxu1 %v4581_v51 }
 0x11a   :  { %2143 = vmatmul.mubr.bf16.gmra.mxu0 %v5025_v12  ;;  %2431 = vmatprep.subr.bf16.mxu1 %v4592_v33  ;;  %v4580_v12 = vld [vmem:[#allocation5 + $0x5ac] ss:$16 sps:$4 sm:$0xff]  }
 0x11b   :  { %2256 = vmatmul.mubr.bf16.gmra.mxu1 %v5027_v13  ;;  %2319 = vmatpush1.bf16.msra.mxu0 %v4560_v41  ;;  %v4578_v13 = vld [vmem:[#allocation5 + $0x5a8] ss:$16 sps:$4 sm:$0xff]  }
 0x11c   :  { %2152 = vmatprep.mubr.bf16.mxu0 %v5029_v17  ;;  %2320 = vmatprep.subr.bf16.mxu0 %v4568_v8  ;;  %v4586_v17 = vld [vmem:[#allocation5 + $0x58c] ss:$16 sps:$4 sm:$0xff]  }
 0x11d   :  { %2265 = vmatprep.mubr.bf16.mxu1 %v5031_v19  ;;  %2432 = vmatpush1.bf16.msra.mxu1 %v4590_v58  ;;  %v4584_v19 = vld [vmem:[#allocation5 + $0x588] ss:$16 sps:$4 sm:$0xff]  }
 0x11e   :  { %2433 = vmatprep.subr.bf16.mxu1 %v4601_v31 }
 0x11f   :  { %2321 = vmatpush1.bf16.msra.mxu0 %v4566_v45 }
 0x120   :  { %2322 = vmatprep.subr.bf16.mxu0 %v4571_v57  ;;  %v4614_v57 = vld [vmem:[#allocation8 + $0x40] ss:$8 sps:$4 sm:$0xff]  }
 0x121   :  { %2434 = vmatpush1.bf16.msra.mxu1 %v4599_v48 }
 0x122   :  { %2153 = vmatmul.mubr.bf16.gmra.mxu0 %v5037_v35  ;;  %v4589_v35 = vld [vmem:[#allocation5 + $0x56c] ss:$16 sps:$4 sm:$0xff]  }
 0x123   :  { %2266 = vmatmul.mubr.bf16.gmra.mxu1 %v5039_v38  ;;  %2323 = vmatpush2.bf16.msra.mxu0 %v4569_v60  ;;  %v4587_v38 = vld [vmem:[#allocation5 + $0x568] ss:$16 sps:$4 sm:$0xff]  }
 0x124   :  { %2162 = vmatprep.mubr.bf16.mxu0 %v5041_v42  ;;  %2324 = vmatprep.subr.bf16.mxu0 %v4577_v62  ;;  %v4595_v42 = vld [vmem:[#allocation5 + $0x54c] ss:$16 sps:$4 sm:$0xff]   ;;  %v4619_v62 = vld [vmem:[#allocation8 + $0x34] ss:$8 sps:$4 sm:$0xff]  }
 0x125   :  { %2275 = vmatprep.mubr.bf16.mxu1 %v5043_v44  ;;  %v4593_v44 = vld [vmem:[#allocation5 + $0x548] ss:$16 sps:$4 sm:$0xff]  }
 0x127   :  { %2325 = vmatpush2.bf16.msra.mxu0 %v4575_v50 }
 0x128   :  { %2326 = vmatprep.subr.bf16.mxu0 %v4580_v12  ;;  %v4617_v12 = vld [vmem:[#allocation8 + $0x30] ss:$8 sps:$4 sm:$0xff]  }
 0x12a   :  { %2163 = vmatmul.mubr.bf16.gmra.mxu0 %v5049_v0  ;;  %v488_v0 = vlaneseq }
 0x12b   :  { %2276 = vmatmul.mubr.bf16.gmra.mxu1 %v5051_v1  ;;  %2327 = vmatpush2.bf16.msra.mxu0 %v4578_v13  ;;  %v4598_v1 = vld [vmem:[#allocation5 + $0x52c] ss:$16 sps:$4 sm:$0xff]  }
 0x12c   :  { %2172 = vmatprep.mubr.bf16.mxu0 %v5053_v3  ;;  %2328 = vmatprep.subr.bf16.mxu0 %v4586_v17  ;;  %v4596_v3 = vld [vmem:[#allocation5 + $0x528] ss:$16 sps:$4 sm:$0xff]  }
 0x12d   :  { %2285 = vmatprep.mubr.bf16.mxu1 %v5055_v5  ;;  %v5189_v5 = vshrl.u32 %v488_v0, 7  ;;  %v4622_v17 = vld [vmem:[#allocation8 + $0x24] ss:$8 sps:$4 sm:$0xff]  }
 0x12f   :  { %2329 = vmatpush2.bf16.msra.mxu0 %v4584_v19  ;;  %v494_v2 = vsub.s32 1, %v5189_v5 }
 0x130   :  { %2330 = vmatprep.subr.bf16.mxu0 %v4589_v35 }
 0x132   :  { %2173 = vmatmul.mubr.bf16.gmra.mxu0 %v5061_v24  ;;  %v4602_v24 = vld [vmem:[#allocation5 + $0x508] ss:$16 sps:$4 sm:$0xff]  }
 0x133   :  { %2286 = vmatmul.mubr.bf16.gmra.mxu1 %v5063_v25  ;;  %2331 = vmatpush2.bf16.msra.mxu0 %v4587_v38  ;;  %v490_v25 = vsub.s32 0, %v5189_v5 }
 0x134   :  { %2182 = vmatprep.mubr.bf16.mxu0 %v5065_v27  ;;  %2332 = vmatprep.subr.bf16.mxu0 %v4595_v42  ;;  %v486_v27 = vld [vmem:[#allocation7] sm:$0xf] }
 0x135   :  { %2295 = vmatprep.mubr.bf16.mxu1 %v5067_v29  ;;  %v4607_v29 = vld [vmem:[#allocation8 + $0x74] ss:$8 sps:$4 sm:$0xff]   ;;  %v5199_v53 = vrot.slane %v486_v27, %v490_v25 }
 0x136   :  { %v4655_v42 = vld [vmem:[#allocation8 + $0x174] ss:$8 sps:$4 sm:$0xff]  }
 0x137   :  { %2333 = vmatpush2.bf16.msra.mxu0 %v4593_v44  ;;  %3265 = vmatprep.subr.bf16.mxu1 %v4655_v42  ;;  %v4634_v42 = vld [vmem:[#allocation8 + $0xe4] ss:$8 sps:$4 sm:$0xff]  }
 0x138   :  { %2334 = vmatprep.subr.bf16.mxu0 %v4598_v1  ;;  %v4620_v1 = vld [vmem:[#allocation8 + $0x20] ss:$8 sps:$4 sm:$0xff]  }
 0x13a   :  { %2183 = vmatmul.mubr.bf16.gmra.mxu0 %v5073_v46  ;;  %v4605_v46 = vld [vmem:[#allocation8 + $0x70] ss:$8 sps:$4 sm:$0xff]  }
 0x13b   :  { %2296 = vmatmul.mubr.bf16.gmra.mxu1 %v5075_v47  ;;  %2335 = vmatpush2.bf16.msra.mxu0 %v4596_v3  ;;  %v5203_v47 = vrot.slane %v486_v27, %v494_v2  ;;  %v4653_v3 = vld [vmem:[#allocation8 + $0x170] ss:$8 sps:$4 sm:$0xff]  }
 0x13c   :  { %2338 = vmatprep.mubr.bf16.mxu0 %v5077_v49  ;;  %2336 = vmatprep.subr.bf16.mxu0 %v4604_v63  ;;  %v4610_v49 = vld [vmem:[#allocation8 + $0x64] ss:$8 sps:$4 sm:$0xff]  }
 0x13d   :  { %2451 = vmatprep.mubr.bf16.mxu1 %v5692_v34 }
 0x13f   :  { %2337 = vmatpush2.bf16.msra.mxu0 %v4602_v24 }
 0x140   :  { %3152 = vmatprep.subr.bf16.mxu0 %v4607_v29 }
 0x142   :  { %v1662_v54 = vpop.f32.mrf.mxu0  ;;  %2339 = vmatmul.mubr.bf16.vlgmr.msra.gmra.mxu0 %v5083_v4 }
 0x143   :  { %v1775_v56 = vpop.f32.mrf.mxu1  ;;  %2452 = vmatmul.mubr.bf16.vlgmr.msra.gmra.mxu1 %v5085_v6  ;;  %v1663_v59 = vadd.f32 %v1662_v54, %v5199_v53  ;;  %2348 = vmatprep.mubr.bf16.mxu0 %v5087_v20 }
 0x144   :  { %2461 = vmatprep.mubr.bf16.mxu1 %v5692_v34  ;;  %v1664_v14 = vpop.f32.mrf.mxu0  ;;  %3153 = vmatpush1.bf16.msra.mxu0 %v4605_v46  ;;  %v4658_v46 = vld [vmem:[#allocation8 + $0x164] ss:$8 sps:$4 sm:$0xff]  }
 0x145   :  { %v1777_v15 = vpop.f32.mrf.mxu1  ;;  %v5210_v21 = vadd.f32 %v1775_v56, %v1663_v59  ;;  %v1665_v23 = vadd.f32 %v1664_v14, %v5203_v47  ;;  %3154 = vmatprep.subr.bf16.mxu0 %v4610_v49  ;;  %3266 = vmatpush1.bf16.msra.mxu1 %v4653_v3  ;;  %v4623_v56 = vld [vmem:[#allocation8 + $0x10] ss:$8 sps:$4 sm:$0xff]   ;;  %v4656_v59 = vld [vmem:[#allocation8 + $0x160] ss:$8 sps:$4 sm:$0xff]  }
 0x146   :  { %v1666_v22 = vpop.f32.mrf.mxu0  ;;  %3267 = vmatprep.subr.bf16.mxu1 %v4658_v46  ;;  %v5700_v3 = vld [vmem:[#allocation20_spill] sm:$0xff] }
 0x147   :  { %v1779_v4 = vpop.f32.mrf.mxu1  ;;  %v5213_v52 = vadd.f32 %v1777_v15, %v1665_v23  ;;  %v1667_v6 = vadd.f32 %v1666_v22, %v5199_v53  ;;  %v4628_v15 = vld [vmem:[#allocation8 + $0x4] ss:$8 sps:$4 sm:$0xff]   ;;  %v4632_v46 = vld [vmem:[#allocation8 + $0xe0] ss:$8 sps:$4 sm:$0xff]  }
 0x148   :  { %v5216_v36 = vpop.f32.mrf.mxu0  ;;  %3155 = vmatpush1.bf16.msra.mxu0 %v4608_v9  ;;  %v5697_v22 = vld [vmem:[#allocation17_spill] sm:$0xff] }
 0x149   :  { %v5218_v20 = vpop.f32.mrf.mxu1  ;;  %v5220_v37 = vadd.f32 %v1779_v4, %v1667_v6  ;;  %3156 = vmatprep.subr.bf16.mxu0 %v4613_v10  ;;  %v5696_v10 = vld [vmem:[#allocation16_spill] sm:$0xff]  ;;  %v5698_v6 = vld [vmem:[#allocation18_spill] sm:$0xff]  ;;  %3268 = vmatpush1.bf16.msra.mxu1 %v4656_v59 }
 0x14a   :  { %v1672_v41 = vpop.f32.mrf.mxu0  ;;  %2349 = vmatmul.mubr.bf16.gmra.mxu0 %v5093_v40 }
 0x14b   :  { %v1785_v8 = vpop.f32.mrf.mxu1  ;;  %2462 = vmatmul.mubr.bf16.gmra.mxu1 %v5095_v43  ;;  %v1673_v51 = vadd.f32 %v1672_v41, %v5199_v53  ;;  %2358 = vmatprep.mubr.bf16.mxu0 %v5097_v55 }
 0x14c   :  { %2471 = vmatprep.mubr.bf16.mxu1 %v5692_v34  ;;  %v1674_v33 = vpop.f32.mrf.mxu0  ;;  %3157 = vmatpush1.bf16.msra.mxu0 %v4611_v28  ;;  %v4661_v28 = vld [vmem:[#allocation8 + $0x154] ss:$8 sps:$4 sm:$0xff]  }
 0x14d   :  { %v1787_v45 = vpop.f32.mrf.mxu1  ;;  %v5227_v58 = vadd.f32 %v1785_v8, %v1673_v51  ;;  %v1675_v60 = vadd.f32 %v1674_v33, %v5203_v47  ;;  %3158 = vmatprep.subr.bf16.mxu0 %v4616_v39  ;;  %v4626_v8 = vld [vmem:[#allocation8] ss:$8 sps:$4 sm:$0xff]   ;;  %v4659_v51 = vld [vmem:[#allocation8 + $0x150] ss:$8 sps:$4 sm:$0xff]   ;;  %3269 = vmatprep.subr.bf16.mxu1 %v4661_v28 }
 0x14e   :  { %v1676_v31 = vpop.f32.mrf.mxu0  ;;  %3270 = vmatpush1.bf16.msra.mxu1 %v4659_v51 }
 0x14f   :  { %v1789_v40 = vpop.f32.mrf.mxu1  ;;  %v5230_v48 = vadd.f32 %v1787_v45, %v1675_v60  ;;  %v1677_v43 = vadd.f32 %v1676_v31, %v5199_v53 }
 0x150   :  { %v5233_v50 = vpop.f32.mrf.mxu0  ;;  %3159 = vmatpush1.bf16.msra.mxu0 %v4614_v57  ;;  %v4631_v57 = vld [vmem:[#allocation8 + $0xf4] ss:$8 sps:$4 sm:$0xff]  }
 0x151   :  { %v5235_v55 = vpop.f32.mrf.mxu1  ;;  %v5237_v13 = vadd.f32 %v1789_v40, %v1677_v43  ;;  %3160 = vmatprep.subr.bf16.mxu0 %v4619_v62  ;;  %v4664_v43 = vld [vmem:[#allocation8 + $0x144] ss:$8 sps:$4 sm:$0xff]  }
 0x152   :  { %v1682_v19 = vpop.f32.mrf.mxu0  ;;  %2359 = vmatmul.mubr.bf16.gmra.mxu0 %v5103_v11  ;;  %v4625_v11 = vld [vmem:[#allocation8 + $0x14] ss:$8 sps:$4 sm:$0xff]   ;;  %3271 = vmatprep.subr.bf16.mxu1 %v4664_v43 }
 0x153   :  { %v1795_v35 = vpop.f32.mrf.mxu1  ;;  %2472 = vmatmul.mubr.bf16.gmra.mxu1 %v5105_v16  ;;  %v1683_v38 = vadd.f32 %v1682_v19, %v5199_v53  ;;  %2368 = vmatprep.mubr.bf16.mxu0 %v5107_v32  ;;  %v4629_v19 = vld [vmem:[#allocation8 + $0xf0] ss:$8 sps:$4 sm:$0xff]  }
 0x154   :  { %2481 = vmatprep.mubr.bf16.mxu1 %v5692_v34  ;;  %v1684_v44 = vpop.f32.mrf.mxu0  ;;  %3161 = vmatpush1.bf16.msra.mxu0 %v4617_v12 }
 0x155   :  { %v1797_v0 = vpop.f32.mrf.mxu1  ;;  %v5244_v63 = vadd.f32 %v1795_v35, %v1683_v38  ;;  %v1685_v24 = vadd.f32 %v1684_v44, %v5203_v47  ;;  %3162 = vmatprep.subr.bf16.mxu0 %v4622_v17  ;;  %v4662_v35 = vld [vmem:[#allocation8 + $0x140] ss:$8 sps:$4 sm:$0xff]  }
 0x156   :  { %v1686_v16 = vpop.f32.mrf.mxu0  ;;  %3272 = vmatpush1.bf16.msra.mxu1 %v4662_v35  ;;  %v4673_v35 = vld [vmem:[#allocation8 + $0x114] ss:$8 sps:$4 sm:$0xff]  }
 0x157   :  { %v1799_v27 = vpop.f32.mrf.mxu1  ;;  %v5247_v29 = vadd.f32 %v1797_v0, %v1685_v24  ;;  %v1687_v32 = vadd.f32 %v1686_v16, %v5199_v53  ;;  %v4667_v16 = vld [vmem:[#allocation8 + $0x134] ss:$8 sps:$4 sm:$0xff]  }
 0x158   :  { %v5250_v49 = vpop.f32.mrf.mxu0  ;;  %3163 = vmatpush1.bf16.msra.mxu0 %v4620_v1  ;;  %v5699_v1 = vld [vmem:[#allocation19_spill] sm:$0xff]  ;;  %3273 = vmatprep.subr.bf16.mxu1 %v4667_v16 }
 0x159   :  { %v5252_v54 = vpop.f32.mrf.mxu1  ;;  %v5254_v14 = vadd.f32 %v1799_v27, %v1687_v32  ;;  %3164 = vmatprep.subr.bf16.mxu0 %v4625_v11  ;;  %v5701_v11 = vld [vmem:[#allocation21_spill] sm:$0xff] }
 0x15a   :  { %v1692_v9 = vpop.f32.mrf.mxu0  ;;  %2369 = vmatmul.mubr.bf16.gmra.mxu0 %v5696_v10 }
 0x15b   :  { %v1805_v23 = vpop.f32.mrf.mxu1  ;;  %2482 = vmatmul.mubr.bf16.gmra.mxu1 %v5697_v22  ;;  %v1693_v4 = vadd.f32 %v1692_v9, %v5199_v53  ;;  %2378 = vmatprep.mubr.bf16.mxu0 %v5698_v6  ;;  %v4637_v9 = vld [vmem:[#allocation8 + $0xd4] ss:$8 sps:$4 sm:$0xff]   ;;  %v4670_v6 = vld [vmem:[#allocation8 + $0x124] ss:$8 sps:$4 sm:$0xff]  }
 0x15c   :  { %2491 = vmatprep.mubr.bf16.mxu1 %v5692_v34  ;;  %v1694_v39 = vpop.f32.mrf.mxu0  ;;  %3165 = vmatpush1.bf16.msra.mxu0 %v4623_v56  ;;  %v4665_v56 = vld [vmem:[#allocation8 + $0x130] ss:$8 sps:$4 sm:$0xff]  }
 0x15d   :  { %v1807_v41 = vpop.f32.mrf.mxu1  ;;  %v5261_v33 = vadd.f32 %v1805_v23, %v1693_v4  ;;  %v1695_v45 = vadd.f32 %v1694_v39, %v5203_v47  ;;  %3166 = vmatprep.subr.bf16.mxu0 %v4628_v15  ;;  %3274 = vmatpush1.bf16.msra.mxu1 %v4665_v56  ;;  %v4676_v56 = vld [vmem:[#allocation8 + $0x104] ss:$8 sps:$4 sm:$0xff]  }
 0x15e   :  { %v1696_v60 = vpop.f32.mrf.mxu0  ;;  %3275 = vmatprep.subr.bf16.mxu1 %v4670_v6  ;;  %v4646_v6 = vld [vmem:[#allocation8 + $0xa4] ss:$8 sps:$4 sm:$0xff]  }
 0x15f   :  { %v1809_v62 = vpop.f32.mrf.mxu1  ;;  %v5264_v31 = vadd.f32 %v1807_v41, %v1695_v45  ;;  %v1697_v40 = vadd.f32 %v1696_v60, %v5199_v53  ;;  %v4635_v41 = vld [vmem:[#allocation8 + $0xd0] ss:$8 sps:$4 sm:$0xff]   ;;  %v4640_v45 = vld [vmem:[#allocation8 + $0xc4] ss:$8 sps:$4 sm:$0xff]  }
 0x160   :  { %v5267_v12 = vpop.f32.mrf.mxu0  ;;  %3167 = vmatpush1.bf16.msra.mxu0 %v4626_v8  ;;  %v4668_v8 = vld [vmem:[#allocation8 + $0x120] ss:$8 sps:$4 sm:$0xff]  }
 0x161   :  { %v5269_v17 = vpop.f32.mrf.mxu1  ;;  %v5271_v38 = vadd.f32 %v1809_v62, %v1697_v40  ;;  %3168 = vmatprep.subr.bf16.mxu0 %v4631_v57  ;;  %v5702_v62 = vld [vmem:[#allocation22_spill] sm:$0xff]  ;;  %v5703_v40 = vld [vmem:[#allocation23_spill] sm:$0xff]  ;;  %3276 = vmatpush1.bf16.msra.mxu1 %v4668_v8 }
 0x162   :  { %v1702_v44 = vpop.f32.mrf.mxu0  ;;  %2379 = vmatmul.mubr.bf16.gmra.mxu0 %v5699_v1  ;;  %v4671_v1 = vld [vmem:[#allocation8 + $0x110] ss:$8 sps:$4 sm:$0xff]   ;;  %3277 = vmatprep.subr.bf16.mxu1 %v4673_v35 }
 0x163   :  { %v1815_v0 = vpop.f32.mrf.mxu1  ;;  %2492 = vmatmul.mubr.bf16.gmra.mxu1 %v5700_v3  ;;  %v1703_v24 = vadd.f32 %v1702_v44, %v5199_v53  ;;  %2388 = vmatprep.mubr.bf16.mxu0 %v5701_v11  ;;  %v4643_v11 = vld [vmem:[#allocation8 + $0xb4] ss:$8 sps:$4 sm:$0xff]  }
 0x164   :  { %2501 = vmatprep.mubr.bf16.mxu1 %v5692_v34  ;;  %v1704_v27 = vpop.f32.mrf.mxu0  ;;  %3169 = vmatpush2.bf16.msra.mxu0 %v4629_v19  ;;  %v5704_v19 = vld [vmem:[#allocation24_spill] sm:$0xff] }
 0x165   :  { %v1817_v32 = vpop.f32.mrf.mxu1  ;;  %v5278_v59 = vadd.f32 %v1815_v0, %v1703_v24  ;;  %v1705_v15 = vadd.f32 %v1704_v27, %v5203_v47  ;;  %3170 = vmatprep.subr.bf16.mxu0 %v4634_v42  ;;  %v4638_v0 = vld [vmem:[#allocation8 + $0xc0] ss:$8 sps:$4 sm:$0xff]   ;;  %3278 = vmatpush1.bf16.msra.mxu1 %v4671_v1 }
 0x166   :  { %v1706_v23 = vpop.f32.mrf.mxu0  ;;  %3279 = vmatprep.subr.bf16.mxu1 %v4676_v56 }
 0x167   :  { %v1819_v10 = vpop.f32.mrf.mxu1  ;;  %v5281_v22 = vadd.f32 %v1817_v32, %v1705_v15  ;;  %v1707_v4 = vadd.f32 %v1706_v23, %v5199_v53  ;;  %v4641_v23 = vld [vmem:[#allocation8 + $0xb0] ss:$8 sps:$4 sm:$0xff]  }
 0x168   :  { %v5284_v28 = vpop.f32.mrf.mxu0  ;;  %3171 = vmatpush2.bf16.msra.mxu0 %v4632_v46 }
 0x169   :  { %v5286_v39 = vpop.f32.mrf.mxu1  ;;  %v5288_v51 = vadd.f32 %v1819_v10, %v1707_v4  ;;  %3172 = vmatprep.subr.bf16.mxu0 %v4637_v9  ;;  %v4674_v10 = vld [vmem:[#allocation8 + $0x100] ss:$8 sps:$4 sm:$0xff]  }
 0x16a   :  { %v1712_v57 = vpop.f32.mrf.mxu0  ;;  %2389 = vmatmul.mubr.bf16.gmra.mxu0 %v5702_v62  ;;  %3280 = vmatpush1.bf16.msra.mxu1 %v4674_v10  ;;  %v4685_v10 = vld [vmem:[#allocation8 + $0x1d4] ss:$8 sps:$4 sm:$0xff]  }
 0x16b   :  { %v1825_v60 = vpop.f32.mrf.mxu1  ;;  %2502 = vmatmul.mubr.bf16.gmra.mxu1 %v5703_v40  ;;  %v1713_v43 = vadd.f32 %v1712_v57, %v5199_v53  ;;  %2398 = vmatprep.mubr.bf16.mxu0 %v5704_v19  ;;  %v4679_v57 = vld [vmem:[#allocation8 + $0x1f4] ss:$8 sps:$4 sm:$0xff]   ;;  %v4644_v40 = vld [vmem:[#allocation8 + $0xa0] ss:$8 sps:$4 sm:$0xff]  }
 0x16c   :  { %2511 = vmatprep.mubr.bf16.mxu1 %v5692_v34  ;;  %v1714_v42 = vpop.f32.mrf.mxu0  ;;  %3173 = vmatpush2.bf16.msra.mxu0 %v4635_v41 }
 0x16d   :  { %v1827_v44 = vpop.f32.mrf.mxu1  ;;  %v5295_v3 = vadd.f32 %v1825_v60, %v1713_v43  ;;  %v1715_v24 = vadd.f32 %v1714_v42, %v5203_v47  ;;  %3174 = vmatprep.subr.bf16.mxu0 %v4640_v45  ;;  %v4677_v43 = vld [vmem:[#allocation8 + $0x1f0] ss:$8 sps:$4 sm:$0xff]   ;;  %3281 = vmatprep.subr.bf16.mxu1 %v4679_v57 }
 0x16e   :  { %v1716_v16 = vpop.f32.mrf.mxu0  ;;  %3282 = vmatpush2.bf16.msra.mxu1 %v4677_v43  ;;  %v4688_v43 = vld [vmem:[#allocation8 + $0x1c4] ss:$8 sps:$4 sm:$0xff]  }
 0x16f   :  { %v1829_v27 = vpop.f32.mrf.mxu1  ;;  %v5298_v32 = vadd.f32 %v1827_v44, %v1715_v24  ;;  %v1717_v46 = vadd.f32 %v1716_v16, %v5199_v53  ;;  %v4647_v24 = vld [vmem:[#allocation8 + $0x90] ss:$8 sps:$4 sm:$0xff]  }
 0x170   :  { %v5301_v15 = vpop.f32.mrf.mxu0  ;;  %3175 = vmatpush2.bf16.msra.mxu0 %v4638_v0 }
 0x171   :  { %v5303_v9 = vpop.f32.mrf.mxu1  ;;  %v5305_v4 = vadd.f32 %v1829_v27, %v1717_v46  ;;  %3176 = vmatprep.subr.bf16.mxu0 %v4643_v11  ;;  %v4680_v11 = vld [vmem:[#allocation8 + $0x1e0] ss:$8 sps:$4 sm:$0xff]   ;;  %v4652_v27 = vld [vmem:[#allocation8 + $0x84] ss:$8 sps:$4 sm:$0xff]  }
 0x172   :  { %v1722_v41 = vpop.f32.mrf.mxu0  ;;  %2399 = vmatmul.mubr.bf16.gmra.mxu0 %v5143_v30  ;;  %v4649_v30 = vld [vmem:[#allocation8 + $0x94] ss:$8 sps:$4 sm:$0xff]  }
 0x173   :  { %v1835_v8 = vpop.f32.mrf.mxu1  ;;  %2512 = vmatmul.mubr.bf16.gmra.mxu1 %v5145_v18  ;;  %v1723_v45 = vadd.f32 %v1722_v41, %v5199_v53  ;;  %2408 = vmatprep.mubr.bf16.mxu0 %v5147_v7  ;;  %v4682_v7 = vld [vmem:[#allocation8 + $0x1e4] ss:$8 sps:$4 sm:$0xff]  }
 0x174   :  { %2521 = vmatprep.mubr.bf16.mxu1 %v5692_v34  ;;  %v1724_v60 = vpop.f32.mrf.mxu0  ;;  %3177 = vmatpush2.bf16.msra.mxu0 %v4641_v23 }
 0x175   :  { %v1837_v62 = vpop.f32.mrf.mxu1  ;;  %v5312_v19 = vadd.f32 %v1835_v8, %v1723_v45  ;;  %v1725_v35 = vadd.f32 %v1724_v60, %v5203_v47  ;;  %3178 = vmatprep.subr.bf16.mxu0 %v4646_v6  ;;  %3283 = vmatprep.subr.bf16.mxu1 %v4682_v7  ;;  %v4650_v8 = vld [vmem:[#allocation8 + $0x80] ss:$8 sps:$4 sm:$0xff]   ;;  %v4683_v45 = vld [vmem:[#allocation8 + $0x1d0] ss:$8 sps:$4 sm:$0xff]  }
 0x176   :  { %v1726_v18 = vpop.f32.mrf.mxu0  ;;  %3284 = vmatpush2.bf16.msra.mxu1 %v4680_v11  ;;  %v4691_v11 = vld [vmem:[#allocation8 + $0x1b4] ss:$8 sps:$4 sm:$0xff]  }
 0x177   :  { %v1839_v42 = vpop.f32.mrf.mxu1  ;;  %v5315_v44 = vadd.f32 %v1837_v62, %v1725_v35  ;;  %v1727_v34 = vadd.f32 %v1726_v18, %v5199_v53  ;;  %3285 = vmatprep.subr.bf16.mxu1 %v4685_v10  ;;  %v4686_v18 = vld [vmem:[#allocation8 + $0x1c0] ss:$8 sps:$4 sm:$0xff]  }
 0x178   :  { %v5318_v0 = vpop.f32.mrf.mxu0  ;;  %3179 = vmatpush2.bf16.msra.mxu0 %v4644_v40 }
 0x179   :  { %v5320_v1 = vpop.f32.mrf.mxu1  ;;  %v5322_v16 = vadd.f32 %v1839_v42, %v1727_v34  ;;  %3180 = vmatprep.subr.bf16.mxu0 %v4649_v30 }
 0x17a   :  { %v1732_v46 = vpop.f32.mrf.mxu0  ;;  %2409 = vmatmul.mubr.bf16.gmra.mxu0 %v5153_v61  ;;  %3286 = vmatpush2.bf16.msra.mxu1 %v4683_v45  ;;  %v4694_v45 = vld [vmem:[#allocation8 + $0x1a4] ss:$8 sps:$4 sm:$0xff]  }
 0x17b   :  { %v1845_v56 = vpop.f32.mrf.mxu1  ;;  %2522 = vmatmul.mubr.bf16.gmra.mxu1 %v5155_v26  ;;  %v1733_v23 = vadd.f32 %v1732_v46, %v5199_v53  ;;  %3287 = vmatprep.subr.bf16.mxu1 %v4688_v43 }
 0x17c   :  { %v1734_v6 = vpop.f32.mrf.mxu0  ;;  %3181 = vmatpush2.bf16.msra.mxu0 %v4647_v24 }
 0x17d   :  { %v1847_v41 = vpop.f32.mrf.mxu1  ;;  %v5327_v57 = vadd.f32 %v1845_v56, %v1733_v23  ;;  %v1735_v60 = vadd.f32 %v1734_v6, %v5203_v47  ;;  %3182 = vmatprep.subr.bf16.mxu0 %v4652_v27  ;;  %v1669_v27 = vadd.f32 %v5216_v36, %v5203_v47  ;;  %v4689_v56 = vld [vmem:[#allocation8 + $0x1b0] ss:$8 sps:$4 sm:$0xff]   ;;  %v4692_v36 = vld [vmem:[#allocation8 + $0x1a0] ss:$8 sps:$4 sm:$0xff]  }
 0x17e   :  { %v1736_v62 = vpop.f32.mrf.mxu0  ;;  %3288 = vmatpush2.bf16.msra.mxu1 %v4686_v18 }
 0x17f   :  { %v1849_v40 = vpop.f32.mrf.mxu1  ;;  %v5330_v61 = vadd.f32 %v1847_v41, %v1735_v60  ;;  %v1737_v26 = vadd.f32 %v1736_v62, %v5199_v53  ;;  %3289 = vmatprep.subr.bf16.mxu1 %v4691_v11  ;;  %v1782_v60 = vadd.f32 %v5218_v20, %v1669_v27  ;;  %v1679_v20 = vadd.f32 %v5233_v50, %v5203_v47 }
 0x180   :  { %v5333_v35 = vpop.f32.mrf.mxu0  ;;  %3183 = vmatpush2.bf16.msra.mxu0 %v4650_v8 }
 0x181   :  { %v5335_v30 = vpop.f32.mrf.mxu1  ;;  %v5337_v42 = vadd.f32 %v1849_v40, %v1737_v26 }
 0x182   :  { %v1888_v34 = vpop.f32.mrf.mxu0  ;;  %3290 = vmatpush2.bf16.msra.mxu1 %v4689_v56 }
 0x183   :  { %v2001_v7 = vpop.f32.mrf.mxu1  ;;  %v1889_v24 = vadd.f32 %v1888_v34, %v5210_v21  ;;  %3291 = vmatprep.subr.bf16.mxu1 %v4694_v45 }
 0x184   :  { %v1890_v53 = vpop.f32.mrf.mxu0 }
 0x185   :  { %v2003_v46 = vpop.f32.mrf.mxu1  ;;  %v2002_v23 = vadd.f32 %v2001_v7, %v1889_v24  ;;  %v1891_v10 = vadd.f32 %v1890_v53, %v5213_v52 }
 0x186   :  { %v1892_v6 = vpop.f32.mrf.mxu0  ;;  %3292 = vmatpush2.bf16.msra.mxu1 %v4692_v36 }
 0x187   :  { %v2005_v41 = vpop.f32.mrf.mxu1  ;;  %v1893_v8 = vadd.f32 %v1892_v6, %v5220_v37  ;;  %v2596_v21 = vmul.f32 0.2, %v2002_v23  ;;  %vm2532_vm0 = vcmp.gt.f32.partialorder %v2002_v23, 0.0  ;;  %v2004_v26 = vadd.f32 %v2003_v46, %v1891_v10  ;;  %v4697_v37 = vld [vmem:[#allocation8 + $0x194] ss:$8 sps:$4 sm:$0xff]  }
 0x188   :  { %v1894_v62 = vpop.f32.mrf.mxu0  ;;  %v4695_v6 = vld [vmem:[#allocation8 + $0x190] ss:$8 sps:$4 sm:$0xff]   ;;  %3293 = vmatprep.subr.bf16.mxu1 %v4697_v37 }
 0x189   :  { %v2007_v40 = vpop.f32.mrf.mxu1  ;;  %v2006_v43 = vadd.f32 %v2005_v41, %v1893_v8  ;;  %v1895_v18 = vadd.f32 %v1894_v62, %v1782_v60  ;;  %v2660_v11 = vsel %vm2532_vm0, %v2002_v23, %v2596_v21  ;;  %v2597_v46 = vmul.f32 0.2, %v2004_v26  ;;  %v4700_v23 = vld [vmem:[#allocation8 + $0x184] ss:$8 sps:$4 sm:$0xff]  }
 0x18a   :  { %v1898_v34 = vpop.f32.mrf.mxu0  ;;  %vm2533_vm2 = vcmp.gt.f32.partialorder %v2004_v26, 0.0  ;;  %v1792_v21 = vadd.f32 %v5235_v55, %v1679_v20  ;;  %3294 = vmatpush2.bf16.msra.mxu1 %v4695_v6  ;;  %v1689_v20 = vadd.f32 %v5250_v49, %v5203_v47 }
 0x18b   :  { %v2011_v52 = vpop.f32.mrf.mxu1  ;;  %vm2536_vm1 = vcmp.gt.f32.partialorder %v2006_v43, 0.0  ;;  %v2600_v7 = vmul.f32 0.2, %v2006_v43  ;;  %v1899_v24 = vadd.f32 %v1898_v34, %v5227_v58  ;;  %v2008_v27 = vadd.f32 %v2007_v40, %v1895_v18  ;;  %3295 = vmatprep.subr.bf16.mxu1 %v4700_v23 }
 0x18c   :  { %v1900_v53 = vpop.f32.mrf.mxu0 }
 0x18d   :  { %v2013_v56 = vpop.f32.mrf.mxu1  ;;  %v2664_v10 = vsel %vm2536_vm1, %v2006_v43, %v2600_v7  ;;  %v2012_v41 = vadd.f32 %v2011_v52, %v1899_v24  ;;  %v1901_v8 = vadd.f32 %v1900_v53, %v5230_v48  ;;  %vm2537_vm3 = vcmp.gt.f32.partialorder %v2008_v27, 0.0  ;;  %v4698_v43 = vld [vmem:[#allocation8 + $0x180] ss:$8 sps:$4 sm:$0xff]  }
 0x18e   :  { %v2724_v45 = vpack.c.bf16 %v2664_v10, %v2660_v11  ;;  %v2601_v58 = vmul.f32 0.2, %v2008_v27  ;;  %v1902_v60 = vpop.f32.mrf.mxu0  ;;  %v2661_v7 = vsel %vm2533_vm2, %v2004_v26, %v2597_v46  ;;  %3296 = vmatpush2.bf16.msra.mxu1 %v4698_v43 }
 0x18f   :  { %v2015_v62 = vpop.f32.mrf.mxu1  ;;  %v1903_v50 = vadd.f32 %v1902_v60, %v5237_v13  ;;  %v2604_v40 = vmul.f32 0.2, %v2012_v41  ;;  %vm2540_vm4 = vcmp.gt.f32.partialorder %v2012_v41, 0.0  ;;  %v2014_v48 = vadd.f32 %v2013_v56, %v1901_v8 }
 0x190   :  { %v1904_v36 = vpop.f32.mrf.mxu0  ;;  %v2665_v34 = vsel %vm2537_vm3, %v2008_v27, %v2601_v58 }
 0x191   :  { %v2017_v18 = vpop.f32.mrf.mxu1  ;;  %v2016_v52 = vadd.f32 %v2015_v62, %v1903_v50  ;;  %v1905_v24 = vadd.f32 %v1904_v36, %v1792_v21  ;;  %v2725_v53 = vpack.c.bf16 %v2665_v34, %v2661_v7  ;;  %v2668_v27 = vsel %vm2540_vm4, %v2012_v41, %v2604_v40 }
 0x192   :  { %v1908_v37 = vpop.f32.mrf.mxu0  ;;  %v2605_v8 = vmul.f32 0.2, %v2014_v48  ;;  %vm2541_vm6 = vcmp.gt.f32.partialorder %v2014_v48, 0.0  ;;  %v1802_v41 = vadd.f32 %v5252_v54, %v1689_v20 }
 0x193   :  { %v2021_v11 = vpop.f32.mrf.mxu1  ;;  %vm2544_vm5 = vcmp.gt.f32.partialorder %v2016_v52, 0.0  ;;  %v2608_v13 = vmul.f32 0.2, %v2016_v52  ;;  %v1909_v55 = vadd.f32 %v1908_v37, %v5244_v63  ;;  %v2018_v6 = vadd.f32 %v2017_v18, %v1905_v24  ;;  %3184 = vmatprep.mubr.bf16.mxu0 %v2725_v53 }
 0x194   :  { %v1910_v10 = vpop.f32.mrf.mxu0  ;;  %3185 = vmatmul.mubr.bf16.vlgmr.msra.gmra.mxu0 %v2724_v45  ;;  %v2669_v45 = vsel %vm2541_vm6, %v2014_v48, %v2605_v8 }
 0x195   :  { %v2023_v56 = vpop.f32.mrf.mxu1  ;;  %v2672_v26 = vsel %vm2544_vm5, %v2016_v52, %v2608_v13  ;;  %v2022_v46 = vadd.f32 %v2021_v11, %v1909_v55  ;;  %v1911_v58 = vadd.f32 %v1910_v10, %v5247_v29  ;;  %vm2545_vm7 = vcmp.gt.f32.partialorder %v2018_v6, 0.0 }
 0x196   :  { %v2728_v60 = vpack.c.bf16 %v2672_v26, %v2668_v27  ;;  %v2609_v62 = vmul.f32 0.2, %v2018_v6  ;;  %v1912_v63 = vpop.f32.mrf.mxu0 }
 0x197   :  { %v2025_v50 = vpop.f32.mrf.mxu1  ;;  %v1913_v49 = vadd.f32 %v1912_v63, %v5254_v14  ;;  %v2612_v23 = vmul.f32 0.2, %v2022_v46  ;;  %vm2548_vm8 = vcmp.gt.f32.partialorder %v2022_v46, 0.0  ;;  %v2024_v18 = vadd.f32 %v2023_v56, %v1911_v58 }
 0x198   :  { %v1914_v21 = vpop.f32.mrf.mxu0  ;;  %v2673_v36 = vsel %vm2545_vm7, %v2018_v6, %v2609_v62  ;;  %v1699_v14 = vadd.f32 %v5267_v12, %v5203_v47 }
 0x199   :  { %v2027_v40 = vpop.f32.mrf.mxu1  ;;  %v2026_v34 = vadd.f32 %v2025_v50, %v1913_v49  ;;  %v1915_v43 = vadd.f32 %v1914_v21, %v1802_v41  ;;  %v2729_v7 = vpack.c.bf16 %v2673_v36, %v2669_v45  ;;  %v2676_v54 = vsel %vm2548_vm8, %v2022_v46, %v2612_v23 }
 0x19a   :  { %v1918_v29 = vpop.f32.mrf.mxu0  ;;  %v2613_v55 = vmul.f32 0.2, %v2024_v18  ;;  %vm2549_vm10 = vcmp.gt.f32.partialorder %v2024_v18, 0.0  ;;  %v1812_v12 = vadd.f32 %v5269_v17, %v1699_v14 }
 0x19b   :  { %v2031_v52 = vpop.f32.mrf.mxu1  ;;  %vm2552_vm9 = vcmp.gt.f32.partialorder %v2026_v34, 0.0  ;;  %v2616_v24 = vmul.f32 0.2, %v2026_v34  ;;  %v1919_v37 = vadd.f32 %v1918_v29, %v5261_v33  ;;  %v2028_v11 = vadd.f32 %v2027_v40, %v1915_v43  ;;  %3194 = vmatprep.mubr.bf16.mxu0 %v2729_v7 }
 0x19c   :  { %v1920_v53 = vpop.f32.mrf.mxu0  ;;  %3195 = vmatmul.mubr.bf16.gmra.mxu0 %v2728_v60  ;;  %v2677_v60 = vsel %vm2549_vm10, %v2024_v18, %v2613_v55 }
 0x19d   :  { %v2033_v13 = vpop.f32.mrf.mxu1  ;;  %v2680_v20 = vsel %vm2552_vm9, %v2026_v34, %v2616_v24  ;;  %v2032_v27 = vadd.f32 %v2031_v52, %v1919_v37  ;;  %v1921_v48 = vadd.f32 %v1920_v53, %v5264_v31  ;;  %vm2553_vm11 = vcmp.gt.f32.partialorder %v2028_v11, 0.0 }
 0x19e   :  { %v2732_v6 = vpack.c.bf16 %v2680_v20, %v2676_v54  ;;  %v2617_v10 = vmul.f32 0.2, %v2028_v11  ;;  %v1922_v56 = vpop.f32.mrf.mxu0 }
 0x19f   :  { %v2035_v33 = vpop.f32.mrf.mxu1  ;;  %v1923_v8 = vadd.f32 %v1922_v56, %v5271_v38  ;;  %v2620_v26 = vmul.f32 0.2, %v2032_v27  ;;  %vm2556_vm12 = vcmp.gt.f32.partialorder %v2032_v27, 0.0  ;;  %v2034_v63 = vadd.f32 %v2033_v13, %v1921_v48 }
 0x1a0   :  { %v1924_v46 = vpop.f32.mrf.mxu0  ;;  %v2681_v62 = vsel %vm2553_vm11, %v2028_v11, %v2617_v10  ;;  %v1709_v38 = vadd.f32 %v5284_v28, %v5203_v47 }
 0x1a1   :  { %v2037_v58 = vpop.f32.mrf.mxu1  ;;  %v2036_v50 = vadd.f32 %v2035_v33, %v1923_v8  ;;  %v1925_v49 = vadd.f32 %v1924_v46, %v1812_v12  ;;  %v2733_v23 = vpack.c.bf16 %v2681_v62, %v2677_v60  ;;  %v2684_v17 = vsel %vm2556_vm12, %v2032_v27, %v2620_v26 }
 0x1a2   :  { %v1928_v31 = vpop.f32.mrf.mxu0  ;;  %v2621_v43 = vmul.f32 0.2, %v2034_v63  ;;  %vm2557_vm14 = vcmp.gt.f32.partialorder %v2034_v63, 0.0  ;;  %v1822_v28 = vadd.f32 %v5286_v39, %v1709_v38 }
 0x1a3   :  { %v2041_v41 = vpop.f32.mrf.mxu1  ;;  %vm2560_vm13 = vcmp.gt.f32.partialorder %v2036_v50, 0.0  ;;  %v2624_v21 = vmul.f32 0.2, %v2036_v50  ;;  %v1929_v40 = vadd.f32 %v1928_v31, %v5278_v59  ;;  %v2038_v36 = vadd.f32 %v2037_v58, %v1925_v49  ;;  %3204 = vmatprep.mubr.bf16.mxu0 %v2733_v23 }
 0x1a4   :  { %v1930_v34 = vpop.f32.mrf.mxu0  ;;  %3205 = vmatmul.mubr.bf16.gmra.mxu0 %v2732_v6  ;;  %v2685_v27 = vsel %vm2557_vm14, %v2034_v63, %v2621_v43 }
 0x1a5   :  { %v2043_v45 = vpop.f32.mrf.mxu1  ;;  %v2688_v29 = vsel %vm2560_vm13, %v2036_v50, %v2624_v21  ;;  %v2042_v52 = vadd.f32 %v2041_v41, %v1929_v40  ;;  %v1931_v18 = vadd.f32 %v1930_v34, %v5281_v22  ;;  %vm2561_vm15 = vcmp.gt.f32.partialorder %v2038_v36, 0.0 }
 0x1a6   :  { %v2736_v7 = vpack.c.bf16 %v2688_v29, %v2684_v17  ;;  %v2625_v24 = vmul.f32 0.2, %v2038_v36  ;;  %v1932_v37 = vpop.f32.mrf.mxu0 }
 0x1a7   :  { %v2045_v59 = vpop.f32.mrf.mxu1  ;;  %v1933_v14 = vadd.f32 %v1932_v37, %v5288_v51  ;;  %v2628_v54 = vmul.f32 0.2, %v2042_v52  ;;  %vm2564_vm0 = vcmp.gt.f32.partialorder %v2042_v52, 0.0  ;;  %v2044_v55 = vadd.f32 %v2043_v45, %v1931_v18 }
 0x1a8   :  { %v1934_v11 = vpop.f32.mrf.mxu0  ;;  %v2689_v13 = vsel %vm2561_vm15, %v2038_v36, %v2625_v24  ;;  %v1719_v51 = vadd.f32 %v5301_v15, %v5203_v47 }
 0x1a9   :  { %v2047_v53 = vpop.f32.mrf.mxu1  ;;  %v2046_v20 = vadd.f32 %v2045_v59, %v1933_v14  ;;  %v1935_v48 = vadd.f32 %v1934_v11, %v1822_v28  ;;  %v2737_v10 = vpack.c.bf16 %v2689_v13, %v2685_v27  ;;  %v2692_v39 = vsel %vm2564_vm0, %v2042_v52, %v2628_v54 }
 0x1aa   :  { %v1938_v22 = vpop.f32.mrf.mxu0  ;;  %v2629_v46 = vmul.f32 0.2, %v2044_v55  ;;  %vm2565_vm2 = vcmp.gt.f32.partialorder %v2044_v55, 0.0  ;;  %v1832_v15 = vadd.f32 %v5303_v9, %v1719_v51 }
 0x1ab   :  { %v2051_v6 = vpop.f32.mrf.mxu1  ;;  %vm2568_vm1 = vcmp.gt.f32.partialorder %v2046_v20, 0.0  ;;  %v2632_v56 = vmul.f32 0.2, %v2046_v20  ;;  %v1939_v33 = vadd.f32 %v1938_v22, %v5295_v3  ;;  %v2048_v8 = vadd.f32 %v2047_v53, %v1935_v48  ;;  %3214 = vmatprep.mubr.bf16.mxu0 %v2737_v10 }
 0x1ac   :  { %v1940_v12 = vpop.f32.mrf.mxu0  ;;  %3215 = vmatmul.mubr.bf16.gmra.mxu0 %v2736_v7  ;;  %v2693_v36 = vsel %vm2565_vm2, %v2044_v55, %v2629_v46 }
 0x1ad   :  { %v2053_v26 = vpop.f32.mrf.mxu1  ;;  %v2696_v58 = vsel %vm2568_vm1, %v2046_v20, %v2632_v56  ;;  %v2052_v62 = vadd.f32 %v2051_v6, %v1939_v33  ;;  %v1941_v63 = vadd.f32 %v1940_v12, %v5298_v32  ;;  %vm2569_vm3 = vcmp.gt.f32.partialorder %v2048_v8, 0.0 }
 0x1ae   :  { %v2740_v50 = vpack.c.bf16 %v2696_v58, %v2692_v39  ;;  %v2633_v60 = vmul.f32 0.2, %v2048_v8  ;;  %v1942_v49 = vpop.f32.mrf.mxu0 }
 0x1af   :  { %v2055_v3 = vpop.f32.mrf.mxu1  ;;  %v1943_v31 = vadd.f32 %v1942_v49, %v5305_v4  ;;  %v2636_v41 = vmul.f32 0.2, %v2052_v62  ;;  %vm2572_vm4 = vcmp.gt.f32.partialorder %v2052_v62, 0.0  ;;  %v2054_v38 = vadd.f32 %v2053_v26, %v1941_v63 }
 0x1b0   :  { %v1944_v23 = vpop.f32.mrf.mxu0  ;;  %v2697_v40 = vsel %vm2569_vm3, %v2048_v8, %v2633_v60  ;;  %v1729_v4 = vadd.f32 %v5318_v0, %v5203_v47 }
 0x1b1   :  { %v2057_v21 = vpop.f32.mrf.mxu1  ;;  %v2056_v17 = vadd.f32 %v2055_v3, %v1943_v31  ;;  %v1945_v34 = vadd.f32 %v1944_v23, %v1832_v15  ;;  %v2741_v43 = vpack.c.bf16 %v2697_v40, %v2693_v36  ;;  %v2700_v9 = vsel %vm2572_vm4, %v2052_v62, %v2636_v41 }
 0x1b2   :  { %v1948_v32 = vpop.f32.mrf.mxu0  ;;  %v2637_v37 = vmul.f32 0.2, %v2054_v38  ;;  %vm2573_vm6 = vcmp.gt.f32.partialorder %v2054_v38, 0.0  ;;  %v1842_v0 = vadd.f32 %v5320_v1, %v1729_v4  ;;  %v1739_v1 = vadd.f32 %v5333_v35, %v5203_v47  ;;  %v4781_v35 = vld [vmem:[#allocation7] sm:$0xf] }
 0x1b3   :  { %v2061_v45 = vpop.f32.mrf.mxu1  ;;  %vm2576_vm5 = vcmp.gt.f32.partialorder %v2056_v17, 0.0  ;;  %v2640_v29 = vmul.f32 0.2, %v2056_v17  ;;  %v1949_v52 = vadd.f32 %v1948_v32, %v5312_v19  ;;  %v2058_v18 = vadd.f32 %v2057_v21, %v1945_v34  ;;  %3224 = vmatprep.mubr.bf16.mxu0 %v2741_v43 }
 0x1b4   :  { %v1950_v7 = vpop.f32.mrf.mxu0  ;;  %3225 = vmatmul.mubr.bf16.gmra.mxu0 %v2740_v50  ;;  %v2701_v10 = vsel %vm2573_vm6, %v2054_v38, %v2637_v37  ;;  %v502_v62 = vsub.s32 3, %v5189_v5  ;;  %v1852_v23 = vadd.f32 %v5335_v30, %v1739_v1 }
 0x1b5   :  { %v2063_v24 = vpop.f32.mrf.mxu1  ;;  %v2704_v59 = vsel %vm2576_vm5, %v2056_v17, %v2640_v29  ;;  %v2062_v14 = vadd.f32 %v2061_v45, %v1949_v52  ;;  %v1951_v28 = vadd.f32 %v1950_v7, %v5315_v44  ;;  %vm2577_vm7 = vcmp.gt.f32.partialorder %v2058_v18, 0.0 }
 0x1b6   :  { %v2744_v54 = vpack.c.bf16 %v2704_v59, %v2700_v9  ;;  %v2641_v11 = vmul.f32 0.2, %v2058_v18  ;;  %v1952_v53 = vpop.f32.mrf.mxu0  ;;  %v5393_v32 = vrot.slane %v4781_v35, %v502_v62 }
 0x1b7   :  { %v2065_v19 = vpop.f32.mrf.mxu1  ;;  %v1953_v13 = vadd.f32 %v1952_v53, %v5322_v16  ;;  %v2644_v55 = vmul.f32 0.2, %v2062_v14  ;;  %vm2580_vm8 = vcmp.gt.f32.partialorder %v2062_v14, 0.0  ;;  %v2064_v22 = vadd.f32 %v2063_v24, %v1951_v28 }
 0x1b8   :  { %v1954_v20 = vpop.f32.mrf.mxu0  ;;  %v2705_v48 = vsel %vm2577_vm7, %v2058_v18, %v2641_v11  ;;  %v498_v16 = vsub.s32 2, %v5189_v5 }
 0x1b9   :  { %v2067_v27 = vpop.f32.mrf.mxu1  ;;  %v2066_v6 = vadd.f32 %v2065_v19, %v1953_v13  ;;  %v1955_v56 = vadd.f32 %v1954_v20, %v1842_v0  ;;  %v2745_v51 = vpack.c.bf16 %v2705_v48, %v2701_v10  ;;  %v2708_v12 = vsel %vm2580_vm8, %v2062_v14, %v2644_v55 }
 0x1ba   :  { %v1958_v44 = vpop.f32.mrf.mxu0  ;;  %v2645_v63 = vmul.f32 0.2, %v2064_v22  ;;  %vm2581_vm10 = vcmp.gt.f32.partialorder %v2064_v22, 0.0  ;;  %v5389_v41 = vrot.slane %v4781_v35, %v498_v16 }
 0x1bb   :  { %v2071_v33 = vpop.f32.mrf.mxu1  ;;  %vm2584_vm9 = vcmp.gt.f32.partialorder %v2066_v6, 0.0  ;;  %v2648_v39 = vmul.f32 0.2, %v2066_v6  ;;  %v1959_v8 = vadd.f32 %v1958_v44, %v5327_v57  ;;  %v2068_v26 = vadd.f32 %v2067_v27, %v1955_v56  ;;  %3234 = vmatprep.mubr.bf16.mxu0 %v2745_v51 }
 0x1bc   :  { %v1960_v46 = vpop.f32.mrf.mxu0  ;;  %3235 = vmatmul.mubr.bf16.gmra.mxu0 %v2744_v54  ;;  %v2709_v34 = vsel %vm2581_vm10, %v2064_v22, %v2645_v63 }
 0x1bd   :  { %v2073_v58 = vpop.f32.mrf.mxu1  ;;  %v2712_v50 = vsel %vm2584_vm9, %v2066_v6, %v2648_v39  ;;  %v2072_v60 = vadd.f32 %v2071_v33, %v1959_v8  ;;  %v1961_v49 = vadd.f32 %v1960_v46, %v5330_v61  ;;  %vm2585_vm11 = vcmp.gt.f32.partialorder %v2068_v26, 0.0 }
 0x1be   :  { %v2748_v57 = vpack.c.bf16 %v2712_v50, %v2708_v12  ;;  %v2649_v3 = vmul.f32 0.2, %v2068_v26  ;;  %v1962_v31 = vpop.f32.mrf.mxu0 }
 0x1bf   :  { %v2075_v15 = vpop.f32.mrf.mxu1  ;;  %v1963_v47 = vadd.f32 %v1962_v31, %v5337_v42  ;;  %v2652_v21 = vmul.f32 0.2, %v2072_v60  ;;  %v2074_v40 = vadd.f32 %v2073_v58, %v1961_v49  ;;  %vm2588_vm12 = vcmp.gt.f32.partialorder %v2072_v60, 0.0 }
 0x1c0   :  { %v1964_v38 = vpop.f32.mrf.mxu0  ;;  %v2713_v36 = vsel %vm2585_vm11, %v2068_v26, %v2649_v3 }
 0x1c1   :  { %v2077_v17 = vpop.f32.mrf.mxu1  ;;  %v2076_v61 = vadd.f32 %v2075_v15, %v1963_v47  ;;  %v1965_v45 = vadd.f32 %v1964_v38, %v1852_v23  ;;  %v2749_v42 = vpack.c.bf16 %v2713_v36, %v2709_v34  ;;  %v2716_v30 = vsel %vm2588_vm12, %v2072_v60, %v2652_v21 }
 0x1c2   :  { %v2114_v43 = vpop.f32.mrf.mxu0  ;;  %v2653_v9 = vmul.f32 0.2, %v2074_v40  ;;  %vm2589_vm14 = vcmp.gt.f32.partialorder %v2074_v40, 0.0 }
 0x1c3   :  { %v2227_v29 = vpop.f32.mrf.mxu1  ;;  %vm2592_vm13 = vcmp.gt.f32.partialorder %v2076_v61, 0.0  ;;  %v2656_v52 = vmul.f32 0.2, %v2076_v61  ;;  %v2115_v4 = vadd.f32 %v2114_v43, %v5389_v41  ;;  %v2078_v18 = vadd.f32 %v2077_v17, %v1965_v45  ;;  %3244 = vmatprep.mubr.bf16.mxu0 %v2749_v42 }
 0x1c4   :  { %v2116_v7 = vpop.f32.mrf.mxu0  ;;  %3245 = vmatmul.mubr.bf16.gmra.mxu0 %v2748_v57  ;;  %v2717_v20 = vsel %vm2589_vm14, %v2074_v40, %v2653_v9 }
 0x1c5   :  { %v2229_v24 = vpop.f32.mrf.mxu1  ;;  %v2720_v37 = vsel %vm2592_vm13, %v2076_v61, %v2656_v52  ;;  %v5396_v59 = vadd.f32 %v2227_v29, %v2115_v4  ;;  %v2117_v14 = vadd.f32 %v2116_v7, %v5393_v32  ;;  %vm2593_vm15 = vcmp.gt.f32.partialorder %v2078_v18, 0.0 }
 0x1c6   :  { %v2752_v28 = vpack.c.bf16 %v2720_v37, %v2716_v30  ;;  %v2657_v54 = vmul.f32 0.2, %v2078_v18  ;;  %v2118_v11 = vpop.f32.mrf.mxu0 }
 0x1c7   :  { %v2231_v53 = vpop.f32.mrf.mxu1  ;;  %v5399_v19 = vadd.f32 %v2229_v24, %v2117_v14  ;;  %v2119_v13 = vadd.f32 %v2118_v11, %v5389_v41 }
 0x1c8   :  { %v5402_v0 = vpop.f32.mrf.mxu0  ;;  %v2721_v27 = vsel %vm2593_vm15, %v2078_v18, %v2657_v54 }
 0x1c9   :  { %v5404_v55 = vpop.f32.mrf.mxu1  ;;  %v5406_v48 = vadd.f32 %v2231_v53, %v2119_v13  ;;  %v2753_v22 = vpack.c.bf16 %v2721_v27, %v2717_v20 }
 0x1ca   :  { %v2124_v6 = vpop.f32.mrf.mxu0 }
 0x1cb   :  { %v2237_v10 = vpop.f32.mrf.mxu1  ;;  %v2125_v56 = vadd.f32 %v2124_v6, %v5389_v41  ;;  %3254 = vmatprep.mubr.bf16.mxu0 %v2753_v22 }
 0x1cc   :  { %v2126_v44 = vpop.f32.mrf.mxu0  ;;  %3255 = vmatmul.mubr.bf16.gmra.mxu0 %v2752_v28 }
 0x1cd   :  { %v2239_v33 = vpop.f32.mrf.mxu1  ;;  %v5409_v51 = vadd.f32 %v2237_v10, %v2125_v56  ;;  %v2127_v39 = vadd.f32 %v2126_v44, %v5393_v32 }
 0x1ce   :  { %v2128_v8 = vpop.f32.mrf.mxu0 }
 0x1cf   :  { %v2241_v16 = vpop.f32.mrf.mxu1  ;;  %v5412_v1 = vadd.f32 %v2239_v33, %v2127_v39  ;;  %v2129_v12 = vadd.f32 %v2128_v8, %v5389_v41 }
 0x1d0   :  { %v5415_v26 = vpop.f32.mrf.mxu0 }
 0x1d1   :  { %v5417_v46 = vpop.f32.mrf.mxu1  ;;  %v5419_v58 = vadd.f32 %v2241_v16, %v2129_v12 }
 0x1d2   :  { %v2134_v62 = vpop.f32.mrf.mxu0 }
 0x1d3   :  { %v2247_v63 = vpop.f32.mrf.mxu1  ;;  %v2135_v50 = vadd.f32 %v2134_v62, %v5389_v41 }
 0x1d4   :  { %v2136_v60 = vpop.f32.mrf.mxu0 }
 0x1d5   :  { %v2249_v49 = vpop.f32.mrf.mxu1  ;;  %v5422_v57 = vadd.f32 %v2247_v63, %v2135_v50  ;;  %v2137_v3 = vadd.f32 %v2136_v60, %v5393_v32 }
 0x1d6   :  { %v2138_v31 = vpop.f32.mrf.mxu0 }
 0x1d7   :  { %v2251_v15 = vpop.f32.mrf.mxu1  ;;  %v5425_v47 = vadd.f32 %v2249_v49, %v2137_v3  ;;  %v2139_v35 = vadd.f32 %v2138_v31, %v5389_v41 }
 0x1d8   :  { %v5428_v23 = vpop.f32.mrf.mxu0 }
 0x1d9   :  { %v5430_v21 = vpop.f32.mrf.mxu1  ;;  %v5432_v40 = vadd.f32 %v2251_v15, %v2139_v35 }
 0x1da   :  { %v2144_v38 = vpop.f32.mrf.mxu0 }
 0x1db   :  { %v2257_v17 = vpop.f32.mrf.mxu1  ;;  %v2145_v36 = vadd.f32 %v2144_v38, %v5389_v41 }
 0x1dc   :  { %v2146_v61 = vpop.f32.mrf.mxu0 }
 0x1dd   :  { %v2259_v34 = vpop.f32.mrf.mxu1  ;;  %v5435_v45 = vadd.f32 %v2257_v17, %v2145_v36  ;;  %v2147_v43 = vadd.f32 %v2146_v61, %v5393_v32 }
 0x1de   :  { %v2148_v29 = vpop.f32.mrf.mxu0 }
 0x1df   :  { %v2261_v42 = vpop.f32.mrf.mxu1  ;;  %v5438_v52 = vadd.f32 %v2259_v34, %v2147_v43  ;;  %v2149_v4 = vadd.f32 %v2148_v29, %v5389_v41 }
 0x1e0   :  { %v5441_v30 = vpop.f32.mrf.mxu0 }
 0x1e1   :  { %v5443_v9 = vpop.f32.mrf.mxu1  ;;  %v5445_v18 = vadd.f32 %v2261_v42, %v2149_v4 }
 0x1e2   :  { %v2154_v7 = vpop.f32.mrf.mxu0 }
 0x1e3   :  { %v2267_v24 = vpop.f32.mrf.mxu1  ;;  %v2155_v37 = vadd.f32 %v2154_v7, %v5389_v41 }
 0x1e4   :  { %v2156_v14 = vpop.f32.mrf.mxu0 }
 0x1e5   :  { %v2269_v28 = vpop.f32.mrf.mxu1  ;;  %v5448_v54 = vadd.f32 %v2267_v24, %v2155_v37  ;;  %v2157_v11 = vadd.f32 %v2156_v14, %v5393_v32 }
 0x1e6   :  { %v2158_v53 = vpop.f32.mrf.mxu0 }
 0x1e7   :  { %v2271_v13 = vpop.f32.mrf.mxu1  ;;  %v5451_v20 = vadd.f32 %v2269_v28, %v2157_v11  ;;  %v2159_v27 = vadd.f32 %v2158_v53, %v5389_v41 }
 0x1e8   :  { %v5454_v22 = vpop.f32.mrf.mxu0 }
 0x1e9   :  { %v5456_v6 = vpop.f32.mrf.mxu1  ;;  %v5458_v10 = vadd.f32 %v2271_v13, %v2159_v27 }
 0x1ea   :  { %v2164_v56 = vpop.f32.mrf.mxu0 }
 0x1eb   :  { %v2277_v44 = vpop.f32.mrf.mxu1  ;;  %v2165_v33 = vadd.f32 %v2164_v56, %v5389_v41 }
 0x1ec   :  { %v2166_v39 = vpop.f32.mrf.mxu0 }
 0x1ed   :  { %v2279_v8 = vpop.f32.mrf.mxu1  ;;  %v5461_v16 = vadd.f32 %v2277_v44, %v2165_v33  ;;  %v2167_v12 = vadd.f32 %v2166_v39, %v5393_v32 }
 0x1ee   :  { %v2168_v62 = vpop.f32.mrf.mxu0 }
 0x1ef   :  { %v2281_v63 = vpop.f32.mrf.mxu1  ;;  %v5464_v50 = vadd.f32 %v2279_v8, %v2167_v12  ;;  %v2169_v60 = vadd.f32 %v2168_v62, %v5389_v41 }
 0x1f0   :  { %v5467_v49 = vpop.f32.mrf.mxu0 }
 0x1f1   :  { %v5469_v3 = vpop.f32.mrf.mxu1  ;;  %v5471_v31 = vadd.f32 %v2281_v63, %v2169_v60 }
 0x1f2   :  { %v2174_v15 = vpop.f32.mrf.mxu0 }
 0x1f3   :  { %v2287_v35 = vpop.f32.mrf.mxu1  ;;  %v2175_v38 = vadd.f32 %v2174_v15, %v5389_v41 }
 0x1f4   :  { %v2176_v17 = vpop.f32.mrf.mxu0 }
 0x1f5   :  { %v2289_v36 = vpop.f32.mrf.mxu1  ;;  %v5474_v61 = vadd.f32 %v2287_v35, %v2175_v38  ;;  %v2177_v34 = vadd.f32 %v2176_v17, %v5393_v32  ;;  %v2121_v38 = vadd.f32 %v5402_v0, %v5393_v32 }
 0x1f6   :  { %v2178_v43 = vpop.f32.mrf.mxu0 }
 0x1f7   :  { %v2291_v29 = vpop.f32.mrf.mxu1  ;;  %v5477_v42 = vadd.f32 %v2289_v36, %v2177_v34  ;;  %v2179_v4 = vadd.f32 %v2178_v43, %v5389_v41 }
 0x1f8   :  { %v5480_v7 = vpop.f32.mrf.mxu0 }
 0x1f9   :  { %v5482_v24 = vpop.f32.mrf.mxu1  ;;  %v5484_v37 = vadd.f32 %v2291_v29, %v2179_v4 }
 0x1fa   :  { %v2184_v14 = vpop.f32.mrf.mxu0 }
 0x1fb   :  { %v2297_v28 = vpop.f32.mrf.mxu1  ;;  %v2185_v11 = vadd.f32 %v2184_v14, %v5389_v41  ;;  %v2234_v14 = vadd.f32 %v5404_v55, %v2121_v38 }
 0x1fc   :  { %v2186_v53 = vpop.f32.mrf.mxu0 }
 0x1fd   :  { %v2299_v13 = vpop.f32.mrf.mxu1  ;;  %v5487_v27 = vadd.f32 %v2297_v28, %v2185_v11  ;;  %v2187_v56 = vadd.f32 %v2186_v53, %v5393_v32 }
 0x1fe   :  { %v2188_v44 = vpop.f32.mrf.mxu0 }
 0x1ff   :  { %v2301_v33 = vpop.f32.mrf.mxu1  ;;  %v5490_v39 = vadd.f32 %v2299_v13, %v2187_v56  ;;  %v2189_v8 = vadd.f32 %v2188_v44, %v5389_v41 }
 0x200   :  { %v5493_v12 = vpop.f32.mrf.mxu0 }
 0x201   :  { %v5495_v62 = vpop.f32.mrf.mxu1  ;;  %v5497_v63 = vadd.f32 %v2301_v33, %v2189_v8 }
 0x202   :  { %v2340_v60 = vpop.f32.mrf.mxu0 }
 0x203   :  { %v2453_v15 = vpop.f32.mrf.mxu1  ;;  %v2341_v35 = vadd.f32 %v2340_v60, %v5396_v59 }
 0x204   :  { %v2342_v17 = vpop.f32.mrf.mxu0 }
 0x205   :  { %v2455_v36 = vpop.f32.mrf.mxu1  ;;  %v2454_v34 = vadd.f32 %v2453_v15, %v2341_v35  ;;  %v2343_v43 = vadd.f32 %v2342_v17, %v5399_v19  ;;  %v2131_v19 = vadd.f32 %v5415_v26, %v5393_v32 }
 0x206   :  { %v2344_v29 = vpop.f32.mrf.mxu0 }
 0x207   :  { %v2457_v41 = vpop.f32.mrf.mxu1  ;;  %v2345_v4 = vadd.f32 %v2344_v29, %v5406_v48  ;;  %v2598_v28 = vmul.f32 0.2, %v2454_v34  ;;  %vm2534_vm0 = vcmp.gt.f32.partialorder %v2454_v34, 0.0  ;;  %v2456_v13 = vadd.f32 %v2455_v36, %v2343_v43 }
 0x208   :  { %v2346_v11 = vpop.f32.mrf.mxu0 }
 0x209   :  { %v2459_v53 = vpop.f32.mrf.mxu1  ;;  %v2458_v59 = vadd.f32 %v2457_v41, %v2345_v4  ;;  %v2347_v56 = vadd.f32 %v2346_v11, %v2234_v14  ;;  %v2662_v60 = vsel %vm2534_vm0, %v2454_v34, %v2598_v28  ;;  %v2599_v35 = vmul.f32 0.2, %v2456_v13 }
 0x20a   :  { %v2350_v44 = vpop.f32.mrf.mxu0  ;;  %vm2535_vm2 = vcmp.gt.f32.partialorder %v2456_v13, 0.0  ;;  %v2244_v14 = vadd.f32 %v5417_v46, %v2131_v19 }
 0x20b   :  { %v2463_v0 = vpop.f32.mrf.mxu1  ;;  %vm2538_vm1 = vcmp.gt.f32.partialorder %v2458_v59, 0.0  ;;  %v2602_v33 = vmul.f32 0.2, %v2458_v59  ;;  %v2351_v8 = vadd.f32 %v2350_v44, %v5409_v51  ;;  %v2460_v48 = vadd.f32 %v2459_v53, %v2347_v56 }
 0x20c   :  { %v2352_v15 = vpop.f32.mrf.mxu0  ;;  %v2663_v56 = vsel %vm2535_vm2, %v2456_v13, %v2599_v35 }
 0x20d   :  { %v2465_v55 = vpop.f32.mrf.mxu1  ;;  %v2666_v38 = vsel %vm2538_vm1, %v2458_v59, %v2602_v33  ;;  %v2464_v17 = vadd.f32 %v2463_v0, %v2351_v8  ;;  %v2353_v36 = vadd.f32 %v2352_v15, %v5412_v1  ;;  %vm2539_vm3 = vcmp.gt.f32.partialorder %v2460_v48, 0.0 }
 0x20e   :  { %v2726_v43 = vpack.c.bf16 %v2666_v38, %v2662_v60  ;;  %v2603_v29 = vmul.f32 0.2, %v2460_v48  ;;  %v2354_v41 = vpop.f32.mrf.mxu0  ;;  %v4701_v38 = vld [vmem:[#allocation10 + $0x78] sm:$0xff]  }
 0x20f   :  { %v2467_v4 = vpop.f32.mrf.mxu1  ;;  %v2355_v51 = vadd.f32 %v2354_v41, %v5419_v58  ;;  %v2606_v26 = vmul.f32 0.2, %v2464_v17  ;;  %vm2542_vm4 = vcmp.gt.f32.partialorder %v2464_v17, 0.0  ;;  %v2466_v53 = vadd.f32 %v2465_v55, %v2353_v36  ;;  %v4702_v55 = vld [vmem:[#allocation10 + $0x38] sm:$0xff]   ;;  %v4703_v36 = vld [vmem:[#allocation10 + $0x70] sm:$0xff]   ;;  %4174 = vmatprep.subr.bf16.mxu0 %v4701_v38  ;;  %4238 = vmatprep.subr.bf16.mxu1 %v4701_v38 }
 0x210   :  { %v2356_v34 = vpop.f32.mrf.mxu0  ;;  %v2667_v11 = vsel %vm2539_vm3, %v2460_v48, %v2603_v29  ;;  %v2141_v58 = vadd.f32 %v5428_v23, %v5393_v32  ;;  %4175 = vmatpush3.bf16.msra.mxu0 %v4702_v55 }
 0x211   :  { %v2469_v28 = vpop.f32.mrf.mxu1  ;;  %v2468_v59 = vadd.f32 %v2467_v4, %v2355_v51  ;;  %v2357_v44 = vadd.f32 %v2356_v34, %v2244_v14  ;;  %v2727_v33 = vpack.c.bf16 %v2667_v11, %v2663_v56  ;;  %v2670_v46 = vsel %vm2542_vm4, %v2464_v17, %v2606_v26  ;;  %v4704_v14 = vld [vmem:[#allocation10 + $0x30] sm:$0xff]   ;;  %4176 = vmatprep.subr.bf16.mxu0 %v4703_v36 }
 0x212   :  { %v2360_v1 = vpop.f32.mrf.mxu0  ;;  %v2607_v13 = vmul.f32 0.2, %v2466_v53  ;;  %vm2543_vm6 = vcmp.gt.f32.partialorder %v2466_v53, 0.0  ;;  %v2254_v26 = vadd.f32 %v5430_v21, %v2141_v58  ;;  %v2151_v58 = vadd.f32 %v5441_v30, %v5393_v32 }
 0x213   :  { %v2473_v0 = vpop.f32.mrf.mxu1  ;;  %vm2546_vm5 = vcmp.gt.f32.partialorder %v2468_v59, 0.0  ;;  %v2610_v8 = vmul.f32 0.2, %v2468_v59  ;;  %v2361_v60 = vadd.f32 %v2360_v1, %v5422_v57  ;;  %v2470_v19 = vadd.f32 %v2469_v28, %v2357_v44  ;;  %3297 = vmatprep.mubr.bf16.mxu1 %v2727_v33 }
 0x214   :  { %v2362_v15 = vpop.f32.mrf.mxu0  ;;  %3298 = vmatmul.mubr.bf16.vlgmr.msra.gmra.mxu1 %v2726_v43  ;;  %v2671_v44 = vsel %vm2543_vm6, %v2466_v53, %v2607_v13  ;;  %4177 = vmatpush3.bf16.msra.mxu0 %v4704_v14  ;;  %v4707_v53 = vld [vmem:[#allocation10 + $0x60] sm:$0xff]  }
 0x215   :  { %v2475_v48 = vpop.f32.mrf.mxu1  ;;  %v2674_v35 = vsel %vm2546_vm5, %v2468_v59, %v2610_v8  ;;  %v2474_v29 = vadd.f32 %v2473_v0, %v2361_v60  ;;  %v2363_v41 = vadd.f32 %v2362_v15, %v5425_v47  ;;  %vm2547_vm7 = vcmp.gt.f32.partialorder %v2470_v19, 0.0  ;;  %4246 = vmatpush3.bf16.msra.mxu1 %v4702_v55  ;;  %v4705_v47 = vld [vmem:[#allocation10 + $0x68] sm:$0xff]  }
 0x216   :  { %v2730_v4 = vpack.c.bf16 %v2674_v35, %v2670_v46  ;;  %v2611_v57 = vmul.f32 0.2, %v2470_v19  ;;  %v2364_v51 = vpop.f32.mrf.mxu0  ;;  %4239 = vmatprep.subr.bf16.mxu1 %v4703_v36  ;;  %v4706_v60 = vld [vmem:[#allocation10 + $0x28] sm:$0xff]   ;;  %4178 = vmatprep.subr.bf16.mxu0 %v4705_v47 }
 0x217   :  { %v2477_v23 = vpop.f32.mrf.mxu1  ;;  %v2365_v17 = vadd.f32 %v2364_v51, %v5432_v40  ;;  %v2614_v34 = vmul.f32 0.2, %v2474_v29  ;;  %vm2550_vm8 = vcmp.gt.f32.partialorder %v2474_v29, 0.0  ;;  %v2476_v59 = vadd.f32 %v2475_v48, %v2363_v41 }
 0x218   :  { %v2366_v28 = vpop.f32.mrf.mxu0  ;;  %v2675_v11 = vsel %vm2547_vm7, %v2470_v19, %v2611_v57  ;;  %4179 = vmatpush3.bf16.msra.mxu0 %v4706_v60  ;;  %v4708_v57 = vld [vmem:[#allocation10 + $0x20] sm:$0xff]   ;;  %v2264_v51 = vadd.f32 %v5443_v9, %v2151_v58 }
 0x219   :  { %v2479_v43 = vpop.f32.mrf.mxu1  ;;  %v2478_v56 = vadd.f32 %v2477_v23, %v2365_v17  ;;  %v2367_v1 = vadd.f32 %v2366_v28, %v2254_v26  ;;  %v2731_v33 = vpack.c.bf16 %v2675_v11, %v2671_v44  ;;  %4247 = vmatpush3.bf16.msra.mxu1 %v4704_v14  ;;  %v2678_v46 = vsel %vm2550_vm8, %v2474_v29, %v2614_v34 }
 0x21a   :  { %v2370_v0 = vpop.f32.mrf.mxu0  ;;  %v2615_v38 = vmul.f32 0.2, %v2476_v59  ;;  %4240 = vmatprep.subr.bf16.mxu1 %v4705_v47  ;;  %vm2551_vm10 = vcmp.gt.f32.partialorder %v2476_v59, 0.0  ;;  %4180 = vmatprep.subr.bf16.mxu0 %v4707_v53  ;;  %v2161_v44 = vadd.f32 %v5454_v22, %v5393_v32 }
 0x21b   :  { %v2483_v40 = vpop.f32.mrf.mxu1  ;;  %vm2554_vm9 = vcmp.gt.f32.partialorder %v2478_v56, 0.0  ;;  %v2618_v8 = vmul.f32 0.2, %v2478_v56  ;;  %v2371_v21 = vadd.f32 %v2370_v0, %v5435_v45  ;;  %v2480_v19 = vadd.f32 %v2479_v43, %v2367_v1  ;;  %3307 = vmatprep.mubr.bf16.mxu1 %v2731_v33 }
 0x21c   :  { %v2372_v15 = vpop.f32.mrf.mxu0  ;;  %3308 = vmatmul.mubr.bf16.gmra.mxu1 %v2730_v4  ;;  %v2679_v28 = vsel %vm2551_vm10, %v2476_v59, %v2615_v38  ;;  %4181 = vmatpush3.bf16.msra.mxu0 %v4708_v57 }
 0x21d   :  { %v2485_v48 = vpop.f32.mrf.mxu1  ;;  %v2682_v55 = vsel %vm2554_vm9, %v2478_v56, %v2618_v8  ;;  %v2484_v36 = vadd.f32 %v2483_v40, %v2371_v21  ;;  %v2373_v13 = vadd.f32 %v2372_v15, %v5438_v52  ;;  %vm2555_vm11 = vcmp.gt.f32.partialorder %v2480_v19, 0.0  ;;  %4248 = vmatpush3.bf16.msra.mxu1 %v4706_v60  ;;  %v4709_v52 = vld [vmem:[#allocation10 + $0x58] sm:$0xff]  }
 0x21e   :  { %v2734_v45 = vpack.c.bf16 %v2682_v55, %v2678_v46  ;;  %v2619_v35 = vmul.f32 0.2, %v2480_v19  ;;  %v2374_v41 = vpop.f32.mrf.mxu0  ;;  %4241 = vmatprep.subr.bf16.mxu1 %v4707_v53  ;;  %4182 = vmatprep.subr.bf16.mxu0 %v4709_v52  ;;  %v2274_v15 = vadd.f32 %v5456_v6, %v2161_v44 }
 0x21f   :  { %v2487_v30 = vpop.f32.mrf.mxu1  ;;  %v2375_v29 = vadd.f32 %v2374_v41, %v5445_v18  ;;  %v2622_v23 = vmul.f32 0.2, %v2484_v36  ;;  %vm2558_vm12 = vcmp.gt.f32.partialorder %v2484_v36, 0.0  ;;  %v2486_v26 = vadd.f32 %v2485_v48, %v2373_v13 }
 0x220   :  { %v2376_v17 = vpop.f32.mrf.mxu0  ;;  %v2683_v4 = vsel %vm2555_vm11, %v2480_v19, %v2619_v35 }
 0x221   :  { %v2489_v14 = vpop.f32.mrf.mxu1  ;;  %v2488_v34 = vadd.f32 %v2487_v30, %v2375_v29  ;;  %v2377_v43 = vadd.f32 %v2376_v17, %v2264_v51  ;;  %v2735_v47 = vpack.c.bf16 %v2683_v4, %v2679_v28  ;;  %4249 = vmatpush3.bf16.msra.mxu1 %v4708_v57  ;;  %v2686_v1 = vsel %vm2558_vm12, %v2484_v36, %v2622_v23 }
 0x222   :  { %v2380_v11 = vpop.f32.mrf.mxu0  ;;  %v2623_v59 = vmul.f32 0.2, %v2486_v26  ;;  %4242 = vmatprep.subr.bf16.mxu1 %v4709_v52  ;;  %vm2559_vm14 = vcmp.gt.f32.partialorder %v2486_v26, 0.0 }
 0x223   :  { %v2493_v18 = vpop.f32.mrf.mxu1  ;;  %vm2562_vm13 = vcmp.gt.f32.partialorder %v2488_v34, 0.0  ;;  %v2626_v56 = vmul.f32 0.2, %v2488_v34  ;;  %v2381_v9 = vadd.f32 %v2380_v11, %v5448_v54  ;;  %v2490_v0 = vadd.f32 %v2489_v14, %v2377_v43  ;;  %3317 = vmatprep.mubr.bf16.mxu1 %v2735_v47 }
 0x224   :  { %v2382_v40 = vpop.f32.mrf.mxu0  ;;  %3318 = vmatmul.mubr.bf16.gmra.mxu1 %v2734_v45  ;;  %v2687_v45 = vsel %vm2559_vm14, %v2486_v26, %v2623_v59 }
 0x225   :  { %v2495_v33 = vpop.f32.mrf.mxu1  ;;  %v2690_v8 = vsel %vm2562_vm13, %v2488_v34, %v2626_v56  ;;  %v2494_v21 = vadd.f32 %v2493_v18, %v2381_v9  ;;  %v2383_v60 = vadd.f32 %v2382_v40, %v5451_v20  ;;  %vm2563_vm15 = vcmp.gt.f32.partialorder %v2490_v0, 0.0 }
 0x226   :  { %v2738_v54 = vpack.c.bf16 %v2690_v8, %v2686_v1  ;;  %v2627_v58 = vmul.f32 0.2, %v2490_v0  ;;  %v2384_v46 = vpop.f32.mrf.mxu0 }
 0x227   :  { %v2497_v19 = vpop.f32.mrf.mxu1  ;;  %v2385_v22 = vadd.f32 %v2384_v46, %v5458_v10  ;;  %v2630_v48 = vmul.f32 0.2, %v2494_v21  ;;  %vm2566_vm0 = vcmp.gt.f32.partialorder %v2494_v21, 0.0  ;;  %v2496_v36 = vadd.f32 %v2495_v33, %v2383_v60 }
 0x228   :  { %v2386_v53 = vpop.f32.mrf.mxu0  ;;  %v2691_v55 = vsel %vm2563_vm15, %v2490_v0, %v2627_v58  ;;  %v2171_v10 = vadd.f32 %v5467_v49, %v5393_v32 }
 0x229   :  { %v2499_v38 = vpop.f32.mrf.mxu1  ;;  %v2498_v13 = vadd.f32 %v2497_v19, %v2385_v22  ;;  %v2387_v20 = vadd.f32 %v2386_v53, %v2274_v15  ;;  %v2739_v30 = vpack.c.bf16 %v2691_v55, %v2687_v45  ;;  %v2694_v6 = vsel %vm2566_vm0, %v2494_v21, %v2630_v48 }
 0x22a   :  { %v2390_v35 = vpop.f32.mrf.mxu0  ;;  %v2631_v14 = vmul.f32 0.2, %v2496_v36  ;;  %vm2567_vm2 = vcmp.gt.f32.partialorder %v2496_v36, 0.0  ;;  %v2284_v49 = vadd.f32 %v5469_v3, %v2171_v10 }
 0x22b   :  { %v2503_v41 = vpop.f32.mrf.mxu1  ;;  %vm2570_vm1 = vcmp.gt.f32.partialorder %v2498_v13, 0.0  ;;  %v2634_v29 = vmul.f32 0.2, %v2498_v13  ;;  %v2391_v57 = vadd.f32 %v2390_v35, %v5461_v16  ;;  %v2500_v51 = vadd.f32 %v2499_v38, %v2387_v20  ;;  %3327 = vmatprep.mubr.bf16.mxu1 %v2739_v30 }
 0x22c   :  { %v2392_v23 = vpop.f32.mrf.mxu0  ;;  %3328 = vmatmul.mubr.bf16.gmra.mxu1 %v2738_v54  ;;  %v2695_v0 = vsel %vm2567_vm2, %v2496_v36, %v2631_v14 }
 0x22d   :  { %v2505_v17 = vpop.f32.mrf.mxu1  ;;  %v2698_v4 = vsel %vm2570_vm1, %v2498_v13, %v2634_v29  ;;  %v2504_v52 = vadd.f32 %v2503_v41, %v2391_v57  ;;  %v2393_v26 = vadd.f32 %v2392_v23, %v5464_v50  ;;  %vm2571_vm3 = vcmp.gt.f32.partialorder %v2500_v51, 0.0 }
 0x22e   :  { %v2742_v34 = vpack.c.bf16 %v2698_v4, %v2694_v6  ;;  %v2635_v28 = vmul.f32 0.2, %v2500_v51  ;;  %v2394_v43 = vpop.f32.mrf.mxu0 }
 0x22f   :  { %v2507_v16 = vpop.f32.mrf.mxu1  ;;  %v2395_v11 = vadd.f32 %v2394_v43, %v5471_v31  ;;  %v2638_v18 = vmul.f32 0.2, %v2504_v52  ;;  %vm2574_vm4 = vcmp.gt.f32.partialorder %v2504_v52, 0.0  ;;  %v2506_v44 = vadd.f32 %v2505_v17, %v2393_v26 }
 0x230   :  { %v2396_v47 = vpop.f32.mrf.mxu0  ;;  %v2699_v9 = vsel %vm2571_vm3, %v2500_v51, %v2635_v28  ;;  %v2181_v31 = vadd.f32 %v5480_v7, %v5393_v32 }
 0x231   :  { %v2509_v56 = vpop.f32.mrf.mxu1  ;;  %v2508_v1 = vadd.f32 %v2507_v16, %v2395_v11  ;;  %v2397_v40 = vadd.f32 %v2396_v47, %v2284_v49  ;;  %v2743_v59 = vpack.c.bf16 %v2699_v9, %v2695_v0  ;;  %v2702_v3 = vsel %vm2574_vm4, %v2504_v52, %v2638_v18 }
 0x232   :  { %v2400_v50 = vpop.f32.mrf.mxu0  ;;  %v2639_v46 = vmul.f32 0.2, %v2506_v44  ;;  %vm2575_vm6 = vcmp.gt.f32.partialorder %v2506_v44, 0.0  ;;  %v2294_v7 = vadd.f32 %v5482_v24, %v2181_v31 }
 0x233   :  { %v2513_v33 = vpop.f32.mrf.mxu1  ;;  %vm2578_vm5 = vcmp.gt.f32.partialorder %v2508_v1, 0.0  ;;  %v2642_v8 = vmul.f32 0.2, %v2508_v1  ;;  %v2401_v21 = vadd.f32 %v2400_v50, %v5474_v61  ;;  %v2510_v60 = vadd.f32 %v2509_v56, %v2397_v40  ;;  %3337 = vmatprep.mubr.bf16.mxu1 %v2743_v59 }
 0x234   :  { %v2402_v54 = vpop.f32.mrf.mxu0  ;;  %3338 = vmatmul.mubr.bf16.gmra.mxu1 %v2742_v34  ;;  %v2703_v30 = vsel %vm2575_vm6, %v2506_v44, %v2639_v46  ;;  %v4714_v46 = vld [vmem:[#allocation10 + $0x8] sm:$0xff]  }
 0x235   :  { %v2515_v58 = vpop.f32.mrf.mxu1  ;;  %v2706_v19 = vsel %vm2578_vm5, %v2508_v1, %v2642_v8  ;;  %v2514_v22 = vadd.f32 %v2513_v33, %v2401_v21  ;;  %v2403_v15 = vadd.f32 %v2402_v54, %v5477_v42  ;;  %vm2579_vm7 = vcmp.gt.f32.partialorder %v2510_v60, 0.0  ;;  %v4712_v54 = vld [vmem:[#allocation10 + $0x10] sm:$0xff]  }
 0x236   :  { %v2746_v48 = vpack.c.bf16 %v2706_v19, %v2702_v3  ;;  %v2643_v53 = vmul.f32 0.2, %v2510_v60  ;;  %v2404_v38 = vpop.f32.mrf.mxu0  ;;  %v4710_v3 = vld [vmem:[#allocation10 + $0x18] sm:$0xff]   ;;  %v4715_v19 = vld [vmem:[#allocation10 + $0x40] sm:$0xff]  }
 0x237   :  { %v2517_v61 = vpop.f32.mrf.mxu1  ;;  %v2405_v55 = vadd.f32 %v2404_v38, %v5484_v37  ;;  %v2646_v36 = vmul.f32 0.2, %v2514_v22  ;;  %vm2582_vm8 = vcmp.gt.f32.partialorder %v2514_v22, 0.0  ;;  %v2516_v35 = vadd.f32 %v2515_v58, %v2403_v15  ;;  %4183 = vmatpush3.bf16.msra.mxu0 %v4710_v3  ;;  %4250 = vmatpush3.bf16.msra.mxu1 %v4710_v3  ;;  %v4713_v58 = vld [vmem:[#allocation10 + $0x48] sm:$0xff]  }
 0x238   :  { %v2406_v13 = vpop.f32.mrf.mxu0  ;;  %v2707_v20 = vsel %vm2579_vm7, %v2510_v60, %v2643_v53  ;;  %v2191_v37 = vadd.f32 %v5493_v12, %v5393_v32  ;;  %v4711_v60 = vld [vmem:[#allocation10 + $0x50] sm:$0xff]  }
 0x239   :  { %v2519_v45 = vpop.f32.mrf.mxu1  ;;  %v2518_v41 = vadd.f32 %v2517_v61, %v2405_v55  ;;  %v2407_v29 = vadd.f32 %v2406_v13, %v2294_v7  ;;  %v2747_v10 = vpack.c.bf16 %v2707_v20, %v2703_v30  ;;  %v2710_v24 = vsel %vm2582_vm8, %v2514_v22, %v2646_v36  ;;  %4184 = vmatprep.subr.bf16.mxu0 %v4711_v60  ;;  %v4716_v22 = vld [vmem:[#allocation10] sm:$0xff]  }
 0x23a   :  { %v2410_v42 = vpop.f32.mrf.mxu0  ;;  %v2647_v4 = vmul.f32 0.2, %v2516_v35  ;;  %vm2583_vm10 = vcmp.gt.f32.partialorder %v2516_v35, 0.0  ;;  %v2304_v32 = vadd.f32 %v5495_v62, %v2191_v37  ;;  %4243 = vmatprep.subr.bf16.mxu1 %v4711_v60 }
 0x23b   :  { %v2523_v57 = vpop.f32.mrf.mxu1  ;;  %vm2586_vm9 = vcmp.gt.f32.partialorder %v2518_v41, 0.0  ;;  %v2650_v6 = vmul.f32 0.2, %v2518_v41  ;;  %v2411_v51 = vadd.f32 %v2410_v42, %v5487_v27  ;;  %v2520_v23 = vadd.f32 %v2519_v45, %v2407_v29  ;;  %3347 = vmatprep.mubr.bf16.mxu1 %v2747_v10  ;;  %4185 = vmatpush3.bf16.msra.mxu0 %v4712_v54 }
 0x23c   :  { %v2412_v17 = vpop.f32.mrf.mxu0  ;;  %3348 = vmatmul.mubr.bf16.gmra.mxu1 %v2746_v48  ;;  %v2711_v9 = vsel %vm2583_vm10, %v2516_v35, %v2647_v4  ;;  %4186 = vmatprep.subr.bf16.mxu0 %v4713_v58 }
 0x23d   :  { %v2525_v14 = vpop.f32.mrf.mxu1  ;;  %v2714_v52 = vsel %vm2586_vm9, %v2518_v41, %v2650_v6  ;;  %v2524_v26 = vadd.f32 %v2523_v57, %v2411_v51  ;;  %v2413_v34 = vadd.f32 %v2412_v17, %v5490_v39  ;;  %vm2587_vm11 = vcmp.gt.f32.partialorder %v2520_v23, 0.0  ;;  %4251 = vmatpush3.bf16.msra.mxu1 %v4712_v54  ;;  %v2820_v57 = vld [vmem:[%s5671_s4] sm:$0x3] }
 0x23e   :  { %v2750_v28 = vpack.c.bf16 %v2714_v52, %v2710_v24  ;;  %v2651_v43 = vmul.f32 0.2, %v2520_v23  ;;  %v2414_v16 = vpop.f32.mrf.mxu0  ;;  %4244 = vmatprep.subr.bf16.mxu1 %v4713_v58  ;;  %v5568_v10 = vrot.slane %v2820_v57, %v494_v2  ;;  %v5572_v6 = vrot.slane %v2820_v57, %v490_v25 }
 0x23f   :  { %v2415_v27 = vadd.f32 %v2414_v16, %v5497_v63  ;;  %v2527_v11 = vpop.f32.mrf.mxu1  ;;  %v2526_v12 = vadd.f32 %v2525_v14, %v2413_v34  ;;  %v2654_v47 = vmul.f32 0.2, %v2524_v26  ;;  %vm2590_vm12 = vcmp.gt.f32.partialorder %v2524_v26, 0.0  ;;  %4187 = vmatpush3.bf16.msra.mxu0 %v4714_v46 }
 0x240   :  { %v2416_v49 = vpop.f32.mrf.mxu0  ;;  %v2715_v18 = vsel %vm2587_vm11, %v2520_v23, %v2651_v43  ;;  %4188 = vmatprep.subr.bf16.mxu0 %v4715_v19 }
 0x241   :  { %v2528_v56 = vadd.f32 %v2527_v11, %v2415_v27  ;;  %v2417_v44 = vadd.f32 %v2416_v49, %v2304_v32  ;;  %v2751_v1 = vpack.c.bf16 %v2715_v18, %v2711_v9  ;;  %v2529_v0 = vpop.f32.mrf.mxu1  ;;  %v2655_v40 = vmul.f32 0.2, %v2526_v12  ;;  %4252 = vmatpush3.bf16.msra.mxu1 %v4714_v46 }
 0x242   :  { %v2718_v33 = vsel %vm2590_vm12, %v2524_v26, %v2654_v47  ;;  %vm2591_vm14 = vcmp.gt.f32.partialorder %v2526_v12, 0.0  ;;  %4245 = vmatprep.subr.bf16.mxu1 %v4715_v19 }
 0x243   :  { %vm2594_vm13 = vcmp.gt.f32.partialorder %v2528_v56, 0.0  ;;  %v2658_v39 = vmul.f32 0.2, %v2528_v56  ;;  %v2530_v50 = vadd.f32 %v2529_v0, %v2417_v44  ;;  %3357 = vmatprep.mubr.bf16.mxu1 %v2751_v1  ;;  %v2719_v8 = vsel %vm2591_vm14, %v2526_v12, %v2655_v40  ;;  %4189 = vmatpush3.bf16.msra.mxu0 %v4716_v22 }
 0x244   :  { %3358 = vmatmul.mubr.bf16.gmra.mxu1 %v2750_v28 }
 0x245   :  { %v2722_v63 = vsel %vm2594_vm13, %v2528_v56, %v2658_v39  ;;  %vm2595_vm15 = vcmp.gt.f32.partialorder %v2530_v50, 0.0  ;;  %v2659_v59 = vmul.f32 0.2, %v2530_v50  ;;  %4253 = vmatpush3.bf16.msra.mxu1 %v4716_v22 }
 0x246   :  { %v2754_v62 = vpack.c.bf16 %v2722_v63, %v2718_v33 }
 0x247   :  { %v2723_v21 = vsel %vm2595_vm15, %v2530_v50, %v2659_v59 }
 0x248   :  { %v2755_v31 = vpack.c.bf16 %v2723_v21, %v2719_v8 }
 0x24a   :  { %3367 = vmatprep.mubr.bf16.mxu1 %v2755_v31 }
 0x24c   :  { %3368 = vmatmul.mubr.bf16.gmra.mxu1 %v2754_v62 }
 0x254   :  { %v3186_v15 = vpop.f32.mrf.mxu0 }
 0x255   :  { %v3187_v23 = vadd.f32 %v3186_v15, %v5572_v6 }
 0x256   :  { %v3188_v48 = vpop.f32.mrf.mxu0 }
 0x257   :  { %v3189_v24 = vadd.f32 %v3188_v48, %v5568_v10 }
 0x258   :  { %v3190_v53 = vpop.f32.mrf.mxu0 }
 0x259   :  { %v3191_v4 = vadd.f32 %v3190_v53, %v5572_v6 }
 0x25a   :  { %v3192_v38 = vpop.f32.mrf.mxu0 }
 0x25b   :  { %v3193_v34 = vadd.f32 %v3192_v38, %v5568_v10 }
 0x25c   :  { %v3196_v61 = vpop.f32.mrf.mxu0 }
 0x25d   :  { %v3197_v18 = vadd.f32 %v3196_v61, %v5572_v6 }
 0x25e   :  { %v3198_v55 = vpop.f32.mrf.mxu0 }
 0x25f   :  { %v3199_v12 = vadd.f32 %v3198_v55, %v5568_v10 }
 0x260   :  { %v3200_v7 = vpop.f32.mrf.mxu0 }
 0x261   :  { %v3201_v44 = vadd.f32 %v3200_v7, %v5572_v6 }
 0x262   :  { %v3202_v36 = vpop.f32.mrf.mxu0 }
 0x263   :  { %v3203_v62 = vadd.f32 %v3202_v36, %v5568_v10 }
 0x264   :  { %v5549_v13 = vpop.f32.mrf.mxu0 }
 0x265   :  { %v3207_v15 = vadd.f32 %v5549_v13, %v5572_v6 }
 0x266   :  { %v3208_v45 = vpop.f32.mrf.mxu0 }
 0x267   :  { %v3209_v19 = vadd.f32 %v3208_v45, %v5568_v10 }
 0x268   :  { %v5551_v20 = vpop.f32.mrf.mxu0 }
 0x269   :  { %v3211_v61 = vadd.f32 %v5551_v20, %v5572_v6 }
 0x26a   :  { %v5553_v35 = vpop.f32.mrf.mxu0 }
 0x26c   :  { %v5555_v41 = vpop.f32.mrf.mxu0 }
 0x26e   :  { %v5557_v30 = vpop.f32.mrf.mxu0 }
 0x270   :  { %v5559_v29 = vpop.f32.mrf.mxu0 }
 0x272   :  { %v5561_v42 = vpop.f32.mrf.mxu0 }
 0x274   :  { %v5574_v51 = vpop.f32.mrf.mxu0 }
 0x276   :  { %v5578_v17 = vpop.f32.mrf.mxu0 }
 0x278   :  { %v5582_v25 = vpop.f32.mrf.mxu0 }
 0x27a   :  { %v5586_v47 = vpop.f32.mrf.mxu0 }
 0x27c   :  { %v5590_v21 = vpop.f32.mrf.mxu0 }
 0x27e   :  { %v5595_v48 = vpop.f32.mrf.mxu0 }
 0x280   :  { %v5601_v13 = vpop.f32.mrf.mxu0 }
 0x2d4   :  { %v3299_v37 = vpop.f32.mrf.mxu1 }
 0x2d5   :  { %v3300_v26 = vadd.f32 %v3299_v37, %v3187_v23  ;;  %v3213_v23 = vadd.f32 %v5553_v35, %v5568_v10 }
 0x2d6   :  { %v3301_v14 = vpop.f32.mrf.mxu1 }
 0x2d7   :  { %v3302_v52 = vadd.f32 %v3301_v14, %v3189_v24  ;;  %v3410_v11 = vmul.f32 0.2, %v3300_v26  ;;  %vm3378_vm2 = vcmp.gt.f32.partialorder %v3300_v26, 0.0 }
 0x2d8   :  { %v3303_v2 = vpop.f32.mrf.mxu1 }
 0x2d9   :  { %v3304_v5 = vadd.f32 %v3303_v2, %v3191_v4  ;;  %v3411_v43 = vmul.f32 0.2, %v3302_v52  ;;  %vm3379_vm1 = vcmp.gt.f32.partialorder %v3302_v52, 0.0  ;;  %v3442_v40 = vsel %vm3378_vm2, %v3300_v26, %v3410_v11 }
 0x2da   :  { %v3305_v28 = vpop.f32.mrf.mxu1 }
 0x2db   :  { %vm3380_vm0 = vcmp.gt.f32.partialorder %v3304_v5, 0.0  ;;  %v3412_v16 = vmul.f32 0.2, %v3304_v5  ;;  %v3306_v27 = vadd.f32 %v3305_v28, %v3193_v34  ;;  %v3443_v39 = vsel %vm3379_vm1, %v3302_v52, %v3411_v43 }
 0x2dc   :  { %v3309_v32 = vpop.f32.mrf.mxu1  ;;  %v3219_v28 = vadd.f32 %v5557_v30, %v5568_v10  ;;  %v3217_v43 = vadd.f32 %v5555_v41, %v5572_v6 }
 0x2dd   :  { %vm3381_vm3 = vcmp.gt.f32.partialorder %v3306_v27, 0.0  ;;  %v3413_v49 = vmul.f32 0.2, %v3306_v27  ;;  %v3444_v56 = vsel %vm3380_vm0, %v3304_v5, %v3412_v16  ;;  %v3310_v50 = vadd.f32 %v3309_v32, %v3197_v18  ;;  %v5607_v16 = vpop.f32.mrf.mxu0 }
 0x2de   :  { %v3311_v9 = vpop.f32.mrf.mxu1  ;;  %v3474_v59 = vpack.c.bf16 %v3444_v56, %v3442_v40  ;;  %v3221_v32 = vadd.f32 %v5559_v29, %v5572_v6 }
 0x2df   :  { %v3312_v1 = vadd.f32 %v3311_v9, %v3199_v12  ;;  %v3445_v0 = vsel %vm3381_vm3, %v3306_v27, %v3413_v49  ;;  %v3414_v58 = vmul.f32 0.2, %v3310_v50  ;;  %vm3382_vm6 = vcmp.gt.f32.partialorder %v3310_v50, 0.0  ;;  %v5613_v41 = vpop.f32.mrf.mxu0 }
 0x2e0   :  { %v3313_v33 = vpop.f32.mrf.mxu1  ;;  %v3475_v63 = vpack.c.bf16 %v3445_v0, %v3443_v39 }
 0x2e1   :  { %v3314_v8 = vadd.f32 %v3313_v33, %v3201_v44  ;;  %v3415_v3 = vmul.f32 0.2, %v3312_v1  ;;  %vm3383_vm5 = vcmp.gt.f32.partialorder %v3312_v1, 0.0  ;;  %v3446_v57 = vsel %vm3382_vm6, %v3310_v50, %v3414_v58 }
 0x2e2   :  { %v3315_v31 = vpop.f32.mrf.mxu1  ;;  %3657 = vmatprep.mubr.bf16.mxu0 %v3475_v63 }
 0x2e3   :  { %vm3384_vm4 = vcmp.gt.f32.partialorder %v3314_v8, 0.0  ;;  %v3416_v60 = vmul.f32 0.2, %v3314_v8  ;;  %v3316_v54 = vadd.f32 %v3315_v31, %v3203_v62  ;;  %3658 = vmatmul.mubr.bf16.vlgmr.msra.gmra.mxu0 %v3474_v59  ;;  %v3447_v7 = vsel %vm3383_vm5, %v3312_v1, %v3415_v3  ;;  %v3248_v31 = vpop.f32.mrf.mxu0 }
 0x2e4   :  { %v3319_v46 = vpop.f32.mrf.mxu1  ;;  %v3223_v1 = vadd.f32 %v5561_v42, %v5568_v10  ;;  %v3229_v59 = vadd.f32 %v5578_v17, %v5568_v10  ;;  %v3233_v17 = vadd.f32 %v5586_v47, %v5568_v10  ;;  %v3237_v47 = vadd.f32 %v5590_v21, %v5572_v6 }
 0x2e5   :  { %vm3385_vm7 = vcmp.gt.f32.partialorder %v3316_v54, 0.0  ;;  %v3417_v22 = vmul.f32 0.2, %v3316_v54  ;;  %v3448_v53 = vsel %vm3384_vm4, %v3314_v8, %v3416_v60  ;;  %v3320_v37 = vadd.f32 %v3319_v46, %v3207_v15 }
 0x2e6   :  { %v3321_v38 = vpop.f32.mrf.mxu1  ;;  %v3476_v14 = vpack.c.bf16 %v3448_v53, %v3446_v57  ;;  %v3227_v8 = vadd.f32 %v5574_v51, %v5572_v6 }
 0x2e7   :  { %v3322_v55 = vadd.f32 %v3321_v38, %v3209_v19  ;;  %v3449_v36 = vsel %vm3385_vm7, %v3316_v54, %v3417_v22  ;;  %v3418_v34 = vmul.f32 0.2, %v3320_v37  ;;  %vm3386_vm10 = vcmp.gt.f32.partialorder %v3320_v37, 0.0 }
 0x2e8   :  { %v3323_v24 = vpop.f32.mrf.mxu1  ;;  %v3477_v45 = vpack.c.bf16 %v3449_v36, %v3447_v7  ;;  %v3231_v54 = vadd.f32 %v5582_v25, %v5572_v6  ;;  %v3250_v7 = vpop.f32.mrf.mxu0 }
 0x2e9   :  { %v3324_v4 = vadd.f32 %v3323_v24, %v3211_v61  ;;  %v3419_v26 = vmul.f32 0.2, %v3322_v55  ;;  %vm3387_vm9 = vcmp.gt.f32.partialorder %v3322_v55, 0.0  ;;  %v3450_v56 = vsel %vm3386_vm10, %v3320_v37, %v3418_v34 }
 0x2ea   :  { %v3325_v52 = vpop.f32.mrf.mxu1  ;;  %3665 = vmatprep.mubr.bf16.mxu0 %v3477_v45  ;;  %v3239_v45 = vadd.f32 %v5595_v48, %v5568_v10  ;;  %v3243_v48 = vadd.f32 %v5607_v16, %v5568_v10  ;;  %v3247_v16 = vadd.f32 %v5613_v41, %v5572_v6 }
 0x2eb   :  { %vm3388_vm8 = vcmp.gt.f32.partialorder %v3324_v4, 0.0  ;;  %v3420_v2 = vmul.f32 0.2, %v3324_v4  ;;  %v3326_v20 = vadd.f32 %v3325_v52, %v3213_v23  ;;  %3666 = vmatmul.mubr.bf16.gmra.mxu0 %v3476_v14  ;;  %v3451_v49 = vsel %vm3387_vm9, %v3322_v55, %v3419_v26  ;;  %v3252_v14 = vpop.f32.mrf.mxu0 }
 0x2ec   :  { %v3329_v5 = vpop.f32.mrf.mxu1  ;;  %v3241_v26 = vadd.f32 %v5601_v13, %v5572_v6 }
 0x2ed   :  { %vm3389_vm11 = vcmp.gt.f32.partialorder %v3326_v20, 0.0  ;;  %v3421_v35 = vmul.f32 0.2, %v3326_v20  ;;  %v3452_v27 = vsel %vm3388_vm8, %v3324_v4, %v3420_v2  ;;  %v3330_v9 = vadd.f32 %v3329_v5, %v3217_v43 }
 0x2ee   :  { %v3331_v11 = vpop.f32.mrf.mxu1  ;;  %v3478_v39 = vpack.c.bf16 %v3452_v27, %v3450_v56 }
 0x2ef   :  { %v3332_v12 = vadd.f32 %v3331_v11, %v3219_v28  ;;  %v3453_v18 = vsel %vm3389_vm11, %v3326_v20, %v3421_v35  ;;  %v3422_v63 = vmul.f32 0.2, %v3330_v9  ;;  %vm3390_vm14 = vcmp.gt.f32.partialorder %v3330_v9, 0.0 }
 0x2f0   :  { %v3333_v44 = vpop.f32.mrf.mxu1  ;;  %v3479_v30 = vpack.c.bf16 %v3453_v18, %v3451_v49 }
 0x2f1   :  { %v3334_v0 = vadd.f32 %v3333_v44, %v3221_v32  ;;  %v3423_v50 = vmul.f32 0.2, %v3332_v12  ;;  %vm3391_vm13 = vcmp.gt.f32.partialorder %v3332_v12, 0.0  ;;  %v3454_v22 = vsel %vm3390_vm14, %v3330_v9, %v3422_v63  ;;  %v3256_v32 = vpop.f32.mrf.mxu0 }
 0x2f2   :  { %v3335_v40 = vpop.f32.mrf.mxu1  ;;  %3673 = vmatprep.mubr.bf16.mxu0 %v3479_v30  ;;  %v3249_v9 = vadd.f32 %v3248_v31, %v5568_v10 }
 0x2f3   :  { %vm3392_vm12 = vcmp.gt.f32.partialorder %v3334_v0, 0.0  ;;  %v3424_v33 = vmul.f32 0.2, %v3334_v0  ;;  %v3336_v29 = vadd.f32 %v3335_v40, %v3223_v1  ;;  %3674 = vmatmul.mubr.bf16.gmra.mxu0 %v3478_v39  ;;  %v3455_v46 = vsel %vm3391_vm13, %v3332_v12, %v3423_v50  ;;  %v3258_v30 = vpop.f32.mrf.mxu0 }
 0x2f4   :  { %v3339_v62 = vpop.f32.mrf.mxu1 }
 0x2f5   :  { %vm3393_vm15 = vcmp.gt.f32.partialorder %v3336_v29, 0.0  ;;  %v3425_v42 = vmul.f32 0.2, %v3336_v29  ;;  %v3456_v3 = vsel %vm3392_vm12, %v3334_v0, %v3424_v33  ;;  %v3340_v15 = vadd.f32 %v3339_v62, %v3227_v8 }
 0x2f6   :  { %v3341_v60 = vpop.f32.mrf.mxu1  ;;  %v3480_v61 = vpack.c.bf16 %v3456_v3, %v3454_v22  ;;  %v3251_v0 = vadd.f32 %v3250_v7, %v5572_v6  ;;  %v3260_v3 = vpop.f32.mrf.mxu0  ;;  %v3259_v22 = vadd.f32 %v3258_v30, %v5568_v10 }
 0x2f7   :  { %v3342_v58 = vadd.f32 %v3341_v60, %v3229_v59  ;;  %v3457_v19 = vsel %vm3393_vm15, %v3336_v29, %v3425_v42  ;;  %v3426_v25 = vmul.f32 0.2, %v3340_v15  ;;  %vm3394_vm2 = vcmp.gt.f32.partialorder %v3340_v15, 0.0 }
 0x2f8   :  { %v3343_v53 = vpop.f32.mrf.mxu1  ;;  %v3481_v38 = vpack.c.bf16 %v3457_v19, %v3455_v46  ;;  %v3253_v42 = vadd.f32 %v3252_v14, %v5568_v10 }
 0x2f9   :  { %v3344_v55 = vadd.f32 %v3343_v53, %v3231_v54  ;;  %v3427_v36 = vmul.f32 0.2, %v3342_v58  ;;  %vm3395_vm1 = vcmp.gt.f32.partialorder %v3342_v58, 0.0  ;;  %v3458_v5 = vsel %vm3394_vm2, %v3340_v15, %v3426_v25 }
 0x2fa   :  { %v3345_v51 = vpop.f32.mrf.mxu1  ;;  %3681 = vmatprep.mubr.bf16.mxu0 %v3481_v38  ;;  %v3257_v53 = vadd.f32 %v3256_v32, %v5572_v6  ;;  %v3262_v38 = vpop.f32.mrf.mxu0 }
 0x2fb   :  { %vm3396_vm0 = vcmp.gt.f32.partialorder %v3344_v55, 0.0  ;;  %v3428_v57 = vmul.f32 0.2, %v3344_v55  ;;  %v3346_v37 = vadd.f32 %v3345_v51, %v3233_v17  ;;  %3682 = vmatmul.mubr.bf16.gmra.mxu0 %v3480_v61  ;;  %v3459_v20 = vsel %vm3395_vm1, %v3342_v58, %v3427_v36 }
 0x2fc   :  { %v3349_v24 = vpop.f32.mrf.mxu1 }
 0x2fd   :  { %vm3397_vm3 = vcmp.gt.f32.partialorder %v3346_v37, 0.0  ;;  %v3429_v23 = vmul.f32 0.2, %v3346_v37  ;;  %v3460_v4 = vsel %vm3396_vm0, %v3344_v55, %v3428_v57  ;;  %v3350_v28 = vadd.f32 %v3349_v24, %v3237_v47 }
 0x2fe   :  { %v3351_v52 = vpop.f32.mrf.mxu1  ;;  %v3482_v27 = vpack.c.bf16 %v3460_v4, %v3458_v5  ;;  %v3261_v55 = vadd.f32 %v3260_v3, %v5572_v6 }
 0x2ff   :  { %v3352_v2 = vadd.f32 %v3351_v52, %v3239_v45  ;;  %v3461_v34 = vsel %vm3397_vm3, %v3346_v37, %v3429_v23  ;;  %v3430_v13 = vmul.f32 0.2, %v3350_v28  ;;  %vm3398_vm6 = vcmp.gt.f32.partialorder %v3350_v28, 0.0 }
 0x300   :  { %v3353_v35 = vpop.f32.mrf.mxu1  ;;  %v3483_v43 = vpack.c.bf16 %v3461_v34, %v3459_v20  ;;  %v3263_v45 = vadd.f32 %v3262_v38, %v5568_v10 }
 0x301   :  { %v3354_v11 = vadd.f32 %v3353_v35, %v3241_v26  ;;  %v3431_v12 = vmul.f32 0.2, %v3352_v2  ;;  %vm3399_vm5 = vcmp.gt.f32.partialorder %v3352_v2, 0.0  ;;  %v3462_v29 = vsel %vm3398_vm6, %v3350_v28, %v3430_v13 }
 0x302   :  { %v3355_v21 = vpop.f32.mrf.mxu1  ;;  %3689 = vmatprep.mubr.bf16.mxu1 %v3483_v43 }
 0x303   :  { %vm3400_vm4 = vcmp.gt.f32.partialorder %v3354_v11, 0.0  ;;  %v3432_v49 = vmul.f32 0.2, %v3354_v11  ;;  %v3356_v18 = vadd.f32 %v3355_v21, %v3243_v48  ;;  %3690 = vmatmul.mubr.bf16.vlgmr.msra.gmra.mxu1 %v3482_v27  ;;  %v3463_v50 = vsel %vm3399_vm5, %v3352_v2, %v3431_v12  ;;  %v5643_v48 = vld [vmem:[%s5673_s6] ss:$0 sm:$0xff]  ;;  %s4924_s6 = smov [#allocation11]  }
 0x304   :  { %v3359_v56 = vpop.f32.mrf.mxu1  ;;  %s3839_s9 = sshll.u32 %s4924_s6, 4  ;;  %s3840_s9 = int_to_ptr.vmem [resolvable:$true] %s3839_s9 }
 0x305   :  { %vm3401_vm7 = vcmp.gt.f32.partialorder %v3356_v18, 0.0  ;;  %v3433_v44 = vmul.f32 0.2, %v3356_v18  ;;  %v3464_v1 = vsel %vm3400_vm4, %v3354_v11, %v3432_v49  ;;  %v3360_v63 = vadd.f32 %v3359_v56, %v3247_v16  ;;  %s4882_s10 = scalar_lea.vmem %s3840_s9, 2048  ;;  %p4887_p12 = scmp.lt.s32.totalorder %s3840_s9, %s3840_s9 }
 0x306   :  { %v3361_v39 = vpop.f32.mrf.mxu1  ;;  %v3484_v8 = vpack.c.bf16 %v3464_v1, %v3462_v29  ;;  %p4883_p11 = scmp.ne.s32.totalorder %s3840_s9, %s4882_s10  ;;  %p4888_p13 = scmp.lt.s32.totalorder %s4882_s10, %s4882_s10 }
 0x307   :  { %v3362_v40 = vadd.f32 %v3361_v39, %v3249_v9  ;;  %v3465_v33 = vsel %vm3401_vm7, %v3356_v18, %v3433_v44  ;;  %v3434_v46 = vmul.f32 0.2, %v3360_v63  ;;  %vm3402_vm10 = vcmp.gt.f32.partialorder %v3360_v63, 0.0 }
 0x308   :  { %v3363_v62 = vpop.f32.mrf.mxu1  ;;  %v3485_v59 = vpack.c.bf16 %v3465_v33, %v3463_v50  ;;  %p4889_p0 = por %p4888_p13, %p4887_p12 }
 0x309   :  { %v3364_v31 = vadd.f32 %v3363_v62, %v3251_v0  ;;  %v3435_v41 = vmul.f32 0.2, %v3362_v40  ;;  %vm3403_vm9 = vcmp.gt.f32.partialorder %v3362_v40, 0.0  ;;  %v3466_v57 = vsel %vm3402_vm10, %v3360_v63, %v3434_v46 }
 0x30a   :  { %v3365_v60 = vpop.f32.mrf.mxu1  ;;  %3697 = vmatprep.mubr.bf16.mxu1 %v3485_v59  ;;  %p4890_p1 = pnand %p4889_p0, %p4883_p11 }
 0x30b   :  { %vm3404_vm8 = vcmp.gt.f32.partialorder %v3364_v31, 0.0  ;;  %v3436_v54 = vmul.f32 0.2, %v3364_v31  ;;  %v3366_v58 = vadd.f32 %v3365_v60, %v3253_v42  ;;  %3698 = vmatmul.mubr.bf16.gmra.mxu1 %v3484_v8  ;;  %v3467_v51 = vsel %vm3403_vm9, %v3362_v40, %v3435_v41 }
 0x30c   :  { %v3369_v19 = vpop.f32.mrf.mxu1 }
 0x30d   :  { %vm3405_vm11 = vcmp.gt.f32.partialorder %v3366_v58, 0.0  ;;  %v3437_v15 = vmul.f32 0.2, %v3366_v58  ;;  %v3468_v17 = vsel %vm3404_vm8, %v3364_v31, %v3436_v54  ;;  %v3370_v37 = vadd.f32 %v3369_v19, %v3257_v53 }
 0x30e   :  { %v3371_v61 = vpop.f32.mrf.mxu1  ;;  %v3486_v23 = vpack.c.bf16 %v3468_v17, %v3466_v57 }
 0x30f   :  { %v3372_v7 = vadd.f32 %v3371_v61, %v3259_v22  ;;  %v3469_v36 = vsel %vm3405_vm11, %v3366_v58, %v3437_v15  ;;  %v3438_v2 = vmul.f32 0.2, %v3370_v37  ;;  %vm3406_vm14 = vcmp.gt.f32.partialorder %v3370_v37, 0.0 }
 0x310   :  { %v3373_v25 = vpop.f32.mrf.mxu1  ;;  %v3487_v24 = vpack.c.bf16 %v3469_v36, %v3467_v51 }
 0x311   :  { %v3374_v47 = vadd.f32 %v3373_v25, %v3261_v55  ;;  %v3439_v4 = vmul.f32 0.2, %v3372_v7  ;;  %vm3407_vm13 = vcmp.gt.f32.partialorder %v3372_v7, 0.0  ;;  %v3470_v28 = vsel %vm3406_vm14, %v3370_v37, %v3438_v2 }
 0x312   :  { %v3375_v14 = vpop.f32.mrf.mxu1  ;;  %3705 = vmatprep.mubr.bf16.mxu1 %v3487_v24 }
 0x313   :  { %vm3408_vm12 = vcmp.gt.f32.partialorder %v3374_v47, 0.0  ;;  %v3440_v52 = vmul.f32 0.2, %v3374_v47  ;;  %v3376_v26 = vadd.f32 %v3375_v14, %v3263_v45  ;;  %3706 = vmatmul.mubr.bf16.gmra.mxu1 %v3486_v23  ;;  %v3471_v34 = vsel %vm3407_vm13, %v3372_v7, %v3439_v4 }
 0x315   :  { %vm3409_vm15 = vcmp.gt.f32.partialorder %v3376_v26, 0.0  ;;  %v3441_v6 = vmul.f32 0.2, %v3376_v26  ;;  %v3472_v20 = vsel %vm3408_vm12, %v3374_v47, %v3440_v52 }
 0x316   :  { %v3488_v10 = vpack.c.bf16 %v3472_v20, %v3470_v28 }
 0x317   :  { %v3473_v5 = vsel %vm3409_vm15, %v3376_v26, %v3441_v6 }
 0x318   :  { %v3489_v35 = vpack.c.bf16 %v3473_v5, %v3471_v34 }
 0x31a   :  { %3713 = vmatprep.mubr.bf16.mxu1 %v3489_v35 }
 0x31b   :  { %3714 = vmatmul.mubr.bf16.gmra.mxu1 %v3488_v10 }
 0x3a3   :  { %v4190_v43 = vpop.f32.mrf.mxu0 }
 0x3a5   :  { %v4191_v27 = vpop.f32.mrf.mxu0 }
 0x3a6   :  { %v4192_v11 = vadd.f32 %v4191_v27, %v4190_v43 }
 0x3a7   :  { %v4193_v32 = vpop.f32.mrf.mxu0 }
 0x3a8   :  { %v3660_v21 = vadd.f32 %v4192_v11, %v5643_v48 }
 0x3a9   :  { %v4194_v12 = vpop.f32.mrf.mxu0 }
 0x3aa   :  { %v4158_v49 = vmul.f32 -1.442695, %v3660_v21  ;;  %v4195_v18 = vadd.f32 %v4194_v12, %v4193_v32 }
 0x3ab   :  { %v4196_v13 = vpop.f32.mrf.mxu0 }
 0x3ac   :  { %4717 = vpow2.f32 %v4158_v49  ;;  %v3663_v56 = vadd.f32 %v4195_v18, %v5643_v48 }
 0x3ad   :  { %v4197_v9 = vpop.f32.mrf.mxu0 }
 0x3ae   :  { %v4159_v44 = vmul.f32 -1.442695, %v3663_v56  ;;  %v4198_v16 = vadd.f32 %v4197_v9, %v4196_v13 }
 0x3af   :  { %v4199_v30 = vpop.f32.mrf.mxu0 }
 0x3b0   :  { %4719 = vpow2.f32 %v4159_v44  ;;  %v3668_v1 = vadd.f32 %v4198_v16, %v5643_v48 }
 0x3b1   :  { %v4200_v39 = vpop.f32.mrf.mxu0 }
 0x3b2   :  { %v4160_v0 = vmul.f32 -1.442695, %v3668_v1  ;;  %v4201_v40 = vadd.f32 %v4200_v39, %v4199_v30 }
 0x3b3   :  { %v4202_v50 = vpop.f32.mrf.mxu0 }
 0x3b4   :  { %4721 = vpow2.f32 %v4160_v0  ;;  %v3671_v33 = vadd.f32 %v4201_v40, %v5643_v48 }
 0x3b5   :  { %v4203_v29 = vpop.f32.mrf.mxu0 }
 0x3b6   :  { %v4161_v63 = vmul.f32 -1.442695, %v3671_v33  ;;  %v4204_v62 = vadd.f32 %v4203_v29, %v4202_v50 }
 0x3b7   :  { %v4205_v59 = vpop.f32.mrf.mxu0 }
 0x3b8   :  { %4723 = vpow2.f32 %v4161_v63  ;;  %v3676_v42 = vadd.f32 %v4204_v62, %v5643_v48 }
 0x3b9   :  { %v4718_v8 = vpop.eup %4717  ;;  %v4206_v31 = vpop.f32.mrf.mxu0 }
 0x3ba   :  { %v3770_v3 = vadd.f32 1.0, %v4718_v8  ;;  %v4162_v60 = vmul.f32 -1.442695, %v3676_v42  ;;  %v4207_v41 = vadd.f32 %v4206_v31, %v4205_v59 }
 0x3bb   :  { %v4208_v54 = vpop.f32.mrf.mxu0 }
 0x3bc   :  { %4725 = vrcp.f32 %v3770_v3  ;;  %v3679_v58 = vadd.f32 %v4207_v41, %v5643_v48 }
 0x3bd   :  { %v4720_v46 = vpop.eup %4719  ;;  %4727 = vpow2.f32 %v4162_v60  ;;  %v4209_v19 = vpop.f32.mrf.mxu0 }
 0x3be   :  { %v3771_v22 = vadd.f32 1.0, %v4720_v46  ;;  %v4163_v15 = vmul.f32 -1.442695, %v3679_v58  ;;  %v4210_v53 = vadd.f32 %v4209_v19, %v4208_v54 }
 0x3bf   :  { %v4211_v38 = vpop.f32.mrf.mxu0 }
 0x3c0   :  { %4729 = vrcp.f32 %v3771_v22  ;;  %v3684_v17 = vadd.f32 %v4210_v53, %v5643_v48 }
 0x3c1   :  { %v4722_v61 = vpop.eup %4721  ;;  %4731 = vpow2.f32 %v4163_v15  ;;  %v4212_v55 = vpop.f32.mrf.mxu0 }
 0x3c2   :  { %v3772_v7 = vadd.f32 1.0, %v4722_v61  ;;  %v4164_v51 = vmul.f32 -1.442695, %v3684_v17  ;;  %v4213_v36 = vadd.f32 %v4212_v55, %v4211_v38 }
 0x3c3   :  { %v4214_v57 = vpop.f32.mrf.mxu1 }
 0x3c4   :  { %4733 = vrcp.f32 %v3772_v7  ;;  %v3687_v37 = vadd.f32 %v4213_v36, %v5643_v48 }
 0x3c5   :  { %v4724_v25 = vpop.eup %4723  ;;  %4735 = vpow2.f32 %v4164_v51  ;;  %v4215_v24 = vpop.f32.mrf.mxu1 }
 0x3c6   :  { %v3773_v45 = vadd.f32 1.0, %v4724_v25  ;;  %v4165_v23 = vmul.f32 -1.442695, %v3687_v37  ;;  %v4216_v47 = vadd.f32 %v4215_v24, %v4214_v57 }
 0x3c7   :  { %v4217_v14 = vpop.f32.mrf.mxu1 }
 0x3c8   :  { %4737 = vrcp.f32 %v3773_v45  ;;  %v3692_v4 = vadd.f32 %v4216_v47, %v5643_v48 }
 0x3c9   :  { %v4726_v52 = vpop.eup %4725  ;;  %4739 = vpow2.f32 %v4165_v23  ;;  %v4218_v26 = vpop.f32.mrf.mxu1 }
 0x3ca   :  { %v4728_v2 = vpop.eup %4727  ;;  %3818 = vst [vmem:[#allocation11] sm:$0xff] %v4726_v52  ;;  %v4166_v6 = vmul.f32 -1.442695, %v3692_v4  ;;  %v4219_v20 = vadd.f32 %v4218_v26, %v4217_v14 }
 0x3cb   :  { %v3774_v34 = vadd.f32 1.0, %v4728_v2  ;;  %v4220_v5 = vpop.f32.mrf.mxu1 }
 0x3cc   :  { %4741 = vpow2.f32 %v4166_v6  ;;  %v3695_v28 = vadd.f32 %v4219_v20, %v5643_v48 }
 0x3cd   :  { %v4730_v35 = vpop.eup %4729  ;;  %4743 = vrcp.f32 %v3774_v34  ;;  %v4221_v10 = vpop.f32.mrf.mxu1 }
 0x3ce   :  { %v4732_v43 = vpop.eup %4731  ;;  %3819 = vst [vmem:[#allocation11 + $0x8] sm:$0xff] %v4730_v35  ;;  %v4167_v27 = vmul.f32 -1.442695, %v3695_v28  ;;  %v4222_v11 = vadd.f32 %v4221_v10, %v4220_v5 }
 0x3cf   :  { %v3775_v32 = vadd.f32 1.0, %v4732_v43  ;;  %v4223_v21 = vpop.f32.mrf.mxu1 }
 0x3d0   :  { %4745 = vpow2.f32 %v4167_v27  ;;  %v3700_v12 = vadd.f32 %v4222_v11, %v5643_v48 }
 0x3d1   :  { %v4734_v49 = vpop.eup %4733  ;;  %4747 = vrcp.f32 %v3775_v32  ;;  %v4224_v18 = vpop.f32.mrf.mxu1 }
 0x3d2   :  { %v4736_v13 = vpop.eup %4735  ;;  %3820 = vst [vmem:[#allocation11 + $0x10] sm:$0xff] %v4734_v49  ;;  %v4168_v56 = vmul.f32 -1.442695, %v3700_v12  ;;  %v4225_v9 = vadd.f32 %v4224_v18, %v4223_v21 }
 0x3d3   :  { %v3776_v44 = vadd.f32 1.0, %v4736_v13  ;;  %v4226_v16 = vpop.f32.mrf.mxu1 }
 0x3d4   :  { %4749 = vpow2.f32 %v4168_v56  ;;  %v3703_v30 = vadd.f32 %v4225_v9, %v5643_v48 }
 0x3d5   :  { %v4738_v1 = vpop.eup %4737  ;;  %4751 = vrcp.f32 %v3776_v44  ;;  %v4227_v39 = vpop.f32.mrf.mxu1 }
 0x3d6   :  { %v4740_v0 = vpop.eup %4739  ;;  %3821 = vst [vmem:[#allocation11 + $0x18] sm:$0xff] %v4738_v1  ;;  %v4169_v40 = vmul.f32 -1.442695, %v3703_v30  ;;  %v4228_v50 = vadd.f32 %v4227_v39, %v4226_v16 }
 0x3d7   :  { %v3777_v33 = vadd.f32 1.0, %v4740_v0  ;;  %v4229_v29 = vpop.f32.mrf.mxu1 }
 0x3d8   :  { %4753 = vpow2.f32 %v4169_v40  ;;  %v3708_v63 = vadd.f32 %v4228_v50, %v5643_v48 }
 0x3d9   :  { %v4742_v62 = vpop.eup %4741  ;;  %4755 = vrcp.f32 %v3777_v33  ;;  %v4230_v59 = vpop.f32.mrf.mxu1 }
 0x3da   :  { %v4744_v42 = vpop.eup %4743  ;;  %v3778_v8 = vadd.f32 1.0, %v4742_v62  ;;  %v4170_v31 = vmul.f32 -1.442695, %v3708_v63  ;;  %v4231_v3 = vadd.f32 %v4230_v59, %v4229_v29 }
 0x3db   :  { %3822 = vst [vmem:[#allocation11 + $0x20] sm:$0xff] %v4744_v42  ;;  %v4232_v60 = vpop.f32.mrf.mxu1 }
 0x3dc   :  { %4757 = vrcp.f32 %v3778_v8  ;;  %v3711_v41 = vadd.f32 %v4231_v3, %v5643_v48 }
 0x3dd   :  { %v4746_v54 = vpop.eup %4745  ;;  %4759 = vpow2.f32 %v4170_v31  ;;  %v4233_v58 = vpop.f32.mrf.mxu1 }
 0x3de   :  { %v4748_v46 = vpop.eup %4747  ;;  %v3779_v19 = vadd.f32 1.0, %v4746_v54  ;;  %v4171_v22 = vmul.f32 -1.442695, %v3711_v41  ;;  %v4234_v15 = vadd.f32 %v4233_v58, %v4232_v60 }
 0x3df   :  { %3823 = vst [vmem:[#allocation11 + $0x28] sm:$0xff] %v4748_v46  ;;  %v4235_v53 = vpop.f32.mrf.mxu1 }
 0x3e0   :  { %4761 = vrcp.f32 %v3779_v19  ;;  %v3716_v38 = vadd.f32 %v4234_v15, %v5643_v48 }
 0x3e1   :  { %v4750_v17 = vpop.eup %4749  ;;  %4763 = vpow2.f32 %v4171_v22  ;;  %v4236_v61 = vpop.f32.mrf.mxu1 }
 0x3e2   :  { %v4752_v55 = vpop.eup %4751  ;;  %v3780_v7 = vadd.f32 1.0, %v4750_v17  ;;  %v4172_v51 = vmul.f32 -1.442695, %v3716_v38  ;;  %v4237_v36 = vadd.f32 %v4236_v61, %v4235_v53 }
 0x3e3   :  { %3824 = vst [vmem:[#allocation11 + $0x30] sm:$0xff] %v4752_v55 }
 0x3e4   :  { %4765 = vrcp.f32 %v3780_v7  ;;  %v3719_v57 = vadd.f32 %v4237_v36, %v5643_v48 }
 0x3e5   :  { %v4754_v37 = vpop.eup %4753  ;;  %4767 = vpow2.f32 %v4172_v51 }
 0x3e6   :  { %v4756_v25 = vpop.eup %4755  ;;  %v3781_v24 = vadd.f32 1.0, %v4754_v37  ;;  %v4173_v45 = vmul.f32 -1.442695, %v3719_v57 }
 0x3e7   :  { %3825 = vst [vmem:[#allocation11 + $0x38] sm:$0xff] %v4756_v25 }
 0x3e8   :  { %4769 = vrcp.f32 %v3781_v24 }
 0x3e9   :  { %v4758_v23 = vpop.eup %4757  ;;  %4771 = vpow2.f32 %v4173_v45 }
 0x3ea   :  { %v4760_v47 = vpop.eup %4759  ;;  %3826 = vst [vmem:[#allocation11 + $0x40] sm:$0xff] %v4758_v23 }
 0x3eb   :  { %v3782_v14 = vadd.f32 1.0, %v4760_v47 }
 0x3ed   :  { %v4762_v4 = vpop.eup %4761  ;;  %4773 = vrcp.f32 %v3782_v14 }
 0x3ee   :  { %v4764_v52 = vpop.eup %4763  ;;  %3827 = vst [vmem:[#allocation11 + $0x48] sm:$0xff] %v4762_v4 }
 0x3ef   :  { %v3783_v26 = vadd.f32 1.0, %v4764_v52 }
 0x3f1   :  { %v4766_v2 = vpop.eup %4765  ;;  %4775 = vrcp.f32 %v3783_v26 }
 0x3f2   :  { %v4768_v48 = vpop.eup %4767  ;;  %3828 = vst [vmem:[#allocation11 + $0x50] sm:$0xff] %v4766_v2 }
 0x3f3   :  { %v3784_v6 = vadd.f32 1.0, %v4768_v48 }
 0x3f5   :  { %v4770_v20 = vpop.eup %4769  ;;  %4777 = vrcp.f32 %v3784_v6 }
 0x3f6   :  { %v4772_v34 = vpop.eup %4771  ;;  %3829 = vst [vmem:[#allocation11 + $0x58] sm:$0xff] %v4770_v20 }
 0x3f7   :  { %v3785_v5 = vadd.f32 1.0, %v4772_v34 }
 0x3f9   :  { %4779 = vrcp.f32 %v3785_v5 }
 0x3fa   :  { %v4774_v28 = vpop.eup %4773 }
 0x3fb   :  { %3830 = vst [vmem:[#allocation11 + $0x60] sm:$0xff] %v4774_v28 }
 0x3fe   :  { %v4776_v35 = vpop.eup %4775 }
 0x3ff   :  { %3831 = vst [vmem:[#allocation11 + $0x68] sm:$0xff] %v4776_v35 }
 0x402   :  { %v4778_v10 = vpop.eup %4777 }
 0x403   :  { %3832 = vst [vmem:[#allocation11 + $0x70] sm:$0xff] %v4778_v10 }
 0x406   :  { %v4780_v43 = vpop.eup %4779 }
 0x407   :  { %3833 = vst [vmem:[#allocation11 + $0x78] sm:$0xff] %v4780_v43 }
 0x408   :  { %4893 = shalt.err (!%p4890_p1)
}
 0x409   :  { %3845 = dma.vmem_to_hbm [thread:$0]  %s3840_s9, 2048, %s5674_s7, [#allocation4], %s4914_s11, %s4914_s11, %s4915_s12  }
 0x40a   :  { %4908 = dma.done.wait [#allocation4], 2048  }
 0x40b   :  { %4909 = vsyncadd [#allocation4], 4294965248 }
 0x40c   :  { %3849 = vsyncpa [#allocation3], 1 }
 0x40d   :  { %3850 = vsyncpa [#allocation6], 1 }
 0x40e   :  { %3851 = vsyncpa [#allocation9], 1 }
 0x40f   :  { %3852 = vsyncpa [#allocation4], 1 }

</bundles_post_ra>
